<compile_context>
chip_gen: v6e
topology: v6e:2x2x1
jax: 0.10.0
libtpu: 0.0.40
codegen_flags: <defaults>
</compile_context>

<pallas_src>
import jax
import jax.numpy as jnp
from jax import lax
from jax.experimental import pallas as pl
from jax.experimental.pallas import tpu as pltpu

HEAD = 4
HEAD_DIM = 16
KERNEL_ATT = 7
KERNEL_CONV = 3
PAD_ATT = 3
OUT_PLANES = 64
KK_TAPS = KERNEL_ATT * KERNEL_ATT          # 49 attention taps (no pad)


def _round_up(x, m):
    return ((x + m - 1) // m) * m


def _detect_vmem_limit():
    """Generation-dependent VMEM budget: ~96MB on v5e/v6e (128MiB physical),
    ~48MB on v7x (64MiB physical); conservative 48MB if the query fails."""
    cap = None
    try:
        info = pltpu.get_tpu_info()
        for attr in ("vmem_capacity_bytes", "vmem_size_bytes", "vmem_bytes"):
            v = getattr(info, attr, None)
            if v:
                cap = int(v)
                break
    except Exception:
        cap = None
    if not cap:
        cap = 64 * 1024 * 1024
    return max(32 * 1024 * 1024, min(cap * 3 // 4, 96 * 1024 * 1024))


VMEM_LIMIT = _detect_vmem_limit()


# ----------------------------- Pallas kernels -----------------------------

def _matmul_bias_kernel(a_ref, b_ref, bias_ref, o_ref):
    acc = jnp.dot(a_ref[...], b_ref[...], preferred_element_type=jnp.float32)
    o_ref[...] = (acc + bias_ref[...]).astype(o_ref.dtype)


def pallas_matmul(a, b, bias=None, out_dtype=jnp.float32):
    """(M,K) @ (K,N) + bias on the MXU (bf16 operands, f32 accumulation)."""
    M, K = a.shape
    N = b.shape[1]
    a_bf = a.astype(jnp.bfloat16)
    b_bf = b.astype(jnp.bfloat16)
    if bias is None:
        bias = jnp.zeros((N,), jnp.float32)
    bias = bias.astype(jnp.float32)
    Npad = _round_up(N, 128)                    # lane-dense (unmasked) stores
    if Npad != N:
        b_bf = jnp.pad(b_bf, ((0, 0), (0, Npad - N)))
        bias = jnp.pad(bias, (0, Npad - N))
    bias2 = bias.reshape(1, Npad)
    if M >= 2048 and VMEM_LIMIT >= 64 * 1024 * 1024:
        TM = 1024                               # big tiles on v5e/v6e VMEM budgets
    elif M >= 1024:
        TM = 512
    else:
        TM = max(16, _round_up((M + 1) // 2, 16))   # >=2 grid steps when possible
    Mpad = _round_up(M, TM)
    if Mpad != M:
        a_bf = jnp.pad(a_bf, ((0, Mpad - M), (0, 0)))
    out = pl.pallas_call(
        _matmul_bias_kernel,
        out_shape=jax.ShapeDtypeStruct((Mpad, Npad), out_dtype),
        grid=(Mpad // TM,),
        in_specs=[
            pl.BlockSpec((TM, K), lambda i: (i, 0)),
            pl.BlockSpec((K, Npad), lambda i: (0, 0)),
            pl.BlockSpec((1, Npad), lambda i: (0, 0)),
        ],
        out_specs=pl.BlockSpec((TM, Npad), lambda i: (i, 0)),
        compiler_params=pltpu.CompilerParams(
            dimension_semantics=("parallel",),
            vmem_limit_bytes=VMEM_LIMIT),
    )(a_bf, b_bf, bias2)
    if Mpad != M or Npad != N:
        out = out[:M, :N]
    return out


def dense(a, b, bias=None, out_dtype=jnp.float32):
    """a @ b + bias; degenerate shapes (mostly-masked MXU tiles) stay in XLA."""
    M, K = a.shape
    N = b.shape[1]
    if M < 16 or K < 16 or N < 16:
        y = jnp.dot(a.astype(jnp.float32), b.astype(jnp.float32))
        if bias is not None:
            y = y + bias.astype(jnp.float32)
        return y.astype(out_dtype)
    return pallas_matmul(a, b, bias, out_dtype=out_dtype)


def _acmix_attn_kernel(q_ref, k_ref, v_ref, bias_ref, o_ref):
    # q: (1,HD,TS) bf16 ; k/v: (1,HD,49,TS) bf16 ; bias: (HD,49,TS) bf16
    q = q_ref[0].astype(jnp.float32)            # (HD, TS)
    k = k_ref[0].astype(jnp.float32)            # (HD, KK, TS)
    v = v_ref[0].astype(jnp.float32)            # (HD, KK, TS)
    bias = bias_ref[...].astype(jnp.float32)    # (HD, KK, TS)
    att = jnp.sum(q[:, None, :] * (k + bias), axis=0)     # (KK, TS)
    att = att - jnp.max(att, axis=0, keepdims=True)
    e = jnp.exp(att)
    p = e / jnp.sum(e, axis=0, keepdims=True)              # softmax over taps
    o_ref[0] = jnp.sum(p[None, :, :] * v, axis=1)          # (HD, TS), f32


def _choose_s_tile(S):
    if S % 128 != 0:
        return S                                # full (legal: block == array dim)
    ts = min(1024, S)
    while S % ts:
        ts -= 128
    return ts


def acmix_attention(q, k, v, bias):
    """q: (BH,HD,S) bf16; k/v: (BH,HD,49,S) bf16; bias: (HD,49,S) bf16.
    Grid (S-tiles, BH): the bias block index is constant along BH so it is not
    re-fetched; both axes are parallel (v7x megacore); f32 output (BH,HD,S)."""
    BH, HD, S = q.shape
    KK = k.shape[2]
    TS = _choose_s_tile(S)
    ns = S // TS
    return pl.pallas_call(
        _acmix_attn_kernel,
        out_shape=jax.ShapeDtypeStruct((BH, HD, S), jnp.float32),
        grid=(ns, BH),
        in_specs=[
            pl.BlockSpec((1, HD, TS), lambda s, b: (b, 0, s)),
            pl.BlockSpec((1, HD, KK, TS), lambda s, b: (b, 0, 0, s)),
            pl.BlockSpec((1, HD, KK, TS), lambda s, b: (b, 0, 0, s)),
            pl.BlockSpec((HD, KK, TS), lambda s, b: (0, 0, s)),
        ],
        out_specs=pl.BlockSpec((1, HD, TS), lambda s, b: (b, 0, s)),
        compiler_params=pltpu.CompilerParams(
            dimension_semantics=("parallel", "parallel"),
            vmem_limit_bytes=VMEM_LIMIT),
    )(q, k, v, bias)


# ----------------------------- JAX glue -----------------------------------

def conv1x1_3d(x, w, b=None, out_dtype=jnp.float32):
    """Conv3d with 1x1x1 kernel: channel matmul (Pallas when non-degenerate)."""
    B, Cin, D, H, W = x.shape
    xt = jnp.transpose(x, (0, 2, 3, 4, 1)).reshape(-1, Cin)
    y = dense(xt, jnp.transpose(w), b, out_dtype=out_dtype)
    Cout = w.shape[0]
    return jnp.transpose(y.reshape(B, D, H, W, Cout), (0, 4, 1, 2, 3))


def conv1x1_3d_fused(x, ws, bs, out_dtype=jnp.float32):
    """Several 1x1x1 convs on the same input fused into one lane-dense matmul."""
    B, Cin, D, H, W = x.shape
    xt = jnp.transpose(x, (0, 2, 3, 4, 1)).reshape(-1, Cin)
    Wcat = jnp.concatenate([jnp.transpose(w) for w in ws], axis=1)
    bcat = jnp.concatenate(list(bs))
    y = dense(xt, Wcat, bcat, out_dtype=out_dtype)
    outs, off = [], 0
    for w in ws:
        Cout = w.shape[0]
        yi = y[:, off:off + Cout]
        outs.append(jnp.transpose(yi.reshape(B, D, H, W, Cout), (0, 4, 1, 2, 3)))
        off += Cout
    return outs


def batchnorm3d(x, gamma, beta, eps=1e-5):
    # training-mode batch statistics (PyTorch module default), gamma=1 / beta=0 at init
    mean = jnp.mean(x, axis=(0, 2, 3, 4), keepdims=True)
    var = jnp.mean((x - mean) ** 2, axis=(0, 2, 3, 4), keepdims=True)
    g = gamma.reshape(1, -1, 1, 1, 1)
    b = beta.reshape(1, -1, 1, 1, 1)
    return g * (x - mean) / jnp.sqrt(var + eps) + b


def maxpool3d_k3s2p1(x):
    return lax.reduce_window(
        x, jnp.array(-jnp.inf, x.dtype), lax.max,
        window_dimensions=(1, 1, 3, 3, 3),
        window_strides=(1, 1, 2, 2, 2),
        padding=((0, 0), (0, 0), (1, 1), (1, 1), (1, 1)))


def _unfold_hw(x_pad, kernel, h, w):
    """Reproduce the per-depth nn.Unfold loop: returns the natural buffer of
    shape (D, N, C, kernel*kernel, h, w) whose row-major flat layout equals the
    concatenated torch unfold output (so later flat `.view()`s match exactly)."""
    slices = []
    for kh in range(kernel):
        for kw in range(kernel):
            slices.append(x_pad[:, :, :, kh:kh + h, kw:kw + w])
    pat = jnp.stack(slices, axis=3)            # (N, C, D, k*k, h, w)
    return jnp.transpose(pat, (2, 0, 1, 3, 4, 5))


def acmix_forward(x, P):
    B, _, c, h, w = x.shape
    # fused q/k/v projection: one lane-dense (Cin=64, N=192->256) matmul, bf16 out
    q, k, v = conv1x1_3d_fused(
        x,
        [P['ac_q_w'], P['ac_k_w'], P['ac_v_w']],
        [P['ac_q_b'], P['ac_k_b'], P['ac_v_b']],
        out_dtype=jnp.bfloat16)
    scaling = float(HEAD_DIM) ** (-0.5)

    # position_3D + conv_p_3D (K=2 -> XLA fallback inside dense)
    loc_w = jnp.broadcast_to(jnp.linspace(-1.0, 1.0, w)[None, None, :], (c, h, w))
    loc_h = jnp.broadcast_to(jnp.linspace(-1.0, 1.0, h)[None, :, None], (c, h, w))
    loc = jnp.stack([loc_w, loc_h], axis=0)[None].astype(jnp.float32)   # (1,2,c,h,w)
    pe = conv1x1_3d(loc, P['ac_pe_w'], P['ac_pe_b'])                    # (1,16,c,h,w)

    BH = B * HEAD
    S = c * h * w
    q_att = (q.reshape(BH, HEAD_DIM, S) * scaling).astype(jnp.bfloat16)
    k_att = k.reshape(BH, HEAD_DIM, c, h, w)
    v_att = v.reshape(BH, HEAD_DIM, c, h, w)

    def refpad(t):  # ReflectionPad3d((3,3,3,3,0,0)): pad H and W only
        return jnp.pad(t, ((0, 0), (0, 0), (0, 0),
                           (PAD_ATT, PAD_ATT), (PAD_ATT, PAD_ATT)), mode='reflect')

    # flat-buffer reinterpretation matching the PyTorch `.view()` exactly
    unfold_k = _unfold_hw(refpad(k_att), KERNEL_ATT, h, w).reshape(
        BH, HEAD_DIM, KK_TAPS, S)                                       # bf16
    unfold_v = _unfold_hw(refpad(v_att), KERNEL_ATT, h, w).reshape(
        BH, HEAD_DIM, KK_TAPS, S)                                       # bf16
    unfold_rpe = _unfold_hw(refpad(pe), KERNEL_ATT, h, w).reshape(
        HEAD_DIM, KK_TAPS, S)                                           # f32

    # de-duplicated positional bias, shared across all B*head heads
    bias = (pe.reshape(HEAD_DIM, S)[:, None, :] - unfold_rpe).astype(jnp.bfloat16)

    out_att = acmix_attention(q_att, unfold_k, unfold_v, bias)          # (BH,HD,S) f32
    out_att = out_att.reshape(B, OUT_PLANES, c, h, w)

    # ---- convolution branch ----
    f_in = jnp.concatenate([
        q.reshape(B, HEAD, HEAD_DIM, c, h * w),
        k.reshape(B, HEAD, HEAD_DIM, c, h * w),
        v.reshape(B, HEAD, HEAD_DIM, c, h * w)], axis=1).astype(jnp.float32)
    # fc_3D (K=12, N=9, no bias): degenerate shape -> plain XLA einsum
    f_all = jnp.einsum('oi,bidyx->bodyx', P['ac_fc_w'].astype(jnp.float32), f_in)
    f_conv = jnp.transpose(f_all, (0, 2, 1, 3, 4)).reshape(
        B, HEAD_DIM * KERNEL_CONV * KERNEL_CONV, c, h, w)

    # dep_conv_3D: grouped 3x3x3 conv (groups=head_dim, pad=1, bias removed by
    # init_rate_0) -> native XLA grouped conv (no 27x im2col HBM round trip).
    out_conv = lax.conv_general_dilated(
        f_conv, P['ac_dep_w'].astype(jnp.float32),
        window_strides=(1, 1, 1),
        padding=((1, 1), (1, 1), (1, 1)),
        dimension_numbers=('NCDHW', 'OIDHW', 'NCDHW'),
        feature_group_count=HEAD_DIM)

    return P['ac_rate1'] * out_att + P['ac_rate2'] * out_conv


def hypercs3d_forward(x, P):
    # stem: Conv3d(1,64,7,p=3,bias=False) via XLA conv (avoids 343x im2col traffic)
    out = lax.conv_general_dilated(
        x, P['stem_w'], window_strides=(1, 1, 1),
        padding=((3, 3), (3, 3), (3, 3)),
        dimension_numbers=('NCDHW', 'OIDHW', 'NCDHW'))
    out = jnp.maximum(batchnorm3d(out, P['bn1_g'], P['bn1_b']), 0.0)
    out = maxpool3d_k3s2p1(out)
    # layer1: single Bottleneck(64 -> 256) with ACmix and 1x1x1 downsample.
    # bk_c1 (64->64) and ds (64->256) share the same input -> fused N=320 matmul.
    y0, identity = conv1x1_3d_fused(
        out, [P['bk_c1_w'], P['ds_w']], [P['bk_c1_b'], P['ds_b']])
    y = jnp.maximum(batchnorm3d(y0, P['bk_bn1_g'], P['bk_bn1_b']), 0.0)
    y = acmix_forward(y, P)
    y = jnp.maximum(batchnorm3d(y, P['bk_bn2_g'], P['bk_bn2_b']), 0.0)
    y = conv1x1_3d(y, P['bk_c3_w'], P['bk_c3_b'])
    y = batchnorm3d(y, P['bk_bn3_g'], P['bk_bn3_b'])
    identity = batchnorm3d(identity, P['ds_bn_g'], P['ds_bn_b'])
    y = jnp.maximum(y + identity, 0.0)
    # head: AdaptiveAvgPool3d(1) -> flatten -> Linear(256, 11); M=2 -> XLA path
    pooled = jnp.mean(y, axis=(2, 3, 4))
    return dense(pooled, jnp.transpose(P['fc_w']), P['fc_b'])


def init_params(key):
    keys = iter(jax.random.split(key, 24))

    def rnd(shape, scale=0.1):
        return (scale * jax.random.normal(next(keys), shape)).astype(jnp.float32)

    ones = lambda n: jnp.ones((n,), jnp.float32)
    zeros = lambda n: jnp.zeros((n,), jnp.float32)
    P = {}
    P['stem_w'] = rnd((64, 1, 7, 7, 7))
    P['bn1_g'], P['bn1_b'] = ones(64), zeros(64)
    P['bk_c1_w'], P['bk_c1_b'] = rnd((64, 64)), rnd((64,))
    P['bk_bn1_g'], P['bk_bn1_b'] = ones(64), zeros(64)
    # ACmix parameters
    P['ac_q_w'], P['ac_q_b'] = rnd((64, 64)), rnd((64,))
    P['ac_k_w'], P['ac_k_b'] = rnd((64, 64)), rnd((64,))
    P['ac_v_w'], P['ac_v_b'] = rnd((64, 64)), rnd((64,))
    P['ac_pe_w'], P['ac_pe_b'] = rnd((HEAD_DIM, 2)), rnd((HEAD_DIM,))
    P['ac_fc_w'] = rnd((KERNEL_CONV * KERNEL_CONV, 3 * HEAD))        # no bias
    P['ac_dep_w'] = rnd((OUT_PLANES, KERNEL_CONV * KERNEL_CONV, 3, 3, 3))  # bias -> None
    P['ac_rate1'] = jnp.float32(0.5)
    P['ac_rate2'] = jnp.float32(0.5)
    P['bk_bn2_g'], P['bk_bn2_b'] = ones(64), zeros(64)
    P['bk_c3_w'], P['bk_c3_b'] = rnd((256, 64)), rnd((256,))
    P['bk_bn3_g'], P['bk_bn3_b'] = ones(256), zeros(256)
    P['ds_w'], P['ds_b'] = rnd((256, 64)), rnd((256,))
    P['ds_bn_g'], P['ds_bn_b'] = ones(256), zeros(256)
    P['fc_w'], P['fc_b'] = rnd((11, 256)), rnd((11,))
    return P


if __name__ == "__main__":
    key = jax.random.PRNGKey(0)
    pkey, xkey = jax.random.split(key)
    params = init_params(pkey)
    x = jax.random.normal(xkey, (2, 1, 8, 8, 8), dtype=jnp.float32)  # NCDHW, 1 input channel
    logits = jax.jit(hypercs3d_forward)(x, params)
    logits = jax.block_until_ready(logits)
    assert logits.shape == (2, 11)
    assert bool(jnp.all(jnp.isfinite(logits)))
    print("KERNEL_OK")
</pallas_src>

<mosaic_0001>
module attributes {stable_mosaic.version = 11 : i64} {
  func.func @_matmul_bias_kernel(%arg0: i32, %arg1: memref<64x64xbf16, #tpu.memory_space<vmem>>, %arg2: memref<64x384xbf16, #tpu.memory_space<vmem>>, %arg3: memref<1x384xf32, #tpu.memory_space<vmem>>, %arg4: memref<64x384xf32, #tpu.memory_space<vmem>>) attributes {dimension_semantics = [#tpu.dimension_semantics<parallel>], iteration_bounds = array<i64: 2>, scalar_prefetch = 0 : i64, scratch_operands = 0 : i64, tpu.core_type = #tpu.core_type<tc>, window_params = [{transform_indices = @transform_0, window_bounds = array<i64: 64, 64>}, {pipeline_mode = #tpu.pipeline_mode<synchronous>, transform_indices = @transform_1, window_bounds = array<i64: 64, 384>}, {pipeline_mode = #tpu.pipeline_mode<synchronous>, transform_indices = @transform_2, window_bounds = array<i64: 1, 384>}, {transform_indices = @transform_3, window_bounds = array<i64: 64, 384>}]} {
    %c0 = arith.constant 0 : index
    %c0_0 = arith.constant 0 : index
    %0 = vector.load %arg1[%c0, %c0_0] : memref<64x64xbf16, #tpu.memory_space<vmem>>, vector<64x64xbf16>
    %c0_1 = arith.constant 0 : index
    %c0_2 = arith.constant 0 : index
    %1 = vector.load %arg2[%c0_1, %c0_2] : memref<64x384xbf16, #tpu.memory_space<vmem>>, vector<64x384xbf16>
    %cst = arith.constant dense<0.000000e+00> : vector<64x384xf32>
    %2 = tpu.matmul %0, %1, %cst {dimension_numbers = #tpu.dot_dimension_numbers<[1], [0], [0], [1], [0, 0, 1, 1], [], []>} : vector<64x64xbf16>, vector<64x384xbf16>, vector<64x384xf32> -> vector<64x384xf32>
    %c0_3 = arith.constant 0 : index
    %c0_4 = arith.constant 0 : index
    %3 = vector.load %arg3[%c0_3, %c0_4] : memref<1x384xf32, #tpu.memory_space<vmem>>, vector<1x384xf32>
    %4 = vector.broadcast %3 : vector<1x384xf32> to vector<64x384xf32>
    %5 = arith.addf %2, %4 : vector<64x384xf32>
    %c0_5 = arith.constant 0 : index
    %c0_6 = arith.constant 0 : index
    %6 = vector.load %arg4[%c0_5, %c0_6] : memref<64x384xf32, #tpu.memory_space<vmem>>, vector<64x384xf32>
    tpu.vector_store %arg4[%c0_5, %c0_6], %5 {strides = array<i32>} : memref<64x384xf32, #tpu.memory_space<vmem>>, vector<64x384xf32>,
    return
  }
  func.func @transform_0(%arg0: i32) -> (i32, i32) {
    %c0_i32 = arith.constant 0 : i32
    %c0_i32_0 = arith.constant 0 : i32
    return %arg0, %c0_i32 : i32, i32
  }
  func.func @transform_1(%arg0: i32) -> (i32, i32) {
    %c0_i32 = arith.constant 0 : i32
    %c0_i32_0 = arith.constant 0 : i32
    %c0_i32_1 = arith.constant 0 : i32
    return %c0_i32, %c0_i32_0 : i32, i32
  }
  func.func @transform_2(%arg0: i32) -> (i32, i32) {
    %c0_i32 = arith.constant 0 : i32
    %c0_i32_0 = arith.constant 0 : i32
    %c0_i32_1 = arith.constant 0 : i32
    return %c0_i32, %c0_i32_0 : i32, i32
  }
  func.func @transform_3(%arg0: i32) -> (i32, i32) {
    %c0_i32 = arith.constant 0 : i32
    %c0_i32_0 = arith.constant 0 : i32
    return %arg0, %c0_i32 : i32, i32
  }
}

module attributes {stable_mosaic.version = 11 : i64} {
  func.func @_matmul_bias_kernel(%arg0: i32, %arg1: memref<64x64xbf16, #tpu.memory_space<vmem>>, %arg2: memref<64x256xbf16, #tpu.memory_space<vmem>>, %arg3: memref<1x256xf32, #tpu.memory_space<vmem>>, %arg4: memref<64x256xbf16, #tpu.memory_space<vmem>>) attributes {dimension_semantics = [#tpu.dimension_semantics<parallel>], iteration_bounds = array<i64: 2>, scalar_prefetch = 0 : i64, scratch_operands = 0 : i64, tpu.core_type = #tpu.core_type<tc>, window_params = [{transform_indices = @transform_0, window_bounds = array<i64: 64, 64>}, {pipeline_mode = #tpu.pipeline_mode<synchronous>, transform_indices = @transform_1, window_bounds = array<i64: 64, 256>}, {pipeline_mode = #tpu.pipeline_mode<synchronous>, transform_indices = @transform_2, window_bounds = array<i64: 1, 256>}, {transform_indices = @transform_3, window_bounds = array<i64: 64, 256>}]} {
    %c0 = arith.constant 0 : index
    %c0_0 = arith.constant 0 : index
    %0 = vector.load %arg1[%c0, %c0_0] : memref<64x64xbf16, #tpu.memory_space<vmem>>, vector<64x64xbf16>
    %c0_1 = arith.constant 0 : index
    %c0_2 = arith.constant 0 : index
    %1 = vector.load %arg2[%c0_1, %c0_2] : memref<64x256xbf16, #tpu.memory_space<vmem>>, vector<64x256xbf16>
    %cst = arith.constant dense<0.000000e+00> : vector<64x256xf32>
    %2 = tpu.matmul %0, %1, %cst {dimension_numbers = #tpu.dot_dimension_numbers<[1], [0], [0], [1], [0, 0, 1, 1], [], []>} : vector<64x64xbf16>, vector<64x256xbf16>, vector<64x256xf32> -> vector<64x256xf32>
    %c0_3 = arith.constant 0 : index
    %c0_4 = arith.constant 0 : index
    %3 = vector.load %arg3[%c0_3, %c0_4] : memref<1x256xf32, #tpu.memory_space<vmem>>, vector<1x256xf32>
    %4 = vector.broadcast %3 : vector<1x256xf32> to vector<64x256xf32>
    %5 = arith.addf %2, %4 : vector<64x256xf32>
    %6 = arith.truncf %5 : vector<64x256xf32> to vector<64x256xbf16>
    %c0_5 = arith.constant 0 : index
    %c0_6 = arith.constant 0 : index
    %7 = vector.load %arg4[%c0_5, %c0_6] : memref<64x256xbf16, #tpu.memory_space<vmem>>, vector<64x256xbf16>
    tpu.vector_store %arg4[%c0_5, %c0_6], %6 {strides = array<i32>} : memref<64x256xbf16, #tpu.memory_space<vmem>>, vector<64x256xbf16>,
    return
  }
  func.func @transform_0(%arg0: i32) -> (i32, i32) {
    %c0_i32 = arith.constant 0 : i32
    %c0_i32_0 = arith.constant 0 : i32
    return %arg0, %c0_i32 : i32, i32
  }
  func.func @transform_1(%arg0: i32) -> (i32, i32) {
    %c0_i32 = arith.constant 0 : i32
    %c0_i32_0 = arith.constant 0 : i32
    %c0_i32_1 = arith.constant 0 : i32
    return %c0_i32, %c0_i32_0 : i32, i32
  }
  func.func @transform_2(%arg0: i32) -> (i32, i32) {
    %c0_i32 = arith.constant 0 : i32
    %c0_i32_0 = arith.constant 0 : i32
    %c0_i32_1 = arith.constant 0 : i32
    return %c0_i32, %c0_i32_0 : i32, i32
  }
  func.func @transform_3(%arg0: i32) -> (i32, i32) {
    %c0_i32 = arith.constant 0 : i32
    %c0_i32_0 = arith.constant 0 : i32
    return %arg0, %c0_i32 : i32, i32
  }
}

module attributes {stable_mosaic.version = 11 : i64} {
  func.func @_acmix_attn_kernel(%arg0: i32, %arg1: i32, %arg2: memref<1x16x64xbf16, #tpu.memory_space<vmem>>, %arg3: memref<1x16x49x64xbf16, #tpu.memory_space<vmem>>, %arg4: memref<1x16x49x64xbf16, #tpu.memory_space<vmem>>, %arg5: memref<16x49x64xbf16, #tpu.memory_space<vmem>>, %arg6: memref<1x16x64xf32, #tpu.memory_space<vmem>>) attributes {dimension_semantics = [#tpu.dimension_semantics<parallel>, #tpu.dimension_semantics<parallel>], iteration_bounds = array<i64: 1, 8>, scalar_prefetch = 0 : i64, scratch_operands = 0 : i64, tpu.core_type = #tpu.core_type<tc>, window_params = [{transform_indices = @transform_0, window_bounds = array<i64: 1, 16, 64>}, {transform_indices = @transform_1, window_bounds = array<i64: 1, 16, 49, 64>}, {transform_indices = @transform_2, window_bounds = array<i64: 1, 16, 49, 64>}, {transform_indices = @transform_3, window_bounds = array<i64: 16, 49, 64>}, {transform_indices = @transform_4, window_bounds = array<i64: 1, 16, 64>}]} {
    %c0 = arith.constant 0 : index
    %c0_0 = arith.constant 0 : index
    %c0_1 = arith.constant 0 : index
    %0 = vector.load %arg2[%c0, %c0_0, %c0_1] : memref<1x16x64xbf16, #tpu.memory_space<vmem>>, vector<1x16x64xbf16>
    %1 = vector.shape_cast %0 : vector<1x16x64xbf16> to vector<16x64xbf16>
    %2 = arith.extf %1 : vector<16x64xbf16> to vector<16x64xf32>
    %c0_2 = arith.constant 0 : index
    %c0_3 = arith.constant 0 : index
    %c0_4 = arith.constant 0 : index
    %c0_5 = arith.constant 0 : index
    %3 = vector.load %arg3[%c0_2, %c0_3, %c0_4, %c0_5] : memref<1x16x49x64xbf16, #tpu.memory_space<vmem>>, vector<1x16x49x64xbf16>
    %4 = vector.shape_cast %3 : vector<1x16x49x64xbf16> to vector<16x49x64xbf16>
    %5 = arith.extf %4 : vector<16x49x64xbf16> to vector<16x49x64xf32>
    %c0_6 = arith.constant 0 : index
    %c0_7 = arith.constant 0 : index
    %c0_8 = arith.constant 0 : index
    %c0_9 = arith.constant 0 : index
    %6 = vector.load %arg4[%c0_6, %c0_7, %c0_8, %c0_9] : memref<1x16x49x64xbf16, #tpu.memory_space<vmem>>, vector<1x16x49x64xbf16>
    %7 = vector.shape_cast %6 : vector<1x16x49x64xbf16> to vector<16x49x64xbf16>
    %8 = arith.extf %7 : vector<16x49x64xbf16> to vector<16x49x64xf32>
    %c0_10 = arith.constant 0 : index
    %c0_11 = arith.constant 0 : index
    %c0_12 = arith.constant 0 : index
    %9 = vector.load %arg5[%c0_10, %c0_11, %c0_12] : memref<16x49x64xbf16, #tpu.memory_space<vmem>>, vector<16x49x64xbf16>
    %10 = arith.extf %9 : vector<16x49x64xbf16> to vector<16x49x64xf32>
    %11 = vector.shape_cast %2 : vector<16x64xf32> to vector<16x1x64xf32>
    %12 = arith.addf %5, %10 : vector<16x49x64xf32>
    %13 = vector.broadcast %11 : vector<16x1x64xf32> to vector<16x49x64xf32>
    %14 = arith.mulf %13, %12 : vector<16x49x64xf32>
    %cst = arith.constant dense<0.000000e+00> : vector<49x64xf32>
    %15 = vector.multi_reduction <add>, %14, %cst [0] : vector<16x49x64xf32> to vector<49x64xf32>
    %cst_13 = arith.constant dense<0xFF800000> : vector<64xf32>
    %16 = vector.multi_reduction <maximumf>, %15, %cst_13 [0] : vector<49x64xf32> to vector<64xf32>
    %17 = vector.shape_cast %16 : vector<64xf32> to vector<1x64xf32>
    %18 = vector.broadcast %17 : vector<1x64xf32> to vector<49x64xf32>
    %19 = arith.subf %15, %18 : vector<49x64xf32>
    %20 = math.exp %19 : vector<49x64xf32>
    %cst_14 = arith.constant dense<0.000000e+00> : vector<64xf32>
    %21 = vector.multi_reduction <add>, %20, %cst_14 [0] : vector<49x64xf32> to vector<64xf32>
    %22 = vector.shape_cast %21 : vector<64xf32> to vector<1x64xf32>
    %23 = vector.broadcast %22 : vector<1x64xf32> to vector<49x64xf32>
    %24 = arith.divf %20, %23 : vector<49x64xf32>
    %25 = vector.shape_cast %24 : vector<49x64xf32> to vector<1x49x64xf32>
    %26 = vector.broadcast %25 : vector<1x49x64xf32> to vector<16x49x64xf32>
    %27 = arith.mulf %26, %8 : vector<16x49x64xf32>
    %cst_15 = arith.constant dense<0.000000e+00> : vector<16x64xf32>
    %28 = vector.multi_reduction <add>, %27, %cst_15 [1] : vector<16x49x64xf32> to vector<16x64xf32>
    %c0_16 = arith.constant 0 : index
    %c0_17 = arith.constant 0 : index
    %c0_18 = arith.constant 0 : index
    %29 = vector.load %arg6[%c0_16, %c0_17, %c0_18] : memref<1x16x64xf32, #tpu.memory_space<vmem>>, vector<1x16x64xf32>
    %30 = vector.shape_cast %29 : vector<1x16x64xf32> to vector<16x64xf32>
    %31 = vector.shape_cast %28 : vector<16x64xf32> to vector<1x16x64xf32>
    tpu.vector_store %arg6[%c0_16, %c0_17, %c0_18], %31 {strides = array<i32>} : memref<1x16x64xf32, #tpu.memory_space<vmem>>, vector<1x16x64xf32>,
    return
  }
  func.func @transform_0(%arg0: i32, %arg1: i32) -> (i32, i32, i32) {
    %c0_i32 = arith.constant 0 : i32
    %c0_i32_0 = arith.constant 0 : i32
    return %arg1, %c0_i32, %arg0 : i32, i32, i32
  }
  func.func @transform_1(%arg0: i32, %arg1: i32) -> (i32, i32, i32, i32) {
    %c0_i32 = arith.constant 0 : i32
    %c0_i32_0 = arith.constant 0 : i32
    %c0_i32_1 = arith.constant 0 : i32
    return %arg1, %c0_i32, %c0_i32_0, %arg0 : i32, i32, i32, i32
  }
  func.func @transform_2(%arg0: i32, %arg1: i32) -> (i32, i32, i32, i32) {
    %c0_i32 = arith.constant 0 : i32
    %c0_i32_0 = arith.constant 0 : i32
    %c0_i32_1 = arith.constant 0 : i32
    return %arg1, %c0_i32, %c0_i32_0, %arg0 : i32, i32, i32, i32
  }
  func.func @transform_3(%arg0: i32, %arg1: i32) -> (i32, i32, i32) {
    %c0_i32 = arith.constant 0 : i32
    %c0_i32_0 = arith.constant 0 : i32
    %c0_i32_1 = arith.constant 0 : i32
    return %c0_i32, %c0_i32_0, %arg0 : i32, i32, i32
  }
  func.func @transform_4(%arg0: i32, %arg1: i32) -> (i32, i32, i32) {
    %c0_i32 = arith.constant 0 : i32
    %c0_i32_0 = arith.constant 0 : i32
    return %arg1, %c0_i32, %arg0 : i32, i32, i32
  }
}

module attributes {stable_mosaic.version = 11 : i64} {
  func.func @_matmul_bias_kernel(%arg0: i32, %arg1: memref<64x64xbf16, #tpu.memory_space<vmem>>, %arg2: memref<64x256xbf16, #tpu.memory_space<vmem>>, %arg3: memref<1x256xf32, #tpu.memory_space<vmem>>, %arg4: memref<64x256xf32, #tpu.memory_space<vmem>>) attributes {dimension_semantics = [#tpu.dimension_semantics<parallel>], iteration_bounds = array<i64: 2>, scalar_prefetch = 0 : i64, scratch_operands = 0 : i64, tpu.core_type = #tpu.core_type<tc>, window_params = [{transform_indices = @transform_0, window_bounds = array<i64: 64, 64>}, {pipeline_mode = #tpu.pipeline_mode<synchronous>, transform_indices = @transform_1, window_bounds = array<i64: 64, 256>}, {pipeline_mode = #tpu.pipeline_mode<synchronous>, transform_indices = @transform_2, window_bounds = array<i64: 1, 256>}, {transform_indices = @transform_3, window_bounds = array<i64: 64, 256>}]} {
    %c0 = arith.constant 0 : index
    %c0_0 = arith.constant 0 : index
    %0 = vector.load %arg1[%c0, %c0_0] : memref<64x64xbf16, #tpu.memory_space<vmem>>, vector<64x64xbf16>
    %c0_1 = arith.constant 0 : index
    %c0_2 = arith.constant 0 : index
    %1 = vector.load %arg2[%c0_1, %c0_2] : memref<64x256xbf16, #tpu.memory_space<vmem>>, vector<64x256xbf16>
    %cst = arith.constant dense<0.000000e+00> : vector<64x256xf32>
    %2 = tpu.matmul %0, %1, %cst {dimension_numbers = #tpu.dot_dimension_numbers<[1], [0], [0], [1], [0, 0, 1, 1], [], []>} : vector<64x64xbf16>, vector<64x256xbf16>, vector<64x256xf32> -> vector<64x256xf32>
    %c0_3 = arith.constant 0 : index
    %c0_4 = arith.constant 0 : index
    %3 = vector.load %arg3[%c0_3, %c0_4] : memref<1x256xf32, #tpu.memory_space<vmem>>, vector<1x256xf32>
    %4 = vector.broadcast %3 : vector<1x256xf32> to vector<64x256xf32>
    %5 = arith.addf %2, %4 : vector<64x256xf32>
    %c0_5 = arith.constant 0 : index
    %c0_6 = arith.constant 0 : index
    %6 = vector.load %arg4[%c0_5, %c0_6] : memref<64x256xf32, #tpu.memory_space<vmem>>, vector<64x256xf32>
    tpu.vector_store %arg4[%c0_5, %c0_6], %5 {strides = array<i32>} : memref<64x256xf32, #tpu.memory_space<vmem>>, vector<64x256xf32>,
    return
  }
  func.func @transform_0(%arg0: i32) -> (i32, i32) {
    %c0_i32 = arith.constant 0 : i32
    %c0_i32_0 = arith.constant 0 : i32
    return %arg0, %c0_i32 : i32, i32
  }
  func.func @transform_1(%arg0: i32) -> (i32, i32) {
    %c0_i32 = arith.constant 0 : i32
    %c0_i32_0 = arith.constant 0 : i32
    %c0_i32_1 = arith.constant 0 : i32
    return %c0_i32, %c0_i32_0 : i32, i32
  }
  func.func @transform_2(%arg0: i32) -> (i32, i32) {
    %c0_i32 = arith.constant 0 : i32
    %c0_i32_0 = arith.constant 0 : i32
    %c0_i32_1 = arith.constant 0 : i32
    return %c0_i32, %c0_i32_0 : i32, i32
  }
  func.func @transform_3(%arg0: i32) -> (i32, i32) {
    %c0_i32 = arith.constant 0 : i32
    %c0_i32_0 = arith.constant 0 : i32
    return %arg0, %c0_i32 : i32, i32
  }
}

</mosaic_0001>

<bundles_post_ra>
// kernel: hypercs3d_forward.4
= control target key start
LH: loop header
LB: loop body
LE: loop exit
PB: predicated region body
PF: predicated region fallthrough
CT: control target
= control target key end

     0   :  { %s653_s12 = smov 0   ;;  %s767_s0 = inlined_call_operand.vmem [shape: bf16[128,64], index: 0, kind: input, shape index: {}]   ;;  %s768_s1 = inlined_call_operand.vmem [shape: bf16[64,384], index: 1, kind: input, shape index: {}]   ;;  %s769_s2 = inlined_call_operand.vmem [shape: f32[1,384], index: 2, kind: input, shape index: {}]   ;;  %s770_s3 = inlined_call_operand.vmem [shape: f32[128,384], index: 3, kind: output, shape index: {}]  }
   0x1 LB: > { %s535_s13 = sadd.s32 4294967295, %s630_s12   ;;  %p539_p0 = scmp.ge.s32.totalorder %s630_s12, 1  ;;  %s630_s12 = sphi %s653_s12, %s13_s12  }
   0x2   : > { %p138_p1 = scmp.lt.s32.totalorder %s630_s12, 3 }
   0x4   : > { %p139_p2 = pnand %p539_p0, %p138_p1 }
   0x5   : > { %s540_s16 = sshll.u32 (!%p139_p2), %s535_s13, 3 }
   0x6   : > { %142 = sbr.rel (%p139_p2) target bundleno = 254 (0xfe), region = 32  ;;  %p164_p3 = scmp.lt.s32.totalorder (!%p139_p2), %s540_s16, 15 }
   0xb   : > { %v604_v0 = vld [vmem:[%s768_s1 + $0x4c] ss:$12 sps:$4 sm:$0xff]   ;;  %v606_v1 = vld [vmem:[%s768_s1 + $0x48] ss:$12 sps:$4 sm:$0xff]   ;;  %v632_v2 = vmov 0   ;;  %s772_s16 = smov (!%p164_p3, %s540_s16), 15  ;;  %v203_v17 = vlaneseq }
   0xc   : > { %347 = vmatprep.mubr.bf16.mxu0 %v632_v2  ;;  %323 = vmatprep.subr.bf16.mxu0 %v604_v0  ;;  %v607_v3 = vld [vmem:[%s768_s1 + $0x34] ss:$12 sps:$4 sm:$0xff]   ;;  %v609_v4 = vld [vmem:[%s768_s1 + $0x30] ss:$12 sps:$4 sm:$0xff]   ;;  %v612_v7 = vld [vmem:[%s768_s1 + $0x18] ss:$12 sps:$4 sm:$0xff]  }
   0xd   : > { %324 = vmatpush1.bf16.msra.mxu0 %v606_v1  ;;  %v610_v5 = vld [vmem:[%s768_s1 + $0x1c] ss:$12 sps:$4 sm:$0xff]   ;;  %s541_s29 = sshll.u32 %s772_s16, 2  ;;  %v614_v8 = vld [vmem:[%s768_s1 + $0x4] ss:$12 sps:$4 sm:$0xff]   ;;  %vm302_vm0 = vcmask 523264  }
   0xe   : > { %325 = vmatprep.subr.bf16.mxu0 %v607_v3  ;;  %v613_v6 = vld [vmem:[%s768_s1 + $0x50] ss:$12 sps:$4 sm:$0xff]   ;;  %s167_s7 = scalar_lea.vmem %s767_s0, %s541_s29  ;;  %v617_v9 = vld [vmem:[%s768_s1 + $0x38] ss:$12 sps:$4 sm:$0xff]   ;;  %v619_v11 = vld [vmem:[%s768_s1 + $0x20] ss:$12 sps:$4 sm:$0xff]  }
   0xf   : > { %578 = vmatprep.subr.bf16.mxu1 %v613_v6  ;;  %v618_v10 = vld [vmem:[%s167_s7] sm:$0xff]   ;;  %v620_v13 = vld [vmem:[%s768_s1 + $0x8] ss:$12 sps:$4 sm:$0xff]   ;;  %v623_v16 = vld [vmem:[%s167_s7 + $0x18] sm:$0xff]   ;;  %v204_v18 = vshrl.u32 %v203_v17, 7  ;;  %s594_s20 = smul.u32 24, %s772_s16 }
  0x10   : > { %579 = vmatpush3.bf16.msra.mxu1 %v613_v6  ;;  %586 = vmatprep.mubr.msk.bf16.mxu1 %vm302_vm0, %v618_v10  ;;  %v616_v12 = vld [vmem:[%s768_s1] ss:$12 sps:$4 sm:$0xff]   ;;  %v622_v14 = vld [vmem:[%s167_s7 + $0x10] sm:$0xff]  }
  0x11   : > { %326 = vmatpush1.bf16.msra.mxu0 %v609_v4  ;;  %580 = vmatprep.subr.bf16.mxu1 %v617_v9  ;;  %v621_v15 = vld [vmem:[%s167_s7 + $0x8] sm:$0xff]   ;;  %v205_v19 = vsub.s32 0, %v204_v18  ;;  %v201_v20 = vld [vmem:[%s769_s2] sm:$0x7]  ;;  %v209_v21 = vsub.s32 1, %v204_v18  ;;  %v213_v23 = vsub.s32 2, %v204_v18  ;;  %s722_s23 = scalar_lea.vmem %s770_s3, %s594_s20 }
  0x12   : > { %327 = vmatprep.subr.bf16.mxu0 %v610_v5 }
  0x13   : > { %v715_v22 = vrot.slane %v201_v20, %v205_v19  ;;  %v717_v24 = vrot.slane %v201_v20, %v209_v21  ;;  %v214_v27 = vrot.slane %v201_v20, %v213_v23 }
  0x14   : > { %581 = vmatpush3.bf16.msra.mxu1 %v617_v9 }
  0x15   : > { %328 = vmatpush1.bf16.msra.mxu0 %v612_v7  ;;  %582 = vmatprep.subr.bf16.mxu1 %v619_v11 }
  0x16   : > { %329 = vmatprep.subr.bf16.mxu0 %v614_v8 }
  0x18   : > { %583 = vmatpush3.bf16.msra.mxu1 %v619_v11 }
  0x19   : > { %330 = vmatpush1.bf16.msra.mxu0 %v616_v12  ;;  %584 = vmatprep.subr.bf16.mxu1 %v620_v13 }
  0x1c   : > { %560 = vmatmul.mubr.msk.bf16.vlgmr.msra.gmra.mxu0 %vm302_vm0, %v618_v10  ;;  %585 = vmatpush3.bf16.msra.mxu1 %v620_v13 }
  0x1d   : > { %357 = vmatprep.mubr.bf16.mxu0 %v632_v2 }
  0x1f   : > { %587 = vmatmul.mubr.msk.bf16.vlgmr.msra.gmra.mxu1 %vm302_vm0, %v621_v15 }
  0x20   : > { %590 = vmatprep.mubr.msk.bf16.mxu1 %vm302_vm0, %v622_v14 }
  0x24   : > { %561 = vmatmul.mubr.msk.bf16.gmra.mxu0 %vm302_vm0, %v621_v15 }
  0x25   : > { %367 = vmatprep.mubr.bf16.mxu0 %v632_v2 }
  0x27   : > { %591 = vmatmul.mubr.msk.bf16.gmra.mxu1 %vm302_vm0, %v623_v16 }
  0x2c   : > { %562 = vmatmul.mubr.msk.bf16.gmra.mxu0 %vm302_vm0, %v622_v14 }
  0x2d   : > { %377 = vmatprep.mubr.bf16.mxu0 %v632_v2 }
  0x34   : > { %563 = vmatmul.mubr.msk.bf16.gmra.mxu0 %vm302_vm0, %v623_v16 }
  0xdc   : > { %v349_v25 = vpop.f32.mrf.mxu0 }
  0xdd   : > { %v350_v26 = vadd.f32 %v349_v25, %v715_v22 }
  0xde   : > { %v351_v28 = vpop.f32.mrf.mxu0 }
  0xdf   : > { %453 = vst [vmem:[%s722_s23] sm:$0xff] %v350_v26  ;;  %v352_v29 = vadd.f32 %v351_v28, %v717_v24  ;;  %v588_v31 = vpop.f32.mrf.mxu1 }
  0xe0   : > { %v353_v30 = vpop.f32.mrf.mxu0  ;;  %v431_v33 = vadd.f32 %v588_v31, %v214_v27 }
  0xe1   : > { %454 = vst [vmem:[%s722_s23 + $0x8] sm:$0xff] %v352_v29  ;;  %v354_v32 = vadd.f32 %v353_v30, %v715_v22  ;;  %v422_v35 = vpop.f32.mrf.mxu1 }
  0xe2   : > { %v355_v34 = vpop.f32.mrf.mxu0  ;;  %461 = vst [vmem:[%s722_s23 + $0x40] sm:$0xff] %v431_v33  ;;  %v423_v37 = vadd.f32 %v422_v35, %v214_v27 }
  0xe3   : > { %456 = vst [vmem:[%s722_s23 + $0x18] sm:$0xff] %v354_v32  ;;  %v356_v36 = vadd.f32 %v355_v34, %v717_v24  ;;  %v589_v39 = vpop.f32.mrf.mxu1 }
  0xe4   : > { %v359_v38 = vpop.f32.mrf.mxu0  ;;  %455 = vst [vmem:[%s722_s23 + $0x10] sm:$0xff] %v423_v37  ;;  %v434_v41 = vadd.f32 %v589_v39, %v214_v27 }
  0xe5   : > { %457 = vst [vmem:[%s722_s23 + $0x20] sm:$0xff] %v356_v36  ;;  %v360_v40 = vadd.f32 %v359_v38, %v715_v22  ;;  %v425_v43 = vpop.f32.mrf.mxu1 }
  0xe6   : > { %v361_v42 = vpop.f32.mrf.mxu0  ;;  %464 = vst [vmem:[%s722_s23 + $0x58] sm:$0xff] %v434_v41  ;;  %v426_v45 = vadd.f32 %v425_v43, %v214_v27 }
  0xe7   : > { %459 = vst [vmem:[%s722_s23 + $0x30] sm:$0xff] %v360_v40  ;;  %v362_v44 = vadd.f32 %v361_v42, %v717_v24  ;;  %v592_v47 = vpop.f32.mrf.mxu1 }
  0xe8   : > { %v363_v46 = vpop.f32.mrf.mxu0  ;;  %458 = vst [vmem:[%s722_s23 + $0x28] sm:$0xff] %v426_v45  ;;  %v447_v49 = vadd.f32 %v592_v47, %v214_v27 }
  0xe9   : > { %460 = vst [vmem:[%s722_s23 + $0x38] sm:$0xff] %v362_v44  ;;  %v364_v48 = vadd.f32 %v363_v46, %v715_v22  ;;  %v438_v51 = vpop.f32.mrf.mxu1 }
  0xea   : > { %v365_v50 = vpop.f32.mrf.mxu0  ;;  %473 = vst [vmem:[%s722_s23 + $0xa0] sm:$0xff] %v447_v49  ;;  %v439_v53 = vadd.f32 %v438_v51, %v214_v27 }
  0xeb   : > { %462 = vst [vmem:[%s722_s23 + $0x48] sm:$0xff] %v364_v48  ;;  %v366_v52 = vadd.f32 %v365_v50, %v717_v24  ;;  %v593_v55 = vpop.f32.mrf.mxu1 }
  0xec   : > { %v369_v54 = vpop.f32.mrf.mxu0  ;;  %467 = vst [vmem:[%s722_s23 + $0x70] sm:$0xff] %v439_v53  ;;  %v450_v57 = vadd.f32 %v593_v55, %v214_v27 }
  0xed   : > { %463 = vst [vmem:[%s722_s23 + $0x50] sm:$0xff] %v366_v52  ;;  %v370_v56 = vadd.f32 %v369_v54, %v715_v22  ;;  %v441_v59 = vpop.f32.mrf.mxu1 }
  0xee   : > { %v371_v58 = vpop.f32.mrf.mxu0  ;;  %476 = vst [vmem:[%s722_s23 + $0xb8] sm:$0xff] %v450_v57  ;;  %v442_v61 = vadd.f32 %v441_v59, %v214_v27 }
  0xef   : > { %465 = vst [vmem:[%s722_s23 + $0x60] sm:$0xff] %v370_v56  ;;  %v372_v60 = vadd.f32 %v371_v58, %v717_v24 }
  0xf0   : > { %v373_v62 = vpop.f32.mrf.mxu0  ;;  %470 = vst [vmem:[%s722_s23 + $0x88] sm:$0xff] %v442_v61 }
  0xf1   : > { %466 = vst [vmem:[%s722_s23 + $0x68] sm:$0xff] %v372_v60  ;;  %v374_v63 = vadd.f32 %v373_v62, %v715_v22 }
  0xf2   : > { %v375_v0 = vpop.f32.mrf.mxu0 }
  0xf3   : > { %468 = vst [vmem:[%s722_s23 + $0x78] sm:$0xff] %v374_v63  ;;  %v376_v1 = vadd.f32 %v375_v0, %v717_v24 }
  0xf4   : > { %v379_v2 = vpop.f32.mrf.mxu0 }
  0xf5   : > { %469 = vst [vmem:[%s722_s23 + $0x80] sm:$0xff] %v376_v1  ;;  %v380_v3 = vadd.f32 %v379_v2, %v715_v22 }
  0xf6   : > { %v381_v4 = vpop.f32.mrf.mxu0 }
  0xf7   : > { %471 = vst [vmem:[%s722_s23 + $0x90] sm:$0xff] %v380_v3  ;;  %v382_v5 = vadd.f32 %v381_v4, %v717_v24 }
  0xf8   : > { %v383_v6 = vpop.f32.mrf.mxu0 }
  0xf9   : > { %472 = vst [vmem:[%s722_s23 + $0x98] sm:$0xff] %v382_v5  ;;  %v384_v7 = vadd.f32 %v383_v6, %v715_v22 }
  0xfa   : > { %v385_v8 = vpop.f32.mrf.mxu0 }
  0xfb   : > { %474 = vst [vmem:[%s722_s23 + $0xa8] sm:$0xff] %v384_v7  ;;  %v386_v9 = vadd.f32 %v385_v8, %v717_v24 }
  0xfd   : > { %475 = vst [vmem:[%s722_s23 + $0xb0] sm:$0xff] %v386_v9 }
  0xfe PF: > { %s13_s12 = sadd.s32 1, %s630_s12  }
  0xff   : > { %p10_p4 = scmp.ge.s32.totalorder %s13_s12, 4  }
 0x101   :  { %12 = sbr.rel (!%p10_p4) target bundleno = 1 (0x1), region = 62 }

// kernel: hypercs3d_forward.5
= control target key start
LH: loop header
LB: loop body
LE: loop exit
PB: predicated region body
PF: predicated region fallthrough
CT: control target
= control target key end

     0   :  { %s572_s12 = smov 0   ;;  %s630_s0 = inlined_call_operand.vmem [shape: bf16[128,64], index: 0, kind: input, shape index: {}]   ;;  %s631_s1 = inlined_call_operand.vmem [shape: bf16[64,256], index: 1, kind: input, shape index: {}]   ;;  %s632_s2 = inlined_call_operand.vmem [shape: f32[1,256], index: 2, kind: input, shape index: {}]   ;;  %s633_s3 = inlined_call_operand.vmem [shape: bf16[128,256], index: 3, kind: output, shape index: {}]  }
   0x1 LB: > { %s465_s13 = sadd.s32 4294967295, %s549_s12   ;;  %p469_p0 = scmp.ge.s32.totalorder %s549_s12, 1  ;;  %s549_s12 = sphi %s572_s12, %s13_s12  }
   0x2   : > { %p138_p1 = scmp.lt.s32.totalorder %s549_s12, 3 }
   0x4   : > { %p139_p2 = pnand %p469_p0, %p138_p1 }
   0x5   : > { %s470_s16 = sshll.u32 (!%p139_p2), %s465_s13, 3 }
   0x6   : > { %142 = sbr.rel (%p139_p2) target bundleno = 241 (0xf1), region = 32  ;;  %p164_p3 = scmp.lt.s32.totalorder (!%p139_p2), %s470_s16, 15 }
   0xb   : > { %v527_v0 = vld [vmem:[%s631_s1 + $0x34] ss:$8 sps:$4 sm:$0xff]   ;;  %v529_v1 = vld [vmem:[%s631_s1 + $0x30] ss:$8 sps:$4 sm:$0xff]   ;;  %v551_v2 = vmov 0   ;;  %s635_s16 = smov (!%p164_p3, %s470_s16), 15  ;;  %v195_v13 = vlaneseq }
   0xc   : > { %310 = vmatprep.mubr.bf16.mxu0 %v551_v2  ;;  %330 = vmatprep.mubr.bf16.mxu1 %v551_v2  ;;  %v530_v3 = vld [vmem:[%s631_s1 + $0x24] ss:$8 sps:$4 sm:$0xff]   ;;  %v532_v4 = vld [vmem:[%s631_s1 + $0x20] ss:$8 sps:$4 sm:$0xff]   ;;  %v533_v5 = vld [vmem:[%s631_s1 + $0x14] ss:$8 sps:$4 sm:$0xff]  }
   0xd   : > { %286 = vmatprep.subr.bf16.mxu0 %v527_v0  ;;  %510 = vmatprep.subr.bf16.mxu1 %v527_v0  ;;  %s471_s25 = sshll.u32 %s635_s16, 2  ;;  %v535_v6 = vld [vmem:[%s631_s1 + $0x10] ss:$8 sps:$4 sm:$0xff]   ;;  %v536_v7 = vld [vmem:[%s631_s1 + $0x4] ss:$8 sps:$4 sm:$0xff]   ;;  %vm265_vm0 = vcmask 523264  }
   0xe   : > { %287 = vmatpush1.bf16.msra.mxu0 %v529_v1  ;;  %514 = vmatpush1.bf16.msra.mxu1 %v529_v1  ;;  %s167_s28 = scalar_lea.vmem %s630_s0, %s471_s25  ;;  %v538_v8 = vld [vmem:[%s631_s1] ss:$8 sps:$4 sm:$0xff]   ;;  %v196_v14 = vshrl.u32 %v195_v13, 7  ;;  %s501_s10 = sshll.u32 %s635_s16, 3 }
   0xf   : > { %288 = vmatprep.subr.bf16.mxu0 %v530_v3  ;;  %511 = vmatprep.subr.bf16.mxu1 %v530_v3  ;;  %v539_v9 = vld [vmem:[%s167_s28] sm:$0xff]   ;;  %v540_v10 = vld [vmem:[%s167_s28 + $0x10] sm:$0xff]   ;;  %v541_v11 = vld [vmem:[%s167_s28 + $0x8] sm:$0xff]   ;;  %s617_s14 = scalar_lea.vmem %s633_s3, %s501_s10 }
  0x10   : > { %v542_v12 = vld [vmem:[%s167_s28 + $0x18] sm:$0xff]   ;;  %v197_v15 = vsub.s32 0, %v196_v14  ;;  %v201_v16 = vsub.s32 1, %v196_v14  ;;  %v193_v17 = vld [vmem:[%s632_s2] sm:$0x3] }
  0x12   : > { %289 = vmatpush1.bf16.msra.mxu0 %v532_v4  ;;  %515 = vmatpush1.bf16.msra.mxu1 %v532_v4  ;;  %v198_v18 = vrot.slane %v193_v17, %v197_v15  ;;  %v202_v19 = vrot.slane %v193_v17, %v201_v16 }
  0x13   : > { %290 = vmatprep.subr.bf16.mxu0 %v533_v5  ;;  %512 = vmatprep.subr.bf16.mxu1 %v533_v5 }
  0x16   : > { %291 = vmatpush1.bf16.msra.mxu0 %v535_v6  ;;  %516 = vmatpush1.bf16.msra.mxu1 %v535_v6 }
  0x17   : > { %292 = vmatprep.subr.bf16.mxu0 %v536_v7  ;;  %513 = vmatprep.subr.bf16.mxu1 %v536_v7 }
  0x1a   : > { %293 = vmatpush1.bf16.msra.mxu0 %v538_v8  ;;  %517 = vmatpush1.bf16.msra.mxu1 %v538_v8 }
  0x1d   : > { %487 = vmatmul.mubr.msk.bf16.vlgmr.msra.gmra.mxu0 %vm265_vm0, %v539_v9  ;;  %489 = vmatmul.mubr.msk.bf16.vlgmr.msra.gmra.mxu1 %vm265_vm0, %v540_v10 }
  0x1e   : > { %320 = vmatprep.mubr.bf16.mxu0 %v551_v2  ;;  %340 = vmatprep.mubr.bf16.mxu1 %v551_v2 }
  0x25   : > { %488 = vmatmul.mubr.msk.bf16.gmra.mxu0 %vm265_vm0, %v541_v11  ;;  %490 = vmatmul.mubr.msk.bf16.gmra.mxu1 %vm265_vm0, %v542_v12 }
  0xdd   : > { %v312_v20 = vpop.f32.mrf.mxu0  ;;  %v332_v21 = vpop.f32.mrf.mxu1 }
  0xde   : > { %v313_v24 = vadd.f32 %v312_v20, %v198_v18  ;;  %v333_v25 = vadd.f32 %v332_v21, %v198_v18 }
  0xdf   : > { %v314_v22 = vpop.f32.mrf.mxu0  ;;  %v334_v23 = vpop.f32.mrf.mxu1 }
  0xe0   : > { %v315_v26 = vadd.f32 %v314_v22, %v202_v19  ;;  %v335_v27 = vadd.f32 %v334_v23, %v202_v19 }
  0xe1   : > { %v316_v28 = vpop.f32.mrf.mxu0  ;;  %v336_v29 = vpop.f32.mrf.mxu1 }
  0xe2   : > { %v502_v30 = vpack.c.bf16 %v315_v26, %v313_v24  ;;  %v506_v31 = vpack.c.bf16 %v335_v27, %v333_v25  ;;  %v317_v34 = vadd.f32 %v316_v28, %v198_v18  ;;  %v337_v35 = vadd.f32 %v336_v29, %v198_v18 }
  0xe3   : > { %v318_v32 = vpop.f32.mrf.mxu0  ;;  %v338_v33 = vpop.f32.mrf.mxu1 }
  0xe4   : > { %399 = vst [vmem:[%s617_s14] sm:$0xff] %v502_v30  ;;  %403 = vst [vmem:[%s617_s14 + $0x20] sm:$0xff] %v506_v31  ;;  %v319_v36 = vadd.f32 %v318_v32, %v202_v19  ;;  %v339_v37 = vadd.f32 %v338_v33, %v202_v19 }
  0xe5   : > { %v322_v38 = vpop.f32.mrf.mxu0  ;;  %v342_v39 = vpop.f32.mrf.mxu1 }
  0xe6   : > { %v503_v40 = vpack.c.bf16 %v319_v36, %v317_v34  ;;  %v507_v41 = vpack.c.bf16 %v339_v37, %v337_v35  ;;  %v323_v44 = vadd.f32 %v322_v38, %v198_v18  ;;  %v343_v45 = vadd.f32 %v342_v39, %v198_v18 }
  0xe7   : > { %v324_v42 = vpop.f32.mrf.mxu0  ;;  %v344_v43 = vpop.f32.mrf.mxu1 }
  0xe8   : > { %400 = vst [vmem:[%s617_s14 + $0x8] sm:$0xff] %v503_v40  ;;  %404 = vst [vmem:[%s617_s14 + $0x28] sm:$0xff] %v507_v41  ;;  %v325_v46 = vadd.f32 %v324_v42, %v202_v19  ;;  %v345_v47 = vadd.f32 %v344_v43, %v202_v19 }
  0xe9   : > { %v326_v48 = vpop.f32.mrf.mxu0  ;;  %v346_v49 = vpop.f32.mrf.mxu1 }
  0xea   : > { %v504_v50 = vpack.c.bf16 %v325_v46, %v323_v44  ;;  %v508_v51 = vpack.c.bf16 %v345_v47, %v343_v45  ;;  %v327_v54 = vadd.f32 %v326_v48, %v198_v18  ;;  %v347_v55 = vadd.f32 %v346_v49, %v198_v18 }
  0xeb   : > { %v328_v52 = vpop.f32.mrf.mxu0  ;;  %v348_v53 = vpop.f32.mrf.mxu1 }
  0xec   : > { %401 = vst [vmem:[%s617_s14 + $0x10] sm:$0xff] %v504_v50  ;;  %405 = vst [vmem:[%s617_s14 + $0x30] sm:$0xff] %v508_v51  ;;  %v329_v56 = vadd.f32 %v328_v52, %v202_v19  ;;  %v349_v57 = vadd.f32 %v348_v53, %v202_v19 }
  0xee   : > { %v505_v58 = vpack.c.bf16 %v329_v56, %v327_v54  ;;  %v509_v59 = vpack.c.bf16 %v349_v57, %v347_v55 }
  0xf0   : > { %402 = vst [vmem:[%s617_s14 + $0x18] sm:$0xff] %v505_v58  ;;  %406 = vst [vmem:[%s617_s14 + $0x38] sm:$0xff] %v509_v59 }
  0xf1 PF: > { %s13_s12 = sadd.s32 1, %s549_s12  }
  0xf2   : > { %p10_p4 = scmp.ge.s32.totalorder %s13_s12, 4  }
  0xf4   :  { %12 = sbr.rel (!%p10_p4) target bundleno = 1 (0x1), region = 62 }

// kernel: hypercs3d_forward.6
= control target key start
LH: loop header
LB: loop body
LE: loop exit
PB: predicated region body
PF: predicated region fallthrough
CT: control target
= control target key end

     0   :  { %s2975_s15 = smov 0   ;;  %s2977_s16 = smov 0   ;;  %s6351_s0 = inlined_call_operand.vmem [shape: bf16[8,16,64], index: 0, kind: input, shape index: {}]   ;;  %s6352_s1 = inlined_call_operand.vmem [shape: bf16[8,16,49,64], index: 1, kind: input, shape index: {}]   ;;  %s6353_s2 = inlined_call_operand.vmem [shape: bf16[8,16,49,64], index: 2, kind: input, shape index: {}]   ;;  %s6354_s3 = inlined_call_operand.vmem [shape: bf16[16,49,64], index: 3, kind: input, shape index: {}]   ;;  %s6355_s4 = inlined_call_operand.vmem [shape: f32[8,16,64], index: 4, kind: output, shape index: {}]  }
   0x1   :  { %s2979_s17 = smov 0  }
   0x2 LB: > { %s23_s18 = sadd.s32 1, %s2943_s16  ;;  %p2271_p0 = scmp.ge.s32.totalorder %s2947_s17, 1  ;;  %s2947_s17 = sphi %s2979_s17, %s14_s17   ;;  %s2943_s16 = sphi %s2977_s16, %s7446_s16   ;;  %s2939_s15 = sphi %s2975_s15, %s7445_s15  }
   0x3   : > { %p24_p1 = scmp.ge.s32.totalorder %s23_s18, 8  ;;  %p220_p2 = scmp.lt.s32.totalorder %s2947_s17, 9 }
   0x5   : > { %s7448_s18 = smov (%p24_p1, %s23_s18), 0  ;;  %p221_p3 = pnand %p2271_p0, %p220_p2 }
   0x7   : > { %224 = sbr.rel (%p221_p3) target bundleno = 507 (0x1fb), region = 36 }
   0xc   : > { %p272_p4 = scmp.lt.s32.totalorder %s2939_s15, 7  ;;  %v3000_v0 = vld [vmem:[%s6354_s3] sm:$0xff]   ;;  %v3005_v1 = vld [vmem:[%s6354_s3 + $0x8] sm:$0xff]   ;;  %v3010_v2 = vld [vmem:[%s6354_s3 + $0x10] sm:$0xff]   ;;  %vm1388_vm0 = vcmask 523264   ;;  %vm1575_vm1 = vcmask 516096  }
   0xd   : > { %v3015_v3 = vld [vmem:[%s6354_s3 + $0x20] sm:$0xff]   ;;  %v3024_v5 = vld [vmem:[%s6354_s3 + $0x28] sm:$0xff]   ;;  %v3029_v6 = vld [vmem:[%s6354_s3 + $0x38] sm:$0xff]   ;;  %vm2106_vm2 = vcmask 1041409   ;;  %vm2108_vm3 = vcmask 1042434   ;;  %vm2110_vm4 = vcmask 1043459  }
   0xe   : > { %s7450_s15 = smov (!%p272_p4, %s2939_s15), 7  ;;  %v3034_v7 = vld [vmem:[%s6354_s3 + $0x40] sm:$0xff]   ;;  %v3050_v13 = vld [vmem:[%s6354_s3 + $0x48] sm:$0xff]   ;;  %v3055_v14 = vld [vmem:[%s6354_s3 + $0x58] sm:$0xff]   ;;  %vm2112_vm5 = vcmask 1044484   ;;  %vm2114_vm6 = vcmask 1045509  }
   0xf   : > { %s2280_s19 = sshll.u32 %s7450_s15, 3  ;;  %s2883_s20 = smul.u32 448, %s7450_s15  ;;  %v3064_v19 = vld [vmem:[%s6354_s3 + $0x60] sm:$0xff]   ;;  %v3069_v20 = vld [vmem:[%s6354_s3 + $0x70] sm:$0xff]   ;;  %v3078_v26 = vld [vmem:[%s6354_s3 + $0x78] sm:$0xff]   ;;  %vm2116_vm7 = vcmask 1046534  }
  0x10   : > { %s279_s5 = scalar_lea.vmem %s6351_s0, %s2280_s19  ;;  %v3090_v32 = vld [vmem:[%s6354_s3 + $0x80] sm:$0xff]   ;;  %vm2118_vm8 = vcmask 1047559  }
  0x11   : > { %s3041_s14 = scalar_lea.vmem %s6352_s1, %s2883_s20  ;;  %v2283_v21 = vld [vmem:[%s279_s5] sm:$0xff]   ;;  %s5178_s5 = scalar_lea.vmem %s6353_s2, %s2883_s20 }
  0x12   : > { %v3081_v27 = vld [vmem:[%s3041_s14] sm:$0xff]   ;;  %v3093_v33 = vld [vmem:[%s3041_s14 + $0x8] sm:$0xff]   ;;  %v3096_v34 = vld [vmem:[%s3041_s14 + $0x10] sm:$0xff]   ;;  %v3102_v39 = vunpack.c.l.bf16 %v2283_v21  ;;  %v3110_v44 = vunpack.c.h.bf16 %v2283_v21  ;;  %s2281_s20 = sshll.u32 %s7450_s15, 4 }
  0x13   : > { %v3105_v40 = vld [vmem:[%s3041_s14 + $0x20] sm:$0xff]   ;;  %v3114_v46 = vld [vmem:[%s3041_s14 + $0x28] sm:$0xff]   ;;  %v3117_v47 = vld [vmem:[%s3041_s14 + $0x38] sm:$0xff]   ;;  %s6324_s7 = scalar_lea.vmem %s6355_s4, %s2281_s20 }
  0x14   : > { %v3120_v48 = vld [vmem:[%s3041_s14 + $0x40] sm:$0xff]   ;;  %v3129_v55 = vld [vmem:[%s3041_s14 + $0x48] sm:$0xff]   ;;  %v3132_v56 = vld [vmem:[%s3041_s14 + $0x58] sm:$0xff]  }
  0x15   : > { %v3139_v61 = vld [vmem:[%s3041_s14 + $0x60] sm:$0xff]   ;;  %v3142_v62 = vld [vmem:[%s3041_s14 + $0x70] sm:$0xff]   ;;  %v3149_v43 = vld [vmem:[%s3041_s14 + $0x78] sm:$0xff]  }
  0x16   : > { %v3152_v42 = vld [vmem:[%s3041_s14 + $0x80] sm:$0xff]   ;;  %v3155_v41 = vld [vmem:[%s3041_s14 + $0x18] sm:$0x1]  ;;  %v3158_v38 = vld [vmem:[%s3041_s14 + $0x1c] ss:$20 sps:$4 sm:$0xff]  }
  0x17   : > { %v3165_v30 = vld [vmem:[%s3041_s14 + $0x90] sm:$0xff]   ;;  %v3172_v24 = vld [vmem:[%s3041_s14 + $0x98] sm:$0xff]   ;;  %v3175_v37 = vld [vmem:[%s3041_s14 + $0xa8] sm:$0xff]  }
  0x18   : > { %6539 = vst [vmem:[#allocation2_spill] sm:$0xff] %v3165_v30  ;;  %6540 = vst [vmem:[#allocation3_spill] sm:$0xff] %v3172_v24  ;;  %v3182_v28 = vld [vmem:[%s3041_s14 + $0xb0] sm:$0xff]   ;;  %v3185_v25 = vld [vmem:[%s3041_s14 + $0xb8] sm:$0xff]  }
  0x19   : > { %6541 = vst [vmem:[#allocation4_spill] sm:$0xff] %v3175_v37  ;;  %6542 = vst [vmem:[#allocation5_spill] sm:$0xff] %v3182_v28  ;;  %v3190_v23 = vld [vmem:[%s3041_s14 + $0xc8] sm:$0xff]   ;;  %v3199_v22 = vld [vmem:[%s3041_s14 + $0xd0] sm:$0xff]  }
  0x1a   : > { %6543 = vst [vmem:[#allocation6_spill] sm:$0xff] %v3185_v25  ;;  %6544 = vst [vmem:[#allocation7_spill] sm:$0xff] %v3190_v23  ;;  %v3202_v50 = vld [vmem:[%s3041_s14 + $0xe0] sm:$0xff]   ;;  %v3205_v63 = vld [vmem:[%s3041_s14 + $0xe8] sm:$0xff]   ;;  %v6626_v25 = vunpack.c.h.bf16 %v3081_v27 }
  0x1b   : > { %6545 = vst [vmem:[#allocation8_spill] sm:$0xff] %v3199_v22  ;;  %6546 = vst [vmem:[#allocation9_spill] sm:$0xff] %v3202_v50  ;;  %v3212_v36 = vld [vmem:[%s3041_s14 + $0xf0] sm:$0xff]   ;;  %v3215_v49 = vld [vmem:[%s3041_s14 + $0x100] sm:$0xff]  }
  0x1c   : > { %6547 = vst [vmem:[#allocation10_spill] sm:$0xff] %v3205_v63  ;;  %6548 = vst [vmem:[#allocation11_spill] sm:$0xff] %v3212_v36  ;;  %v3222_v60 = vld [vmem:[%s3041_s14 + $0x108] sm:$0xff]   ;;  %v3225_v58 = vld [vmem:[%s3041_s14 + $0x118] sm:$0xff]  }
  0x1d   : > { %6549 = vst [vmem:[#allocation12_spill] sm:$0xff] %v3215_v49  ;;  %6550 = vst [vmem:[#allocation13_spill] sm:$0xff] %v3222_v60  ;;  %v3232_v59 = vld [vmem:[%s3041_s14 + $0x120] sm:$0xff]   ;;  %v3235_v35 = vld [vmem:[%s3041_s14 + $0x128] sm:$0xff]  }
  0x1e   : > { %6551 = vst [vmem:[#allocation14_spill] sm:$0xff] %v3225_v58  ;;  %6552 = vst [vmem:[#allocation15_spill] sm:$0xff] %v3232_v59  ;;  %v3238_v18 = vld [vmem:[%s3041_s14 + $0x34] sm:$0x1]  ;;  %v3245_v31 = vld [vmem:[%s3041_s14 + $0x138] sm:$0xff]  }
  0x1f   : > { %6553 = vst [vmem:[#allocation16_spill] sm:$0xff] %v3235_v35  ;;  %6554 = vst [vmem:[#allocation17_spill] sm:$0xff] %v3245_v31  ;;  %v3252_v11 = vld [vmem:[%s3041_s14 + $0x140] sm:$0xff]   ;;  %v3255_v16 = vld [vmem:[%s3041_s14 + $0x150] sm:$0xff]  }
  0x20   : > { %6555 = vst [vmem:[#allocation18_spill] sm:$0xff] %v3252_v11  ;;  %6556 = vst [vmem:[#allocation19_spill] sm:$0xff] %v3255_v16  ;;  %v3262_v57 = vld [vmem:[%s3041_s14 + $0x158] sm:$0xff]   ;;  %v3265_v12 = vld [vmem:[%s3041_s14 + $0x160] sm:$0xff]  }
  0x21   : > { %6557 = vst [vmem:[#allocation20_spill] sm:$0xff] %v3262_v57  ;;  %6558 = vst [vmem:[#allocation21_spill] sm:$0xff] %v3265_v12  ;;  %v3270_v10 = vld [vmem:[%s3041_s14 + $0x170] sm:$0xff]   ;;  %v3279_v9 = vld [vmem:[%s3041_s14 + $0x178] sm:$0xff]  }
  0x22   : > { %6559 = vst [vmem:[#allocation22_spill] sm:$0xff] %v3270_v10  ;;  %6560 = vst [vmem:[#allocation23_spill] sm:$0xff] %v3279_v9  ;;  %v3282_v53 = vld [vmem:[%s3041_s14 + $0x188] sm:$0xff]   ;;  %v3285_v51 = vld [vmem:[%s3041_s14 + $0x190] sm:$0xff]  }
  0x23   : > { %6561 = vst [vmem:[#allocation24_spill] sm:$0xff] %v3282_v53  ;;  %6562 = vst [vmem:[#allocation25_spill] sm:$0xff] %v3285_v51  ;;  %v3292_v21 = vld [vmem:[%s3041_s14 + $0x198] sm:$0xff]   ;;  %v3295_v54 = vld [vmem:[%s3041_s14 + $0x1a8] sm:$0xff]  }
  0x24   : > { %6563 = vst [vmem:[#allocation26_spill] sm:$0xff] %v3292_v21  ;;  %6564 = vst [vmem:[#allocation27_spill] sm:$0xff] %v3295_v54  ;;  %v3298_v4 = vld [vmem:[%s3041_s14 + $0x50] sm:$0x1]  ;;  %v3308_v52 = vld [vmem:[%s3041_s14 + $0x54] ss:$20 sps:$4 sm:$0xff]  }
  0x25   : > { %v3305_v17 = vld [vmem:[%s3041_s14 + $0x1b0] sm:$0xff]   ;;  %v3311_v57 = vld [vmem:[%s3041_s14 + $0x6c] sm:$0x1]  ;;  %v3314_v16 = vld [vmem:[%s3041_s14 + $0x88] sm:$0x1] }
  0x26   : > { %6565 = vst [vmem:[#allocation28_spill] sm:$0xff] %v3305_v17  ;;  %v3321_v15 = vld [vmem:[%s3041_s14 + $0x8c] ss:$20 sps:$4 sm:$0xff]   ;;  %v3324_v10 = vld [vmem:[%s3041_s14 + $0xa4] sm:$0x1]  ;;  %v3398_v63 = vld [vmem:[%s6354_s3 + $0x90] sm:$0xff]  }
  0x27   : > { %6566 = vst [vmem:[#allocation29_spill] sm:$0xff] %v3324_v10  ;;  %v3327_v12 = vld [vmem:[%s3041_s14 + $0xc0] sm:$0x1]  ;;  %v3334_v45 = vld [vmem:[%s3041_s14 + $0xc4] ss:$20 sps:$4 sm:$0xff]   ;;  %6582 = vst [vmem:[#allocation45_spill] sm:$0xff] %v3398_v63 }
  0x28   : > { %6567 = vst [vmem:[#allocation30_spill] sm:$0xff] %v3327_v12  ;;  %6568 = vst [vmem:[#allocation31_spill] sm:$0xff] %v3334_v45  ;;  %v3337_v29 = vld [vmem:[%s3041_s14 + $0xdc] sm:$0x1]  ;;  %v3340_v53 = vld [vmem:[%s3041_s14 + $0xf8] sm:$0x1] }
  0x29   : > { %6569 = vst [vmem:[#allocation32_spill] sm:$0xff] %v3337_v29  ;;  %6570 = vst [vmem:[#allocation33_spill] sm:$0xff] %v3340_v53  ;;  %v3347_v35 = vld [vmem:[%s3041_s14 + $0xfc] ss:$20 sps:$4 sm:$0xff]   ;;  %v3350_v8 = vld [vmem:[%s3041_s14 + $0x114] sm:$0x1] }
  0x2a   : > { %6571 = vst [vmem:[#allocation34_spill] sm:$0xff] %v3347_v35  ;;  %6572 = vst [vmem:[#allocation35_spill] sm:$0xff] %v3350_v8  ;;  %v3353_v21 = vld [vmem:[%s3041_s14 + $0x130] sm:$0x1]  ;;  %v3360_v59 = vld [vmem:[%s3041_s14 + $0x134] ss:$20 sps:$4 sm:$0xff]  }
  0x2b   : > { %6573 = vst [vmem:[#allocation36_spill] sm:$0xff] %v3353_v21  ;;  %6574 = vst [vmem:[#allocation37_spill] sm:$0xff] %v3360_v59  ;;  %v3363_v11 = vld [vmem:[%s3041_s14 + $0x14c] sm:$0x1]  ;;  %v3366_v17 = vld [vmem:[%s3041_s14 + $0x168] sm:$0x1] }
  0x2c   : > { %6575 = vst [vmem:[#allocation38_spill] sm:$0xff] %v3363_v11  ;;  %6576 = vst [vmem:[#allocation39_spill] sm:$0xff] %v3366_v17  ;;  %v3373_v49 = vld [vmem:[%s3041_s14 + $0x16c] ss:$20 sps:$4 sm:$0xff]   ;;  %v3376_v9 = vld [vmem:[%s3041_s14 + $0x184] sm:$0x1] }
  0x2d   : > { %6577 = vst [vmem:[#allocation40_spill] sm:$0xff] %v3373_v49  ;;  %6578 = vst [vmem:[#allocation41_spill] sm:$0xff] %v3376_v9  ;;  %v3379_v31 = vld [vmem:[%s3041_s14 + $0x1a0] sm:$0x1]  ;;  %v3386_v22 = vld [vmem:[%s3041_s14 + $0x1a4] ss:$20 sps:$4 sm:$0xff]  }
  0x2e   : > { %6579 = vst [vmem:[#allocation42_spill] sm:$0xff] %v3379_v31  ;;  %6580 = vst [vmem:[#allocation43_spill] sm:$0xff] %v3386_v22  ;;  %v3389_v60 = vld [vmem:[%s3041_s14 + $0x1bc] sm:$0x1]  ;;  %v3412_v12 = vld [vmem:[%s6354_s3 + $0xa8] sm:$0xff]  }
  0x2f   : > { %6581 = vst [vmem:[#allocation44_spill] sm:$0xff] %v3389_v60  ;;  %v3407_v51 = vld [vmem:[%s6354_s3 + $0x98] sm:$0xff]   ;;  %6584 = vst [vmem:[#allocation47_spill] sm:$0xff] %v3412_v12  ;;  %v3421_v53 = vld [vmem:[%s6354_s3 + $0xb0] sm:$0xff]  }
  0x30   : > { %6583 = vst [vmem:[#allocation46_spill] sm:$0xff] %v3407_v51  ;;  %6585 = vst [vmem:[#allocation48_spill] sm:$0xff] %v3421_v53  ;;  %v3426_v58 = vld [vmem:[%s6354_s3 + $0xb8] sm:$0xff]   ;;  %v3435_v36 = vld [vmem:[%s6354_s3 + $0xc8] sm:$0xff]  }
  0x31   : > { %6586 = vst [vmem:[#allocation49_spill] sm:$0xff] %v3426_v58  ;;  %6587 = vst [vmem:[#allocation50_spill] sm:$0xff] %v3435_v36  ;;  %v3444_v23 = vld [vmem:[%s6354_s3 + $0xd0] sm:$0xff]   ;;  %v3449_v50 = vld [vmem:[%s6354_s3 + $0xe0] sm:$0xff]  }
  0x32   : > { %6588 = vst [vmem:[#allocation51_spill] sm:$0xff] %v3444_v23  ;;  %6589 = vst [vmem:[#allocation52_spill] sm:$0xff] %v3449_v50  ;;  %v3454_v17 = vld [vmem:[%s6354_s3 + $0xe8] sm:$0xff]   ;;  %v3463_v54 = vld [vmem:[%s6354_s3 + $0xf0] sm:$0xff]  }
  0x33   : > { %6590 = vst [vmem:[#allocation53_spill] sm:$0xff] %v3454_v17  ;;  %6591 = vst [vmem:[#allocation54_spill] sm:$0xff] %v3463_v54  ;;  %v3468_v60 = vld [vmem:[%s6354_s3 + $0x100] sm:$0xff]   ;;  %v3477_v31 = vld [vmem:[%s6354_s3 + $0x108] sm:$0xff]  }
  0x34   : > { %6592 = vst [vmem:[#allocation55_spill] sm:$0xff] %v3468_v60  ;;  %6593 = vst [vmem:[#allocation56_spill] sm:$0xff] %v3477_v31  ;;  %v3482_v59 = vld [vmem:[%s6354_s3 + $0x118] sm:$0xff]   ;;  %v3491_v11 = vld [vmem:[%s6354_s3 + $0x120] sm:$0xff]  }
  0x35   : > { %6594 = vst [vmem:[#allocation57_spill] sm:$0xff] %v3482_v59  ;;  %6595 = vst [vmem:[#allocation58_spill] sm:$0xff] %v3491_v11  ;;  %v3496_v8 = vld [vmem:[%s6354_s3 + $0x128] sm:$0xff]   ;;  %v3505_v49 = vld [vmem:[%s6354_s3 + $0x138] sm:$0xff]  }
  0x36   : > { %6596 = vst [vmem:[#allocation59_spill] sm:$0xff] %v3496_v8  ;;  %6597 = vst [vmem:[#allocation60_spill] sm:$0xff] %v3505_v49  ;;  %v3514_v21 = vld [vmem:[%s6354_s3 + $0x140] sm:$0xff]   ;;  %v3519_v9 = vld [vmem:[%s6354_s3 + $0x150] sm:$0xff]  }
  0x37   : > { %6598 = vst [vmem:[#allocation61_spill] sm:$0xff] %v3514_v21  ;;  %6599 = vst [vmem:[#allocation62_spill] sm:$0xff] %v3519_v9  ;;  %v3524_v50 = vld [vmem:[%s6354_s3 + $0x158] sm:$0xff]   ;;  %v3533_v35 = vld [vmem:[%s6354_s3 + $0x160] sm:$0xff]   ;;  %v2949_v9 = vmov 1966171168  }
  0x38   : > { %6600 = vst [vmem:[#allocation63_spill] sm:$0xff] %v3524_v50  ;;  %6601 = vst [vmem:[#allocation64_spill] sm:$0xff] %v3533_v35  ;;  %v3538_v31 = vld [vmem:[%s6354_s3 + $0x170] sm:$0xff]   ;;  %v3547_v22 = vld [vmem:[%s6354_s3 + $0x178] sm:$0xff]   ;;  %v988_v21 = vunpack.c.l.s4 %v2949_v9 }
  0x39   : > { %6602 = vst [vmem:[#allocation65_spill] sm:$0xff] %v3538_v31  ;;  %6603 = vst [vmem:[#allocation66_spill] sm:$0xff] %v3547_v22  ;;  %v3556_v29 = vld [vmem:[%s6354_s3 + $0x188] sm:$0xff]   ;;  %v3561_v36 = vld [vmem:[%s6354_s3 + $0x190] sm:$0xff]   ;;  %v6614_v31 = vlaneseq  ;;  %v6627_v22 = vunpack.c.h.bf16 %v3000_v0 }
  0x3a   : > { %6604 = vst [vmem:[#allocation67_spill] sm:$0xff] %v3556_v29  ;;  %6605 = vst [vmem:[#allocation68_spill] sm:$0xff] %v3561_v36  ;;  %v3570_v17 = vld [vmem:[%s6354_s3 + $0x198] sm:$0xff]   ;;  %v3575_v60 = vld [vmem:[%s6354_s3 + $0x1a8] sm:$0xff]   ;;  %v989_v53 = vunpack.c.0.s8 %v988_v21  ;;  %v986_v21 = vcombine.high %v3102_v39, %v3102_v39 }
  0x3b   : > { %6606 = vst [vmem:[#allocation69_spill] sm:$0xff] %v3570_v17  ;;  %6607 = vst [vmem:[#allocation70_spill] sm:$0xff] %v3575_v60  ;;  %v3580_v23 = vld [vmem:[%s6354_s3 + $0x18] sm:$0x1]  ;;  %v3585_v59 = vld [vmem:[%s6354_s3 + $0x1c] ss:$20 sps:$4 sm:$0xff]  }
  0x3c   : > { %v3593_v50 = vld [vmem:[%s6354_s3 + $0x1b0] sm:$0xff]   ;;  %v3617_v8 = vld [vmem:[%s6354_s3 + $0x6c] sm:$0x1]  ;;  %v3622_v11 = vld [vmem:[%s6354_s3 + $0x88] sm:$0x1]  ;;  %v878_v36 = vunpack.c.l.bf16 %v3580_v23  ;;  %v879_v60 = vunpack.c.l.bf16 %v3585_v59 }
  0x3d   : > { %6608 = vst [vmem:[#allocation71_spill] sm:$0xff] %v3593_v50  ;;  %v3598_v49 = vld [vmem:[%s6354_s3 + $0x34] sm:$0x1]  ;;  %v3603_v54 = vld [vmem:[%s6354_s3 + $0x50] sm:$0x1]  ;;  %v3660_v50 = vshrl.u32 %v6614_v31, 7 }
  0x3e   : > { %v3612_v9 = vld [vmem:[%s6354_s3 + $0x54] ss:$20 sps:$4 sm:$0xff]   ;;  %v3631_v29 = vld [vmem:[%s6354_s3 + $0x8c] ss:$20 sps:$4 sm:$0xff]   ;;  %v3636_v45 = vld [vmem:[%s6354_s3 + $0xa4] sm:$0x1] }
  0x3f   : > { %6609 = vst [vmem:[#allocation72_spill] sm:$0xff] %v3631_v29  ;;  %6610 = vst [vmem:[#allocation73_spill] sm:$0xff] %v3636_v45  ;;  %v3641_v35 = vld [vmem:[%s6354_s3 + $0xc0] sm:$0x1]  ;;  %v3650_v17 = vld [vmem:[%s6354_s3 + $0xc4] ss:$20 sps:$4 sm:$0xff]   ;;  %v6625_v29 = vunpack.c.l.bf16 %v3000_v0 }
  0x40   : > { %6611 = vst [vmem:[#allocation74_spill] sm:$0xff] %v3641_v35  ;;  %6612 = vst [vmem:[#allocation75_spill] sm:$0xff] %v3650_v17  ;;  %v3655_v58 = vld [vmem:[%s6354_s3 + $0xdc] sm:$0x1]  ;;  %v3665_v23 = vld [vmem:[%s6354_s3 + $0xf8] sm:$0x1] }
  0x41   : > { %6613 = vst [vmem:[#allocation76_spill] sm:$0xff] %v3655_v58  ;;  %6615 = vst [vmem:[#allocation77_spill] sm:$0xff] %v3660_v50  ;;  %v3670_v28 = vld [vmem:[%s6354_s3 + $0xfc] ss:$20 sps:$4 sm:$0xff]   ;;  %v3679_v31 = vld [vmem:[%s6354_s3 + $0x114] sm:$0x1]  ;;  %v992_v58 = vsub.s32 %v989_v53, %v3660_v50  ;;  %v6628_v53 = vunpack.c.l.bf16 %v3093_v33 }
  0x42   : > { %6616 = vst [vmem:[#allocation78_spill] sm:$0xff] %v3665_v23  ;;  %6617 = vst [vmem:[#allocation79_spill] sm:$0xff] %v3670_v28  ;;  %v3684_v37 = vld [vmem:[%s6354_s3 + $0x130] sm:$0x1]  ;;  %v3689_v12 = vld [vmem:[%s6354_s3 + $0x134] ss:$20 sps:$4 sm:$0xff]   ;;  %v1035_v23 = vcombine.high %v3110_v44, %v3110_v44 }
  0x43   : > { %6618 = vst [vmem:[#allocation80_spill] sm:$0xff] %v3679_v31  ;;  %6619 = vst [vmem:[#allocation81_spill] sm:$0xff] %v3684_v37  ;;  %v3698_v51 = vld [vmem:[%s6354_s3 + $0x14c] sm:$0x1]  ;;  %v3703_v24 = vld [vmem:[%s6354_s3 + $0x168] sm:$0x1]  ;;  %v993_v50 = vrot.slane %v3102_v39, %v992_v58  ;;  %v1000_v28 = vrot.slane %v986_v21, %v992_v58  ;;  %v3767_v37 = vadd.f32 %v6627_v22, %v6626_v25  ;;  %v6629_v39 = vunpack.c.l.bf16 %v3005_v1 }
  0x44   : > { %6620 = vst [vmem:[#allocation82_spill] sm:$0xff] %v3698_v51  ;;  %6621 = vst [vmem:[#allocation83_spill] sm:$0xff] %v3703_v24  ;;  %v3712_v10 = vld [vmem:[%s6354_s3 + $0x16c] ss:$20 sps:$4 sm:$0xff]   ;;  %v3717_v45 = vld [vmem:[%s6354_s3 + $0x184] sm:$0x1]  ;;  %v1042_v24 = vrot.slane %v3110_v44, %v992_v58  ;;  %v6624_v51 = vunpack.c.l.bf16 %v3081_v27  ;;  %v1049_v31 = vrot.slane %v1035_v23, %v992_v58  ;;  %v6630_v44 = vunpack.c.h.bf16 %v3093_v33 }
  0x45   : > { %v3722_v63 = vld [vmem:[%s6354_s3 + $0x1a0] sm:$0x1]  ;;  %v3731_v17 = vld [vmem:[%s6354_s3 + $0x1a4] ss:$20 sps:$4 sm:$0xff]   ;;  %v3736_v35 = vld [vmem:[%s6354_s3 + $0x1bc] sm:$0x1]  ;;  %v3773_v21 = vadd.f32 %v6629_v39, %v6628_v53  ;;  %v6633_v27 = vunpack.c.l.bf16 %v3010_v2  ;;  %v6634_v22 = vunpack.c.h.bf16 %v3096_v34  ;;  %v6635_v25 = vunpack.c.h.bf16 %v3010_v2 }
  0x46   : > { %6622 = vst [vmem:[#allocation84_spill] sm:$0xff] %v3731_v17  ;;  %6623 = vst [vmem:[#allocation85_spill] sm:$0xff] %v3736_v35  ;;  %v3761_v30 = vadd.f32 %v6625_v29, %v6624_v51  ;;  %v6631_v35 = vunpack.c.h.bf16 %v3005_v1  ;;  %v6632_v29 = vunpack.c.l.bf16 %v3096_v34  ;;  %v6636_v23 = vunpack.c.l.bf16 %v3155_v41 }
  0x47   : > { %v3791_v51 = vadd.f32 %v6635_v25, %v6634_v22  ;;  %v6637_v1 = vunpack.c.l.bf16 %v3158_v38  ;;  %v6639_v39 = vunpack.c.l.bf16 %v3015_v3  ;;  %v6640_v34 = vunpack.c.h.bf16 %v3105_v40 }
  0x48   : > { %v3779_v17 = vadd.f32 %v6631_v35, %v6630_v44  ;;  %v3785_v0 = vadd.f32 %v6633_v27, %v6632_v29  ;;  %v3795_v53 = vadd.f32 %v878_v36, %v6636_v23  ;;  %v6638_v35 = vunpack.c.l.bf16 %v3105_v40 }
  0x49   : > { %v3799_v33 = vadd.f32 %v879_v60, %v6637_v1  ;;  %v1001_v29 = vcombine.high %v993_v50, %v993_v50  ;;  %v6641_v2 = vunpack.c.h.bf16 %v3015_v3  ;;  %v6642_v36 = vunpack.c.l.bf16 %v3114_v46 }
  0x4a   : > { %v3805_v44 = vadd.f32 %v6639_v39, %v6638_v35  ;;  %v6643_v41 = vunpack.c.l.bf16 %v3024_v5  ;;  %v6644_v60 = vunpack.c.h.bf16 %v3114_v46  ;;  %v6645_v25 = vunpack.c.h.bf16 %v3024_v5 }
  0x4b   : > { %v3811_v27 = vadd.f32 %v6641_v2, %v6640_v34  ;;  %v1002_v1 = vcombine.high %v1000_v28, %v1000_v28  ;;  %v3825_v35 = vrot.slane %v993_v50, %v992_v58  ;;  %v1050_v40 = vcombine.high %v1042_v24, %v1042_v24 }
  0x4c   : > { %v3817_v22 = vadd.f32 %v6643_v41, %v6642_v36  ;;  %v3823_v23 = vadd.f32 %v6645_v25, %v6644_v60  ;;  %v6646_v3 = vunpack.c.h.bf16 %v3158_v38  ;;  %v6647_v39 = vunpack.c.h.bf16 %v3585_v59 }
  0x4d   : > { %v1051_v2 = vcombine.high %v1049_v31, %v1049_v31  ;;  %v6648_v36 = vunpack.c.l.bf16 %v3238_v18  ;;  %v6649_v41 = vunpack.c.l.bf16 %v3598_v49  ;;  %v6650_v5 = vunpack.c.l.bf16 %v3117_v47 }
  0x4e   : > { %v3831_v34 = vadd.f32 %v6647_v39, %v6646_v3  ;;  %v6651_v60 = vunpack.c.l.bf16 %v3029_v6  ;;  %v6652_v25 = vunpack.c.h.bf16 %v3117_v47  ;;  %v6653_v38 = vunpack.c.h.bf16 %v3029_v6 }
  0x4f   : > { %v3837_v46 = vadd.f32 %v6649_v41, %v6648_v36  ;;  %v3851_v3 = vrot.slane %v1000_v28, %v992_v58  ;;  %v6654_v18 = vunpack.c.l.bf16 %v3120_v48  ;;  %v6655_v49 = vunpack.c.l.bf16 %v3034_v7 }
  0x50   : > { %v3843_v50 = vadd.f32 %v6651_v60, %v6650_v5  ;;  %v3849_v59 = vadd.f32 %v6653_v38, %v6652_v25  ;;  %v6656_v36 = vunpack.c.h.bf16 %v3120_v48  ;;  %v6657_v41 = vunpack.c.h.bf16 %v3034_v7 }
  0x51   : > { %v3857_v39 = vadd.f32 %v6655_v49, %v6654_v18  ;;  %v6658_v47 = vunpack.c.l.bf16 %v3129_v55  ;;  %v6659_v6 = vunpack.c.l.bf16 %v3050_v13  ;;  %v3871_v28 = vrot.slane %v1001_v29, %v992_v58 }
  0x52   : > { %v3863_v5 = vadd.f32 %v6657_v41, %v6656_v36  ;;  %v3873_v25 = vrot.slane %v1042_v24, %v992_v58  ;;  %v3875_v38 = vrot.slane %v1049_v31, %v992_v58  ;;  %v6660_v18 = vunpack.c.h.bf16 %v3129_v55 }
  0x53   : > { %v3869_v60 = vadd.f32 %v6659_v6, %v6658_v47  ;;  %v6661_v48 = vunpack.c.h.bf16 %v3050_v13  ;;  %v3883_v7 = vrot.slane %v1002_v1, %v992_v58  ;;  %v3889_v29 = vrot.slane %v1050_v40, %v992_v58 }
  0x54   : > { %v3893_v31 = vrot.slane %v1051_v2, %v992_v58  ;;  %v6662_v40 = vunpack.c.l.bf16 %v3298_v4  ;;  %v6663_v6 = vunpack.c.l.bf16 %v3603_v54  ;;  %v6664_v58 = vunpack.c.l.bf16 %v3308_v52 }
  0x55   : > { %v3881_v49 = vadd.f32 %v6661_v48, %v6660_v18  ;;  %v6665_v2 = vunpack.c.l.bf16 %v3612_v9  ;;  %v6666_v13 = vunpack.c.l.bf16 %v3132_v56  ;;  %v6667_v1 = vunpack.c.l.bf16 %v3055_v14 }
  0x56   : > { %v3907_v18 = vadd.f32 %v6663_v6, %v6662_v40  ;;  %v6668_v4 = vunpack.c.h.bf16 %v3132_v56  ;;  %v6669_v54 = vunpack.c.h.bf16 %v3055_v14  ;;  %v6670_v6 = vunpack.c.l.bf16 %v3139_v61 }
  0x57   : > { %v3913_v48 = vadd.f32 %v6665_v2, %v6664_v58  ;;  %v3921_v47 = vadd.f32 %v6667_v1, %v6666_v13  ;;  %v6671_v58 = vunpack.c.l.bf16 %v3064_v19  ;;  %v6672_v55 = vunpack.c.h.bf16 %v3139_v61 }
  0x58   : > { %v3927_v40 = vadd.f32 %v6669_v54, %v6668_v4  ;;  %v6673_v41 = vunpack.c.h.bf16 %v3064_v19  ;;  %v6674_v13 = vunpack.c.h.bf16 %v3308_v52  ;;  %v6675_v56 = vunpack.c.h.bf16 %v3612_v9 }
  0x59   : > { %v3933_v2 = vadd.f32 %v6671_v58, %v6670_v6  ;;  %v6676_v14 = vunpack.c.l.bf16 %v3311_v57  ;;  %v6677_v4 = vunpack.c.l.bf16 %v3617_v8  ;;  %v6678_v6 = vunpack.c.l.bf16 %v3142_v62 }
  0x5a   : > { %v3939_v24 = vadd.f32 %v6673_v41, %v6672_v55  ;;  %v3945_v1 = vadd.f32 %v6675_v56, %v6674_v13  ;;  %v6679_v61 = vunpack.c.l.bf16 %v3069_v20  ;;  %v6680_v19 = vunpack.c.h.bf16 %v3142_v62 }
  0x5b   : > { %v3951_v54 = vadd.f32 %v6677_v4, %v6676_v14  ;;  %v6681_v52 = vunpack.c.h.bf16 %v3069_v20  ;;  %v6682_v9 = vunpack.c.l.bf16 %v3149_v43  ;;  %v6683_v57 = vunpack.c.l.bf16 %v3078_v26 }
  0x5c   : > { %v3957_v58 = vadd.f32 %v6679_v61, %v6678_v6  ;;  %v6684_v8 = vunpack.c.h.bf16 %v3149_v43  ;;  %v6685_v13 = vunpack.c.h.bf16 %v3078_v26  ;;  %v6686_v14 = vunpack.c.l.bf16 %v3152_v42 }
  0x5d   : > { %v3963_v41 = vadd.f32 %v6681_v52, %v6680_v19  ;;  %v3969_v55 = vadd.f32 %v6683_v57, %v6682_v9  ;;  %v6687_v62 = vunpack.c.l.bf16 %v3090_v32  ;;  %v6688_v20 = vunpack.c.h.bf16 %v3152_v42  ;;  %v6695_v9 = vld [vmem:[#allocation72_spill] sm:$0xff] }
  0x5e   : > { %v3975_v56 = vadd.f32 %v6685_v13, %v6684_v8  ;;  %v6689_v6 = vunpack.c.h.bf16 %v3090_v32  ;;  %v6691_v19 = vunpack.c.l.bf16 %v3314_v16  ;;  %v6692_v43 = vunpack.c.l.bf16 %v3622_v11  ;;  %v6698_v13 = vld [vmem:[#allocation2_spill] sm:$0xff]  ;;  %v6706_v11 = vld [vmem:[#allocation3_spill] sm:$0xff] }
  0x5f   : > { %v3981_v4 = vadd.f32 %v6687_v62, %v6686_v14  ;;  %v6694_v26 = vunpack.c.l.bf16 %v3321_v15  ;;  %v6696_v57 = vunpack.c.l.bf16 %v6695_v9  ;;  %v6699_v14 = vunpack.c.l.bf16 %v6698_v13  ;;  %v6700_v62 = vld [vmem:[#allocation45_spill] sm:$0xff] }
  0x60   : > { %v3987_v61 = vadd.f32 %v6689_v6, %v6688_v20  ;;  %v3993_v52 = vadd.f32 %v6692_v43, %v6691_v19  ;;  %v6701_v42 = vunpack.c.l.bf16 %v6700_v62  ;;  %v6703_v32 = vunpack.c.h.bf16 %v6698_v13  ;;  %v6708_v19 = vld [vmem:[#allocation46_spill] sm:$0xff] }
  0x61   : > { %v3999_v8 = vadd.f32 %v6696_v57, %v6694_v26  ;;  %v6704_v16 = vunpack.c.h.bf16 %v6700_v62  ;;  %v6707_v6 = vunpack.c.l.bf16 %v6706_v11  ;;  %v6709_v43 = vunpack.c.l.bf16 %v6708_v19  ;;  %v6717_v62 = vld [vmem:[#allocation29_spill] sm:$0xff] }
  0x62   : > { %6690 = vst [vmem:[#allocation86_spill] sm:$0xff] %v3987_v61  ;;  %6693 = vst [vmem:[#allocation87_spill] sm:$0xff] %v3993_v52  ;;  %v4005_v36 = vadd.f32 %v6701_v42, %v6699_v14  ;;  %v6711_v26 = vunpack.c.h.bf16 %v6706_v11  ;;  %v6712_v57 = vunpack.c.h.bf16 %v6708_v19  ;;  %v6714_v14 = vunpack.c.h.bf16 %v3321_v15 }
  0x63   : > { %6697 = vst [vmem:[#allocation72_spill] sm:$0xff] %v3999_v8  ;;  %v4011_v20 = vadd.f32 %v6704_v16, %v6703_v32  ;;  %v4017_v52 = vadd.f32 %v6709_v43, %v6707_v6  ;;  %v6715_v13 = vunpack.c.h.bf16 %v6695_v9  ;;  %v6718_v32 = vunpack.c.l.bf16 %v6717_v62  ;;  %v6719_v16 = vld [vmem:[#allocation73_spill] sm:$0xff]  ;;  %v6722_v6 = vld [vmem:[#allocation4_spill] sm:$0xff] }
  0x64   : > { %6702 = vst [vmem:[#allocation2_spill] sm:$0xff] %v4005_v36  ;;  %v4023_v8 = vadd.f32 %v6712_v57, %v6711_v26  ;;  %v6723_v43 = vunpack.c.l.bf16 %v6722_v6  ;;  %v6727_v19 = vunpack.c.h.bf16 %v6722_v6  ;;  %v6730_v9 = vld [vmem:[#allocation5_spill] sm:$0xff] }
  0x65   : > { %6705 = vst [vmem:[#allocation45_spill] sm:$0xff] %v4011_v20  ;;  %6710 = vst [vmem:[#allocation3_spill] sm:$0xff] %v4017_v52  ;;  %v4029_v42 = vadd.f32 %v6715_v13, %v6714_v14  ;;  %v6720_v20 = vunpack.c.l.bf16 %v6719_v16  ;;  %v6724_v52 = vld [vmem:[#allocation47_spill] sm:$0xff]  ;;  %v6731_v57 = vunpack.c.l.bf16 %v6730_v9  ;;  %v6732_v14 = vld [vmem:[#allocation48_spill] sm:$0xff] }
  0x66   : > { %6713 = vst [vmem:[#allocation46_spill] sm:$0xff] %v4023_v8  ;;  %v6725_v11 = vunpack.c.l.bf16 %v6724_v52  ;;  %v6728_v15 = vunpack.c.h.bf16 %v6724_v52  ;;  %v6733_v13 = vunpack.c.l.bf16 %v6732_v14 }
  0x67   : > { %6716 = vst [vmem:[#allocation88_spill] sm:$0xff] %v4029_v42  ;;  %v4035_v36 = vadd.f32 %v6720_v20, %v6718_v32  ;;  %v6735_v20 = vunpack.c.h.bf16 %v6730_v9  ;;  %v6736_v32 = vunpack.c.h.bf16 %v6732_v14  ;;  %v6751_v14 = vld [vmem:[#allocation31_spill] sm:$0xff] }
  0x68   : > { %v4041_v61 = vadd.f32 %v6725_v11, %v6723_v43  ;;  %v4047_v26 = vadd.f32 %v6728_v15, %v6727_v19  ;;  %v4053_v62 = vadd.f32 %v6733_v13, %v6731_v57  ;;  %v6738_v43 = vld [vmem:[#allocation6_spill] sm:$0xff] }
  0x69   : > { %6721 = vst [vmem:[#allocation29_spill] sm:$0xff] %v4035_v36  ;;  %v4059_v16 = vadd.f32 %v6736_v32, %v6735_v20  ;;  %v6739_v11 = vunpack.c.l.bf16 %v6738_v43  ;;  %v6743_v52 = vunpack.c.h.bf16 %v6738_v43  ;;  %v6746_v57 = vld [vmem:[#allocation30_spill] sm:$0xff]  ;;  %v6752_v20 = vunpack.c.l.bf16 %v6751_v14  ;;  %v6753_v32 = vld [vmem:[#allocation75_spill] sm:$0xff] }
  0x6a   : > { %6726 = vst [vmem:[#allocation73_spill] sm:$0xff] %v4041_v61  ;;  %6729 = vst [vmem:[#allocation4_spill] sm:$0xff] %v4047_v26  ;;  %v6740_v61 = vld [vmem:[#allocation49_spill] sm:$0xff]  ;;  %v6747_v13 = vunpack.c.l.bf16 %v6746_v57 }
  0x6b   : > { %6734 = vst [vmem:[#allocation47_spill] sm:$0xff] %v4053_v62  ;;  %6737 = vst [vmem:[#allocation5_spill] sm:$0xff] %v4059_v16  ;;  %v6741_v6 = vunpack.c.l.bf16 %v6740_v61  ;;  %v6744_v19 = vunpack.c.h.bf16 %v6740_v61  ;;  %v6748_v62 = vld [vmem:[#allocation74_spill] sm:$0xff]  ;;  %v6754_v16 = vunpack.c.l.bf16 %v6753_v32 }
  0x6c   : > { %v6749_v9 = vunpack.c.l.bf16 %v6748_v62  ;;  %v6764_v62 = vld [vmem:[#allocation8_spill] sm:$0xff] }
  0x6d   : > { %v4065_v36 = vadd.f32 %v6741_v6, %v6739_v11  ;;  %v4071_v15 = vadd.f32 %v6744_v19, %v6743_v52  ;;  %v4083_v42 = vadd.f32 %v6754_v16, %v6752_v20  ;;  %v6756_v11 = vld [vmem:[#allocation7_spill] sm:$0xff]  ;;  %v6765_v57 = vunpack.c.l.bf16 %v6764_v62 }
  0x6e   : > { %v4077_v26 = vadd.f32 %v6749_v9, %v6747_v13  ;;  %v6757_v6 = vunpack.c.l.bf16 %v6756_v11  ;;  %v6761_v61 = vunpack.c.h.bf16 %v6756_v11  ;;  %v6766_v13 = vld [vmem:[#allocation51_spill] sm:$0xff]  ;;  %v6769_v16 = vunpack.c.h.bf16 %v6764_v62 }
  0x6f   : > { %6742 = vst [vmem:[#allocation48_spill] sm:$0xff] %v4065_v36  ;;  %6745 = vst [vmem:[#allocation6_spill] sm:$0xff] %v4071_v15  ;;  %v6758_v36 = vld [vmem:[#allocation50_spill] sm:$0xff]  ;;  %v6767_v9 = vunpack.c.l.bf16 %v6766_v13  ;;  %v6770_v20 = vunpack.c.h.bf16 %v6766_v13  ;;  %v6773_v11 = vunpack.c.h.bf16 %v6753_v32 }
  0x70   : > { %6750 = vst [vmem:[#allocation49_spill] sm:$0xff] %v4077_v26  ;;  %6755 = vst [vmem:[#allocation30_spill] sm:$0xff] %v4083_v42  ;;  %v6759_v43 = vunpack.c.l.bf16 %v6758_v36  ;;  %v6762_v52 = vunpack.c.h.bf16 %v6758_v36  ;;  %v6775_v36 = vld [vmem:[#allocation32_spill] sm:$0xff]  ;;  %v6788_v32 = vld [vmem:[#allocation10_spill] sm:$0xff] }
  0x71   : > { %v4101_v26 = vadd.f32 %v6767_v9, %v6765_v57  ;;  %v4107_v42 = vadd.f32 %v6770_v20, %v6769_v16  ;;  %v6780_v57 = vld [vmem:[#allocation9_spill] sm:$0xff]  ;;  %v6789_v20 = vunpack.c.l.bf16 %v6788_v32 }
  0x72   : > { %v4089_v8 = vadd.f32 %v6759_v43, %v6757_v6  ;;  %v4095_v19 = vadd.f32 %v6762_v52, %v6761_v61  ;;  %v6772_v6 = vunpack.c.h.bf16 %v6751_v14  ;;  %v6776_v61 = vunpack.c.l.bf16 %v6775_v36  ;;  %v6777_v52 = vld [vmem:[#allocation76_spill] sm:$0xff] }
  0x73   : > { %6768 = vst [vmem:[#allocation75_spill] sm:$0xff] %v4101_v26  ;;  %6771 = vst [vmem:[#allocation7_spill] sm:$0xff] %v4107_v42  ;;  %v6781_v9 = vunpack.c.l.bf16 %v6780_v57  ;;  %v6782_v26 = vld [vmem:[#allocation52_spill] sm:$0xff]  ;;  %v6785_v13 = vunpack.c.h.bf16 %v6780_v57 }
  0x74   : > { %6760 = vst [vmem:[#allocation74_spill] sm:$0xff] %v4089_v8  ;;  %6763 = vst [vmem:[#allocation31_spill] sm:$0xff] %v4095_v19  ;;  %v4113_v43 = vadd.f32 %v6773_v11, %v6772_v6  ;;  %v6778_v19 = vunpack.c.l.bf16 %v6777_v52  ;;  %v6783_v62 = vunpack.c.l.bf16 %v6782_v26  ;;  %v6786_v14 = vunpack.c.h.bf16 %v6782_v26  ;;  %v6790_v6 = vld [vmem:[#allocation53_spill] sm:$0xff] }
  0x75   : > { %v6791_v11 = vunpack.c.l.bf16 %v6790_v6 }
  0x76   : > { %6774 = vst [vmem:[#allocation50_spill] sm:$0xff] %v4113_v43  ;;  %v4119_v8 = vadd.f32 %v6778_v19, %v6776_v61  ;;  %v4125_v15 = vadd.f32 %v6783_v62, %v6781_v9  ;;  %v4131_v16 = vadd.f32 %v6786_v14, %v6785_v13  ;;  %v6793_v19 = vunpack.c.h.bf16 %v6788_v32  ;;  %v6796_v9 = vld [vmem:[#allocation11_spill] sm:$0xff] }
  0x77   : > { %v4137_v36 = vadd.f32 %v6791_v11, %v6789_v20  ;;  %v6794_v61 = vunpack.c.h.bf16 %v6790_v6  ;;  %v6797_v62 = vunpack.c.l.bf16 %v6796_v9  ;;  %v6801_v26 = vunpack.c.h.bf16 %v6796_v9  ;;  %v6804_v20 = vld [vmem:[#allocation33_spill] sm:$0xff]  ;;  %v6809_v6 = vld [vmem:[#allocation34_spill] sm:$0xff] }
  0x78   : > { %6779 = vst [vmem:[#allocation8_spill] sm:$0xff] %v4119_v8  ;;  %6784 = vst [vmem:[#allocation51_spill] sm:$0xff] %v4125_v15  ;;  %v6798_v15 = vld [vmem:[#allocation54_spill] sm:$0xff]  ;;  %v6805_v11 = vunpack.c.l.bf16 %v6804_v20 }
  0x79   : > { %6787 = vst [vmem:[#allocation32_spill] sm:$0xff] %v4131_v16  ;;  %6792 = vst [vmem:[#allocation76_spill] sm:$0xff] %v4137_v36  ;;  %v4143_v52 = vadd.f32 %v6794_v61, %v6793_v19  ;;  %v6799_v57 = vunpack.c.l.bf16 %v6798_v15  ;;  %v6802_v13 = vunpack.c.h.bf16 %v6798_v15  ;;  %v6806_v36 = vld [vmem:[#allocation78_spill] sm:$0xff]  ;;  %v6810_v19 = vunpack.c.l.bf16 %v6809_v6  ;;  %v6811_v61 = vld [vmem:[#allocation79_spill] sm:$0xff] }
  0x7a   : > { %v6807_v32 = vunpack.c.l.bf16 %v6806_v36  ;;  %v6822_v36 = vld [vmem:[#allocation13_spill] sm:$0xff] }
  0x7b   : > { %6795 = vst [vmem:[#allocation9_spill] sm:$0xff] %v4143_v52  ;;  %v4149_v8 = vadd.f32 %v6799_v57, %v6797_v62  ;;  %v4155_v14 = vadd.f32 %v6802_v13, %v6801_v26  ;;  %v6812_v52 = vunpack.c.l.bf16 %v6811_v61  ;;  %v6814_v62 = vld [vmem:[#allocation12_spill] sm:$0xff]  ;;  %v6823_v20 = vunpack.c.l.bf16 %v6822_v36 }
  0x7c   : > { %v4161_v16 = vadd.f32 %v6807_v32, %v6805_v11  ;;  %v6815_v57 = vunpack.c.l.bf16 %v6814_v62  ;;  %v6819_v15 = vunpack.c.h.bf16 %v6814_v62  ;;  %v6824_v11 = vld [vmem:[#allocation56_spill] sm:$0xff]  ;;  %v6830_v62 = vunpack.c.h.bf16 %v6811_v61  ;;  %v6845_v61 = vld [vmem:[#allocation15_spill] sm:$0xff] }
  0x7d   : > { %6800 = vst [vmem:[#allocation52_spill] sm:$0xff] %v4149_v8  ;;  %6803 = vst [vmem:[#allocation10_spill] sm:$0xff] %v4155_v14  ;;  %v4167_v43 = vadd.f32 %v6812_v52, %v6810_v19  ;;  %v6816_v8 = vld [vmem:[#allocation55_spill] sm:$0xff]  ;;  %v6825_v32 = vunpack.c.l.bf16 %v6824_v11  ;;  %v6827_v52 = vunpack.c.h.bf16 %v6822_v36  ;;  %v6828_v19 = vunpack.c.h.bf16 %v6824_v11 }
  0x7e   : > { %6808 = vst [vmem:[#allocation53_spill] sm:$0xff] %v4161_v16  ;;  %v6817_v9 = vunpack.c.l.bf16 %v6816_v8  ;;  %v6820_v26 = vunpack.c.h.bf16 %v6816_v8  ;;  %v6832_v8 = vld [vmem:[#allocation35_spill] sm:$0xff] }
  0x7f   : > { %6813 = vst [vmem:[#allocation11_spill] sm:$0xff] %v4167_v43  ;;  %v4185_v16 = vadd.f32 %v6825_v32, %v6823_v20  ;;  %v4191_v43 = vadd.f32 %v6828_v19, %v6827_v52  ;;  %v6837_v20 = vld [vmem:[#allocation14_spill] sm:$0xff]  ;;  %v6846_v19 = vunpack.c.l.bf16 %v6845_v61 }
  0x80   : > { %v4173_v42 = vadd.f32 %v6817_v9, %v6815_v57  ;;  %v4179_v13 = vadd.f32 %v6820_v26, %v6819_v15  ;;  %v6829_v57 = vunpack.c.h.bf16 %v6809_v6  ;;  %v6833_v15 = vunpack.c.l.bf16 %v6832_v8  ;;  %v6834_v26 = vld [vmem:[#allocation80_spill] sm:$0xff] }
  0x81   : > { %6826 = vst [vmem:[#allocation78_spill] sm:$0xff] %v4185_v16  ;;  %v6838_v32 = vunpack.c.l.bf16 %v6837_v20  ;;  %v6839_v16 = vld [vmem:[#allocation57_spill] sm:$0xff]  ;;  %v6842_v11 = vunpack.c.h.bf16 %v6837_v20 }
  0x82   : > { %6818 = vst [vmem:[#allocation54_spill] sm:$0xff] %v4173_v42  ;;  %6821 = vst [vmem:[#allocation33_spill] sm:$0xff] %v4179_v13  ;;  %v4197_v9 = vadd.f32 %v6830_v62, %v6829_v57  ;;  %v6835_v13 = vunpack.c.l.bf16 %v6834_v26  ;;  %v6840_v36 = vunpack.c.l.bf16 %v6839_v16  ;;  %v6843_v6 = vunpack.c.h.bf16 %v6839_v16  ;;  %v6847_v57 = vld [vmem:[#allocation58_spill] sm:$0xff] }
  0x83   : > { %v6848_v62 = vunpack.c.l.bf16 %v6847_v57 }
  0x84   : > { %6831 = vst [vmem:[#allocation34_spill] sm:$0xff] %v4197_v9  ;;  %v4203_v42 = vadd.f32 %v6835_v13, %v6833_v15  ;;  %v4209_v14 = vadd.f32 %v6840_v36, %v6838_v32  ;;  %v4215_v52 = vadd.f32 %v6843_v6, %v6842_v11  ;;  %v6850_v13 = vunpack.c.h.bf16 %v6845_v61  ;;  %v6853_v32 = vld [vmem:[#allocation16_spill] sm:$0xff] }
  0x85   : > { %v4221_v8 = vadd.f32 %v6848_v62, %v6846_v19  ;;  %v6851_v15 = vunpack.c.h.bf16 %v6847_v57  ;;  %v6854_v36 = vunpack.c.l.bf16 %v6853_v32  ;;  %v6858_v16 = vunpack.c.h.bf16 %v6853_v32  ;;  %v6861_v19 = vld [vmem:[#allocation36_spill] sm:$0xff]  ;;  %v6866_v57 = vld [vmem:[#allocation37_spill] sm:$0xff] }
  0x86   : > { %6836 = vst [vmem:[#allocation79_spill] sm:$0xff] %v4203_v42  ;;  %6841 = vst [vmem:[#allocation12_spill] sm:$0xff] %v4209_v14  ;;  %v6855_v14 = vld [vmem:[#allocation59_spill] sm:$0xff]  ;;  %v6862_v62 = vunpack.c.l.bf16 %v6861_v19 }
  0x87   : > { %6844 = vst [vmem:[#allocation55_spill] sm:$0xff] %v4215_v52  ;;  %6849 = vst [vmem:[#allocation13_spill] sm:$0xff] %v4221_v8  ;;  %v4227_v26 = vadd.f32 %v6851_v15, %v6850_v13  ;;  %v6856_v20 = vunpack.c.l.bf16 %v6855_v14  ;;  %v6859_v11 = vunpack.c.h.bf16 %v6855_v14  ;;  %v6863_v8 = vld [vmem:[#allocation81_spill] sm:$0xff]  ;;  %v6867_v13 = vunpack.c.l.bf16 %v6866_v57 }
  0x88   : > { %v6864_v61 = vunpack.c.l.bf16 %v6863_v8  ;;  %v6868_v15 = vunpack.c.l.bf16 %v3689_v12  ;;  %v6878_v8 = vld [vmem:[#allocation18_spill] sm:$0xff] }
  0x89   : > { %6852 = vst [vmem:[#allocation56_spill] sm:$0xff] %v4227_v26  ;;  %v4233_v42 = vadd.f32 %v6856_v20, %v6854_v36  ;;  %v4239_v6 = vadd.f32 %v6859_v11, %v6858_v16  ;;  %v6870_v36 = vld [vmem:[#allocation17_spill] sm:$0xff]  ;;  %v6879_v19 = vunpack.c.l.bf16 %v6878_v8 }
  0x8a   : > { %v4245_v52 = vadd.f32 %v6864_v61, %v6862_v62  ;;  %v4251_v26 = vadd.f32 %v6868_v15, %v6867_v13  ;;  %v6871_v20 = vunpack.c.l.bf16 %v6870_v36  ;;  %v6875_v14 = vunpack.c.h.bf16 %v6870_v36  ;;  %v6880_v62 = vld [vmem:[#allocation61_spill] sm:$0xff] }
  0x8b   : > { %6857 = vst [vmem:[#allocation35_spill] sm:$0xff] %v4233_v42  ;;  %6860 = vst [vmem:[#allocation80_spill] sm:$0xff] %v4239_v6  ;;  %v6872_v42 = vld [vmem:[#allocation60_spill] sm:$0xff]  ;;  %v6881_v61 = vunpack.c.l.bf16 %v6880_v62  ;;  %v6883_v13 = vunpack.c.h.bf16 %v6878_v8  ;;  %v6884_v15 = vunpack.c.h.bf16 %v6880_v62  ;;  %v6886_v36 = vunpack.c.h.bf16 %v3689_v12 }
  0x8c   : > { %6865 = vst [vmem:[#allocation14_spill] sm:$0xff] %v4245_v52  ;;  %6869 = vst [vmem:[#allocation57_spill] sm:$0xff] %v4251_v26  ;;  %v6873_v32 = vunpack.c.l.bf16 %v6872_v42  ;;  %v6876_v16 = vunpack.c.h.bf16 %v6872_v42  ;;  %v6888_v42 = vld [vmem:[#allocation38_spill] sm:$0xff]  ;;  %v6901_v12 = vld [vmem:[#allocation20_spill] sm:$0xff] }
  0x8d   : > { %v4269_v52 = vadd.f32 %v6881_v61, %v6879_v19  ;;  %v4275_v26 = vadd.f32 %v6884_v15, %v6883_v13  ;;  %v6893_v19 = vld [vmem:[#allocation19_spill] sm:$0xff]  ;;  %v6902_v15 = vunpack.c.l.bf16 %v6901_v12 }
  0x8e   : > { %v4257_v9 = vadd.f32 %v6873_v32, %v6871_v20  ;;  %v4263_v11 = vadd.f32 %v6876_v16, %v6875_v14  ;;  %v6885_v20 = vunpack.c.h.bf16 %v6866_v57  ;;  %v6889_v14 = vunpack.c.l.bf16 %v6888_v42  ;;  %v6890_v16 = vld [vmem:[#allocation82_spill] sm:$0xff] }
  0x8f   : > { %6882 = vst [vmem:[#allocation16_spill] sm:$0xff] %v4269_v52  ;;  %v6894_v61 = vunpack.c.l.bf16 %v6893_v19  ;;  %v6895_v52 = vld [vmem:[#allocation62_spill] sm:$0xff]  ;;  %v6898_v62 = vunpack.c.h.bf16 %v6893_v19 }
  0x90   : > { %6874 = vst [vmem:[#allocation15_spill] sm:$0xff] %v4257_v9  ;;  %6877 = vst [vmem:[#allocation58_spill] sm:$0xff] %v4263_v11  ;;  %v4281_v32 = vadd.f32 %v6886_v36, %v6885_v20  ;;  %v6891_v11 = vunpack.c.l.bf16 %v6890_v16  ;;  %v6896_v8 = vunpack.c.l.bf16 %v6895_v52  ;;  %v6899_v57 = vunpack.c.h.bf16 %v6895_v52  ;;  %v6903_v20 = vld [vmem:[#allocation63_spill] sm:$0xff] }
  0x91   : > { %v6904_v36 = vunpack.c.l.bf16 %v6903_v20 }
  0x92   : > { %6887 = vst [vmem:[#allocation59_spill] sm:$0xff] %v4281_v32  ;;  %v4287_v9 = vadd.f32 %v6891_v11, %v6889_v14  ;;  %v4293_v6 = vadd.f32 %v6896_v8, %v6894_v61  ;;  %v4299_v13 = vadd.f32 %v6899_v57, %v6898_v62  ;;  %v6906_v11 = vunpack.c.h.bf16 %v6901_v12  ;;  %v6909_v61 = vld [vmem:[#allocation21_spill] sm:$0xff] }
  0x93   : > { %v4305_v42 = vadd.f32 %v6904_v36, %v6902_v15  ;;  %v6907_v14 = vunpack.c.h.bf16 %v6903_v20  ;;  %v6910_v8 = vunpack.c.l.bf16 %v6909_v61  ;;  %v6914_v52 = vunpack.c.h.bf16 %v6909_v61  ;;  %v6916_v15 = vld [vmem:[#allocation39_spill] sm:$0xff]  ;;  %v6921_v20 = vld [vmem:[#allocation40_spill] sm:$0xff] }
  0x94   : > { %6892 = vst [vmem:[#allocation36_spill] sm:$0xff] %v4287_v9  ;;  %6897 = vst [vmem:[#allocation81_spill] sm:$0xff] %v4293_v6  ;;  %v6911_v6 = vld [vmem:[#allocation64_spill] sm:$0xff]  ;;  %v6917_v36 = vunpack.c.l.bf16 %v6916_v15 }
  0x95   : > { %6900 = vst [vmem:[#allocation37_spill] sm:$0xff] %v4299_v13  ;;  %6905 = vst [vmem:[#allocation17_spill] sm:$0xff] %v4305_v42  ;;  %v4311_v16 = vadd.f32 %v6907_v14, %v6906_v11  ;;  %v6912_v19 = vunpack.c.l.bf16 %v6911_v6  ;;  %v6915_v62 = vunpack.c.h.bf16 %v6911_v6  ;;  %v6918_v42 = vld [vmem:[#allocation83_spill] sm:$0xff]  ;;  %v6922_v11 = vunpack.c.l.bf16 %v6921_v20 }
  0x96   : > { %v6919_v12 = vunpack.c.l.bf16 %v6918_v42  ;;  %v6923_v14 = vunpack.c.l.bf16 %v3712_v10  ;;  %v6933_v42 = vld [vmem:[#allocation23_spill] sm:$0xff] }
  0x97   : > { %6908 = vst [vmem:[#allocation60_spill] sm:$0xff] %v4311_v16  ;;  %v4317_v9 = vadd.f32 %v6912_v19, %v6910_v8  ;;  %v4323_v57 = vadd.f32 %v6915_v62, %v6914_v52  ;;  %v6925_v8 = vld [vmem:[#allocation22_spill] sm:$0xff]  ;;  %v6934_v15 = vunpack.c.l.bf16 %v6933_v42 }
  0x98   : > { %v4329_v13 = vadd.f32 %v6919_v12, %v6917_v36  ;;  %v4335_v16 = vadd.f32 %v6923_v14, %v6922_v11  ;;  %v6926_v19 = vunpack.c.l.bf16 %v6925_v8  ;;  %v6930_v6 = vunpack.c.h.bf16 %v6925_v8  ;;  %v6935_v36 = vld [vmem:[#allocation66_spill] sm:$0xff] }
  0x99   : > { %6913 = vst [vmem:[#allocation18_spill] sm:$0xff] %v4317_v9  ;;  %v6927_v9 = vld [vmem:[#allocation65_spill] sm:$0xff]  ;;  %v6936_v12 = vunpack.c.l.bf16 %v6935_v36  ;;  %v6938_v11 = vunpack.c.h.bf16 %v6933_v42  ;;  %v6939_v14 = vunpack.c.h.bf16 %v6935_v36  ;;  %v6942_v8 = vunpack.c.h.bf16 %v3712_v10 }
  0x9a   : > { %6920 = vst [vmem:[#allocation61_spill] sm:$0xff] %v4329_v13  ;;  %6924 = vst [vmem:[#allocation38_spill] sm:$0xff] %v4335_v16  ;;  %v6928_v61 = vunpack.c.l.bf16 %v6927_v9  ;;  %v6931_v52 = vunpack.c.h.bf16 %v6927_v9  ;;  %v6944_v9 = vld [vmem:[#allocation41_spill] sm:$0xff] }
  0x9b   : > { %v4353_v13 = vadd.f32 %v6936_v12, %v6934_v15  ;;  %v4359_v16 = vadd.f32 %v6939_v14, %v6938_v11  ;;  %v6948_v15 = vld [vmem:[#allocation24_spill] sm:$0xff]  ;;  %v6956_v10 = vld [vmem:[#allocation77_spill] sm:$0xff] }
  0x9c   : > { %v4341_v32 = vadd.f32 %v6928_v61, %v6926_v19  ;;  %v4347_v62 = vadd.f32 %v6931_v52, %v6930_v6  ;;  %v6941_v19 = vunpack.c.h.bf16 %v6921_v20  ;;  %v6945_v6 = vunpack.c.l.bf16 %v6944_v9  ;;  %v6959_v9 = vld [vmem:[#allocation68_spill] sm:$0xff] }
  0x9d   : > { %6937 = vst [vmem:[#allocation62_spill] sm:$0xff] %v4353_v13  ;;  %6940 = vst [vmem:[#allocation20_spill] sm:$0xff] %v4359_v16  ;;  %v6946_v52 = vunpack.c.l.bf16 %v3717_v45  ;;  %v6949_v12 = vunpack.c.l.bf16 %v6948_v15  ;;  %v6950_v13 = vld [vmem:[#allocation67_spill] sm:$0xff]  ;;  %v6953_v36 = vunpack.c.h.bf16 %v6948_v15  ;;  %v1198_v14 = vsub.s32 0, %v6956_v10 }
  0x9e   : > { %6929 = vst [vmem:[#allocation82_spill] sm:$0xff] %v4341_v32  ;;  %6932 = vst [vmem:[#allocation19_spill] sm:$0xff] %v4347_v62  ;;  %v4365_v61 = vadd.f32 %v6942_v8, %v6941_v19  ;;  %v6951_v42 = vunpack.c.l.bf16 %v6950_v13  ;;  %v6954_v20 = vunpack.c.h.bf16 %v6950_v13  ;;  %v6957_v19 = vld [vmem:[#allocation25_spill] sm:$0xff]  ;;  %v6960_v45 = vunpack.c.l.bf16 %v6959_v9 }
  0x9f   : > { %v4371_v62 = vadd.f32 %v6946_v52, %v6945_v6  ;;  %v6958_v8 = vunpack.c.l.bf16 %v6957_v19  ;;  %v6962_v52 = vunpack.c.h.bf16 %v6957_v19  ;;  %v6974_v19 = vunpack.c.l.bf16 %v3722_v63  ;;  %v6989_v63 = vld [vmem:[#allocation28_spill] sm:$0xff] }
  0xa0   : > { %6943 = vst [vmem:[#allocation63_spill] sm:$0xff] %v4365_v61  ;;  %v4377_v32 = vadd.f32 %v6951_v42, %v6949_v12  ;;  %v4383_v11 = vadd.f32 %v6954_v20, %v6953_v36  ;;  %v6965_v42 = vld [vmem:[#allocation26_spill] sm:$0xff] }
  0xa1   : > { %6947 = vst [vmem:[#allocation21_spill] sm:$0xff] %v4371_v62  ;;  %v4390_v6 = vadd.f32 %v6960_v45, %v6958_v8  ;;  %v6963_v62 = vunpack.c.h.bf16 %v6959_v9  ;;  %v6966_v15 = vunpack.c.l.bf16 %v6965_v42  ;;  %v6970_v20 = vunpack.c.h.bf16 %v6965_v42  ;;  %v6972_v8 = vld [vmem:[#allocation42_spill] sm:$0xff] }
  0xa2   : > { %6952 = vst [vmem:[#allocation64_spill] sm:$0xff] %v4377_v32  ;;  %6955 = vst [vmem:[#allocation39_spill] sm:$0xff] %v4383_v11  ;;  %v6967_v32 = vld [vmem:[#allocation69_spill] sm:$0xff]  ;;  %v6973_v45 = vunpack.c.l.bf16 %v6972_v8  ;;  %v6990_v8 = vunpack.c.l.bf16 %v6989_v63 }
  0xa3   : > { %6961 = vst [vmem:[#allocation83_spill] sm:$0xff] %v4390_v6  ;;  %v4396_v12 = vadd.f32 %v6963_v62, %v6962_v52  ;;  %v6968_v13 = vunpack.c.l.bf16 %v6967_v32  ;;  %v6971_v10 = vunpack.c.h.bf16 %v6967_v32  ;;  %v6976_v62 = vld [vmem:[#allocation43_spill] sm:$0xff]  ;;  %v6978_v52 = vld [vmem:[#allocation84_spill] sm:$0xff] }
  0xa4   : > { %v4414_v6 = vadd.f32 %v6974_v19, %v6973_v45  ;;  %v6977_v9 = vunpack.c.l.bf16 %v6976_v62  ;;  %v6991_v45 = vld [vmem:[#allocation71_spill] sm:$0xff] }
  0xa5   : > { %6964 = vst [vmem:[#allocation40_spill] sm:$0xff] %v4396_v12  ;;  %v4402_v36 = vadd.f32 %v6968_v13, %v6966_v15  ;;  %v4408_v11 = vadd.f32 %v6971_v10, %v6970_v20  ;;  %v6979_v12 = vunpack.c.l.bf16 %v6978_v52  ;;  %v6981_v15 = vld [vmem:[#allocation27_spill] sm:$0xff]  ;;  %v6992_v19 = vunpack.c.l.bf16 %v6991_v45 }
  0xa6   : > { %6975 = vst [vmem:[#allocation65_spill] sm:$0xff] %v4414_v6  ;;  %v6982_v13 = vunpack.c.l.bf16 %v6981_v15  ;;  %v6986_v32 = vunpack.c.h.bf16 %v6981_v15  ;;  %v6996_v15 = vunpack.c.h.bf16 %v6978_v52 }
  0xa7   : > { %6969 = vst [vmem:[#allocation22_spill] sm:$0xff] %v4402_v36  ;;  %v4420_v61 = vadd.f32 %v6979_v12, %v6977_v9  ;;  %v6983_v36 = vld [vmem:[#allocation70_spill] sm:$0xff]  ;;  %v4438_v6 = vadd.f32 %v6992_v19, %v6990_v8  ;;  %v6993_v12 = vunpack.c.h.bf16 %v6989_v63  ;;  %v6994_v9 = vunpack.c.h.bf16 %v6991_v45 }
  0xa8   : > { %v6984_v42 = vunpack.c.l.bf16 %v6983_v36  ;;  %v6987_v20 = vunpack.c.h.bf16 %v6983_v36  ;;  %v6998_v36 = vld [vmem:[#allocation44_spill] sm:$0xff]  ;;  %v1199_v8 = vrot.slane %v3825_v35, %v1198_v14  ;;  %v1203_v63 = vrot.slane %v3871_v28, %v1198_v14 }
  0xa9   : > { %6980 = vst [vmem:[#allocation23_spill] sm:$0xff] %v4420_v61  ;;  %v4444_v61 = vadd.f32 %v6994_v9, %v6993_v12  ;;  %v7003_v45 = vcombine.high %v3825_v35, %v3825_v35  ;;  %v1215_v12 = vrot.slane %v3851_v3, %v1198_v14  ;;  %v1219_v9 = vrot.slane %v3883_v7, %v1198_v14 }
  0xaa   : > { %v4426_v16 = vadd.f32 %v6984_v42, %v6982_v13  ;;  %v4432_v10 = vadd.f32 %v6987_v20, %v6986_v32  ;;  %v6995_v13 = vunpack.c.h.bf16 %v6976_v62  ;;  %v6999_v32 = vunpack.c.l.bf16 %v6998_v36  ;;  %v7000_v20 = vld [vmem:[#allocation85_spill] sm:$0xff] }
  0xab   : > { %v1207_v19 = vrot.slane %v7003_v45, %v1198_v14  ;;  %v7004_v62 = vcombine.high %v3871_v28, %v3871_v28  ;;  %v4477_v35 = vrot.slane %v3873_v25, %v1198_v14  ;;  %v7007_v28 = vcombine.high %v3873_v25, %v3873_v25 }
  0xac   : > { %6985 = vst [vmem:[#allocation66_spill] sm:$0xff] %v4426_v16  ;;  %6988 = vst [vmem:[#allocation41_spill] sm:$0xff] %v4432_v10  ;;  %v4450_v42 = vadd.f32 %v6996_v15, %v6995_v13  ;;  %v7001_v10 = vunpack.c.l.bf16 %v7000_v20  ;;  %v7006_v15 = vcombine.high %v3883_v7, %v3883_v7  ;;  %v4493_v7 = vrot.slane %v3875_v38, %v1198_v14 }
  0xad   : > { %v1211_v52 = vrot.slane %v7004_v62, %v1198_v14  ;;  %v4485_v20 = vrot.slane %v7007_v28, %v1198_v14  ;;  %v4496_v62 = vrot.slane %v3893_v31, %v1198_v14  ;;  %v7010_v25 = vcombine.high %v3893_v31, %v3893_v31 }
  0xae   : > { %6997 = vst [vmem:[#allocation24_spill] sm:$0xff] %v4450_v42  ;;  %v4456_v16 = vadd.f32 %v7001_v10, %v6999_v32  ;;  %v7005_v10 = vcombine.high %v3851_v3, %v3851_v3  ;;  %v4474_v36 = vrot.slane %v7006_v15, %v1198_v14  ;;  %v4480_v32 = vrot.slane %v3889_v29, %v1198_v14 }
  0xaf   : > { %v7008_v3 = vcombine.high %v3889_v29, %v3889_v29  ;;  %v4506_v28 = vrot.slane %v7010_v25, %v1198_v14  ;;  %v4509_v29 = vmul.f32 %v1199_v8, %v3761_v30  ;;  %v4518_v42 = vmul.f32 %v1199_v8, %v3779_v17 }
  0xb0   : > { %7002 = vst [vmem:[#allocation67_spill] sm:$0xff] %v4456_v16  ;;  %v1223_v13 = vrot.slane %v7005_v10, %v1198_v14  ;;  %v7009_v10 = vcombine.high %v3875_v38, %v3875_v38  ;;  %v4515_v16 = vmul.f32 %v1199_v8, %v3773_v21  ;;  %v4521_v38 = vmul.f32 %v1199_v8, %v3785_v0 }
  0xb1   : > { %v4490_v45 = vrot.slane %v7008_v3, %v1198_v14  ;;  %v4512_v3 = vmul.f32 %v1199_v8, %v3767_v37  ;;  %v4527_v31 = vmul.f32 %v1199_v8, %v3795_v53  ;;  %v1283_v30 = vmul.f32 %v1203_v63, %v3799_v33 }
  0xb2   : > { %v4501_v15 = vrot.slane %v7009_v10, %v1198_v14  ;;  %v4524_v10 = vmul.f32 %v1199_v8, %v3791_v51  ;;  %v4531_v37 = vmul.f32 %v1203_v63, %v3805_v44  ;;  %v4534_v21 = vmul.f32 %v1203_v63, %v3811_v27 }
  0xb3   : > { %7012 = vst [vmem:[#allocation25_spill] sm:$0xff] %v4527_v31  ;;  %v4537_v17 = vmul.f32 %v1203_v63, %v3817_v22  ;;  %v4540_v0 = vmul.f32 %v1203_v63, %v3823_v23  ;;  %v4543_v51 = vmul.f32 %v1203_v63, %v3831_v34  ;;  %v4546_v53 = vmul.f32 %v1203_v63, %v3837_v46 }
  0xb4   : > { %7011 = vst [vmem:[#allocation77_spill] sm:$0xff] %v4524_v10  ;;  %v4549_v33 = vmul.f32 %v1207_v19, %v3843_v50  ;;  %v4552_v44 = vmul.f32 %v1207_v19, %v3849_v59  ;;  %v4555_v27 = vmul.f32 %v1207_v19, %v3857_v39  ;;  %v4558_v22 = vmul.f32 %v1207_v19, %v3863_v5  ;;  %v7055_v10 = vld [vmem:[#allocation32_spill] sm:$0xff] }
  0xb5   : > { %7013 = vst [vmem:[#allocation68_spill] sm:$0xff] %v4543_v51  ;;  %7014 = vst [vmem:[#allocation26_spill] sm:$0xff] %v4546_v53  ;;  %v4561_v23 = vmul.f32 %v1207_v19, %v3869_v60  ;;  %v4564_v34 = vmul.f32 %v1207_v19, %v3881_v49  ;;  %v4567_v46 = vmul.f32 %v1207_v19, %v3907_v18 }
  0xb6   : > { %v4570_v50 = vmul.f32 %v1211_v52, %v3913_v48  ;;  %v4573_v59 = vmul.f32 %v1211_v52, %v3921_v47  ;;  %v4576_v39 = vmul.f32 %v1211_v52, %v3927_v40  ;;  %v4579_v5 = vmul.f32 %v1211_v52, %v3933_v2 }
  0xb7   : > { %7015 = vst [vmem:[#allocation69_spill] sm:$0xff] %v4564_v34  ;;  %7016 = vst [vmem:[#allocation42_spill] sm:$0xff] %v4567_v46  ;;  %v4582_v60 = vmul.f32 %v1211_v52, %v3939_v24  ;;  %v4585_v49 = vmul.f32 %v1211_v52, %v3945_v1  ;;  %v4588_v18 = vmul.f32 %v1211_v52, %v3951_v54  ;;  %v7019_v1 = vld [vmem:[#allocation86_spill] sm:$0xff]  ;;  %v7021_v54 = vld [vmem:[#allocation87_spill] sm:$0xff] }
  0xb8   : > { %v4591_v48 = vmul.f32 %v1215_v12, %v3957_v58  ;;  %v4594_v47 = vmul.f32 %v1215_v12, %v3963_v41  ;;  %v4597_v40 = vmul.f32 %v1215_v12, %v3969_v55  ;;  %v4600_v2 = vmul.f32 %v1215_v12, %v3975_v56  ;;  %v7023_v58 = vld [vmem:[#allocation72_spill] sm:$0xff]  ;;  %v7024_v41 = vld [vmem:[#allocation2_spill] sm:$0xff]  ;;  %v7025_v55 = vld [vmem:[#allocation45_spill] sm:$0xff] }
  0xb9   : > { %7017 = vst [vmem:[#allocation43_spill] sm:$0xff] %v4585_v49  ;;  %7018 = vst [vmem:[#allocation84_spill] sm:$0xff] %v4588_v18  ;;  %v4603_v24 = vmul.f32 %v1215_v12, %v3981_v4  ;;  %v4606_v14 = vmul.f32 %v1215_v12, %v7019_v1  ;;  %v4609_v8 = vmul.f32 %v1215_v12, %v7021_v54  ;;  %v7026_v56 = vld [vmem:[#allocation3_spill] sm:$0xff]  ;;  %v7027_v4 = vld [vmem:[#allocation46_spill] sm:$0xff] }
  0xba   : > { %v4612_v63 = vmul.f32 %v1219_v9, %v7023_v58  ;;  %v4615_v19 = vmul.f32 %v1219_v9, %v7024_v41  ;;  %v4618_v52 = vmul.f32 %v1219_v9, %v7025_v55  ;;  %v4621_v25 = vmul.f32 %v1219_v9, %v7026_v56  ;;  %v7029_v1 = vld [vmem:[#allocation88_spill] sm:$0xff]  ;;  %v7031_v12 = vld [vmem:[#allocation29_spill] sm:$0xff]  ;;  %v7035_v55 = vld [vmem:[#allocation47_spill] sm:$0xff] }
  0xbb   : > { %7020 = vst [vmem:[#allocation27_spill] sm:$0xff] %v4606_v14  ;;  %7022 = vst [vmem:[#allocation70_spill] sm:$0xff] %v4609_v8  ;;  %v4624_v18 = vmul.f32 %v1219_v9, %v7027_v4  ;;  %v4627_v46 = vmul.f32 %v1219_v9, %v7029_v1  ;;  %v4630_v54 = vmul.f32 %v1219_v9, %v7031_v12  ;;  %v7033_v58 = vld [vmem:[#allocation73_spill] sm:$0xff]  ;;  %v7034_v41 = vld [vmem:[#allocation4_spill] sm:$0xff] }
  0xbc   : > { %v4633_v8 = vmul.f32 %v1223_v13, %v7033_v58  ;;  %v4636_v53 = vmul.f32 %v1223_v13, %v7034_v41  ;;  %v4639_v31 = vmul.f32 %v1223_v13, %v7035_v55  ;;  %v7036_v56 = vld [vmem:[#allocation5_spill] sm:$0xff]  ;;  %v7037_v4 = vld [vmem:[#allocation48_spill] sm:$0xff]  ;;  %v7039_v1 = vld [vmem:[#allocation6_spill] sm:$0xff] }
  0xbd   : > { %7028 = vst [vmem:[#allocation28_spill] sm:$0xff] %v4624_v18  ;;  %7030 = vst [vmem:[#allocation71_spill] sm:$0xff] %v4627_v46  ;;  %v4642_v14 = vmul.f32 %v1223_v13, %v7036_v56  ;;  %v4645_v49 = vmul.f32 %v1223_v13, %v7037_v4  ;;  %v4648_v46 = vmul.f32 %v1223_v13, %v7039_v1  ;;  %v7041_v9 = vld [vmem:[#allocation49_spill] sm:$0xff]  ;;  %v7043_v58 = vld [vmem:[#allocation30_spill] sm:$0xff] }
  0xbe   : > { %7032 = vst [vmem:[#allocation44_spill] sm:$0xff] %v4630_v54  ;;  %v4651_v12 = vmul.f32 %v1223_v13, %v7041_v9  ;;  %v4655_v54 = vmul.f32 %v4474_v36, %v7043_v58  ;;  %v7044_v41 = vld [vmem:[#allocation74_spill] sm:$0xff]  ;;  %v7045_v34 = vld [vmem:[#allocation31_spill] sm:$0xff]  ;;  %v7081_v18 = vld [vmem:[#allocation56_spill] sm:$0xff] }
  0xbf   : > { %7038 = vst [vmem:[#allocation85_spill] sm:$0xff] %v4645_v49  ;;  %7040 = vst [vmem:[#allocation86_spill] sm:$0xff] %v4648_v46  ;;  %v4659_v55 = vmul.f32 %v4474_v36, %v7044_v41  ;;  %v4663_v56 = vmul.f32 %v4474_v36, %v7045_v34  ;;  %v7046_v4 = vld [vmem:[#allocation75_spill] sm:$0xff]  ;;  %v7050_v9 = vld [vmem:[#allocation50_spill] sm:$0xff] }
  0xc0   : > { %7042 = vst [vmem:[#allocation87_spill] sm:$0xff] %v4651_v12  ;;  %v4667_v51 = vmul.f32 %v4474_v36, %v7046_v4  ;;  %v7048_v1 = vld [vmem:[#allocation7_spill] sm:$0xff]  ;;  %v4675_v58 = vmul.f32 %v4474_v36, %v7050_v9  ;;  %v7052_v12 = vld [vmem:[#allocation8_spill] sm:$0xff]  ;;  %v4687_v4 = vmul.f32 %v4477_v35, %v7055_v10 }
  0xc1   : > { %v4671_v13 = vmul.f32 %v4474_v36, %v7048_v1  ;;  %v4679_v41 = vmul.f32 %v4474_v36, %v7052_v12  ;;  %v7054_v46 = vld [vmem:[#allocation51_spill] sm:$0xff]  ;;  %v7056_v49 = vld [vmem:[#allocation76_spill] sm:$0xff]  ;;  %v7062_v12 = vld [vmem:[#allocation10_spill] sm:$0xff] }
  0xc2   : > { %7047 = vst [vmem:[#allocation72_spill] sm:$0xff] %v4667_v51  ;;  %7051 = vst [vmem:[#allocation45_spill] sm:$0xff] %v4675_v58  ;;  %v4683_v34 = vmul.f32 %v4477_v35, %v7054_v46  ;;  %v4691_v1 = vmul.f32 %v4477_v35, %v7056_v49  ;;  %v7060_v58 = vld [vmem:[#allocation52_spill] sm:$0xff]  ;;  %v4703_v46 = vmul.f32 %v4477_v35, %v7062_v12  ;;  %v7066_v51 = vld [vmem:[#allocation11_spill] sm:$0xff]  ;;  %v1389_v12 = vsel %vm1388_vm0, %v4509_v29, 0.0 }
  0xc3   : > { %7049 = vst [vmem:[#allocation2_spill] sm:$0xff] %v4671_v13  ;;  %7053 = vst [vmem:[#allocation3_spill] sm:$0xff] %v4679_v41  ;;  %v7058_v13 = vld [vmem:[#allocation9_spill] sm:$0xff]  ;;  %v4699_v36 = vmul.f32 %v4477_v35, %v7060_v58  ;;  %v4711_v49 = vmul.f32 %v4480_v32, %v7066_v51  ;;  %v4730_v51 = vmul.f32 %v4480_v32, %v4191_v43 }
  0xc4   : > { %7057 = vst [vmem:[#allocation46_spill] sm:$0xff] %v4691_v1  ;;  %v4695_v9 = vmul.f32 %v4477_v35, %v7058_v13  ;;  %7063 = vst [vmem:[#allocation73_spill] sm:$0xff] %v4703_v46  ;;  %v7064_v41 = vld [vmem:[#allocation53_spill] sm:$0xff]  ;;  %v7067_v1 = vld [vmem:[#allocation54_spill] sm:$0xff]  ;;  %v1390_v46 = vsel %vm1388_vm0, %v1283_v30, 0.0 }
  0xc5   : > { %7061 = vst [vmem:[#allocation29_spill] sm:$0xff] %v4699_v36  ;;  %v4707_v10 = vmul.f32 %v4477_v35, %v7064_v41  ;;  %v4715_v13 = vmul.f32 %v4480_v32, %v7067_v1  ;;  %v7070_v36 = vld [vmem:[#allocation78_spill] sm:$0xff]  ;;  %7072 = vst [vmem:[#allocation48_spill] sm:$0xff] %v4730_v51  ;;  %v7078_v30 = vld [vmem:[#allocation55_spill] sm:$0xff]  ;;  %v1391_v51 = vadd.f32 %v1390_v46, %v1389_v12 }
  0xc6   : > { %7059 = vst [vmem:[#allocation88_spill] sm:$0xff] %v4695_v9  ;;  %v7068_v9 = vld [vmem:[#allocation33_spill] sm:$0xff]  ;;  %v4726_v35 = vmul.f32 %v4480_v32, %v7070_v36  ;;  %v7073_v41 = vld [vmem:[#allocation34_spill] sm:$0xff]  ;;  %v4746_v36 = vmul.f32 %v4485_v20, %v7078_v30  ;;  %v1392_v30 = vsel %vm1388_vm0, %v4549_v33, 0.0 }
  0xc7   : > { %7065 = vst [vmem:[#allocation4_spill] sm:$0xff] %v4707_v10  ;;  %v4719_v58 = vmul.f32 %v4480_v32, %v7068_v9  ;;  %v4734_v1 = vmul.f32 %v4480_v32, %v7073_v41  ;;  %v7075_v10 = vld [vmem:[#allocation79_spill] sm:$0xff]  ;;  %v4754_v41 = vmul.f32 %v4485_v20, %v7081_v18  ;;  %v7089_v46 = vld [vmem:[#allocation57_spill] sm:$0xff]  ;;  %v1420_v18 = vsel %vm1388_vm0, %v4512_v3, 0.0 }
  0xc8   : > { %7071 = vst [vmem:[#allocation5_spill] sm:$0xff] %v4726_v35  ;;  %v4738_v9 = vmul.f32 %v4480_v32, %v7075_v10  ;;  %v7079_v35 = vld [vmem:[#allocation13_spill] sm:$0xff]  ;;  %v7085_v10 = vld [vmem:[#allocation80_spill] sm:$0xff]  ;;  %v4772_v12 = vmul.f32 %v4490_v45, %v7089_v46  ;;  %v4794_v3 = vmul.f32 %v4490_v45, %v4275_v26 }
  0xc9   : > { %7069 = vst [vmem:[#allocation47_spill] sm:$0xff] %v4719_v58  ;;  %7074 = vst [vmem:[#allocation6_spill] sm:$0xff] %v4734_v1  ;;  %v7077_v58 = vld [vmem:[#allocation12_spill] sm:$0xff]  ;;  %v4750_v43 = vmul.f32 %v4485_v20, %v7079_v35  ;;  %v7083_v1 = vld [vmem:[#allocation35_spill] sm:$0xff] }
  0xca   : > { %7076 = vst [vmem:[#allocation49_spill] sm:$0xff] %v4738_v9  ;;  %v4742_v29 = vmul.f32 %v4485_v20, %v7077_v58  ;;  %7082 = vst [vmem:[#allocation74_spill] sm:$0xff] %v4754_v41  ;;  %v4758_v32 = vmul.f32 %v4485_v20, %v7083_v1  ;;  %v4762_v58 = vmul.f32 %v4485_v20, %v7085_v10  ;;  %v7087_v9 = vld [vmem:[#allocation14_spill] sm:$0xff]  ;;  %v1421_v1 = vsel %vm1388_vm0, %v4531_v37, 0.0  ;;  %v7090_v41 = vld [vmem:[#allocation15_spill] sm:$0xff] }
  0xcb   : > { %7080 = vst [vmem:[#allocation30_spill] sm:$0xff] %v4750_v43  ;;  %v4768_v35 = vmul.f32 %v4485_v20, %v7087_v9  ;;  %v4780_v10 = vmul.f32 %v4490_v45, %v7090_v41  ;;  %v1422_v20 = vadd.f32 %v1421_v1, %v1420_v18  ;;  %v1423_v9 = vsel %vm1388_vm0, %v4552_v44, 0.0  ;;  %v7092_v46 = vld [vmem:[#allocation16_spill] sm:$0xff]  ;;  %7094 = vst [vmem:[#allocation8_spill] sm:$0xff] %v4794_v3  ;;  %v7095_v37 = vld [vmem:[#allocation59_spill] sm:$0xff] }
  0xcc   : > { %7084 = vst [vmem:[#allocation31_spill] sm:$0xff] %v4758_v32  ;;  %7086 = vst [vmem:[#allocation75_spill] sm:$0xff] %v4762_v58  ;;  %v7091_v58 = vld [vmem:[#allocation58_spill] sm:$0xff]  ;;  %v4798_v41 = vmul.f32 %v4490_v45, %v7095_v37  ;;  %v1393_v32 = vadd.f32 %v1392_v30, %v1391_v51  ;;  %v7097_v43 = vld [vmem:[#allocation36_spill] sm:$0xff]  ;;  %v1394_v1 = vsel %vm1388_vm0, %v4570_v50, 0.0  ;;  %v4830_v50 = vmul.f32 %v4493_v7, %v4323_v57 }
  0xcd   : > { %7088 = vst [vmem:[#allocation7_spill] sm:$0xff] %v4768_v35  ;;  %v4784_v33 = vmul.f32 %v4490_v45, %v7091_v58  ;;  %v4790_v35 = vmul.f32 %v4490_v45, %v7092_v46  ;;  %v4802_v58 = vmul.f32 %v4490_v45, %v7097_v43  ;;  %v7099_v18 = vld [vmem:[#allocation81_spill] sm:$0xff]  ;;  %v1424_v46 = vadd.f32 %v1423_v9, %v1422_v20  ;;  %v7102_v51 = vld [vmem:[#allocation60_spill] sm:$0xff]  ;;  %v7104_v30 = vld [vmem:[#allocation18_spill] sm:$0xff] }
  0xce   : > { %7096 = vst [vmem:[#allocation51_spill] sm:$0xff] %v4798_v41  ;;  %v4806_v44 = vmul.f32 %v4493_v7, %v7099_v18  ;;  %v7101_v3 = vld [vmem:[#allocation17_spill] sm:$0xff]  ;;  %v4820_v45 = vmul.f32 %v4493_v7, %v7102_v51  ;;  %v1425_v43 = vsel %vm1388_vm0, %v4573_v59, 0.0  ;;  %v4826_v18 = vmul.f32 %v4493_v7, %v7104_v30  ;;  %7105 = vst [vmem:[#allocation9_spill] sm:$0xff] %v4830_v50  ;;  %v7108_v9 = vld [vmem:[#allocation38_spill] sm:$0xff] }
  0xcf   : > { %7093 = vst [vmem:[#allocation50_spill] sm:$0xff] %v4790_v35  ;;  %7098 = vst [vmem:[#allocation32_spill] sm:$0xff] %v4802_v58  ;;  %v7100_v35 = vld [vmem:[#allocation37_spill] sm:$0xff]  ;;  %v4816_v37 = vmul.f32 %v4493_v7, %v7101_v3  ;;  %v4838_v3 = vmul.f32 %v4496_v62, %v7108_v9  ;;  %v1395_v51 = vadd.f32 %v1394_v1, %v1393_v32  ;;  %v1451_v59 = vsel %vm1388_vm0, %v4515_v16, 0.0  ;;  %v7109_v57 = vld [vmem:[#allocation82_spill] sm:$0xff] }
  0xd0   : > { %v4812_v26 = vmul.f32 %v4493_v7, %v7100_v35  ;;  %7103 = vst [vmem:[#allocation76_spill] sm:$0xff] %v4820_v45  ;;  %v7106_v35 = vld [vmem:[#allocation61_spill] sm:$0xff]  ;;  %v1452_v30 = vsel %vm1388_vm0, %v4534_v21, 0.0  ;;  %v1454_v58 = vsel %vm1388_vm0, %v4555_v27, 0.0  ;;  %v4848_v50 = vmul.f32 %v4496_v62, %v7109_v57  ;;  %v7111_v16 = vld [vmem:[#allocation62_spill] sm:$0xff]  ;;  %v7113_v21 = vld [vmem:[#allocation20_spill] sm:$0xff] }
  0xd1   : > { %v4834_v20 = vmul.f32 %v4493_v7, %v7106_v35  ;;  %v1396_v7 = vsel %vm1388_vm0, %v4591_v48, 0.0  ;;  %v1426_v35 = vadd.f32 %v1425_v43, %v1424_v46  ;;  %v1453_v9 = vadd.f32 %v1452_v30, %v1451_v59  ;;  %v7114_v41 = vld [vmem:[#allocation63_spill] sm:$0xff]  ;;  %v7116_v46 = vld [vmem:[#allocation21_spill] sm:$0xff]  ;;  %v7117_v30 = vld [vmem:[#allocation64_spill] sm:$0xff] }
  0xd2   : > { %v4858_v1 = vmul.f32 %v4496_v62, %v7111_v16  ;;  %v4862_v27 = vmul.f32 %v4496_v62, %v7113_v21  ;;  %v1427_v57 = vsel %vm1388_vm0, %v4594_v47, 0.0  ;;  %v4868_v48 = vmul.f32 %v4496_v62, %v7114_v41  ;;  %v7118_v21 = vld [vmem:[#allocation39_spill] sm:$0xff] }
  0xd3   : > { %7107 = vst [vmem:[#allocation52_spill] sm:$0xff] %v4834_v20  ;;  %v7110_v20 = vld [vmem:[#allocation19_spill] sm:$0xff]  ;;  %v4872_v43 = vmul.f32 %v4496_v62, %v7116_v46  ;;  %v1456_v59 = vsel %vm1388_vm0, %v4576_v39, 0.0  ;;  %v1374_v16 = vmul.f32 %v4501_v15, %v7117_v30  ;;  %v1397_v41 = vadd.f32 %v1396_v7, %v1395_v51  ;;  %v7121_v7 = vld [vmem:[#allocation22_spill] sm:$0xff] }
  0xd4   : > { %v4854_v32 = vmul.f32 %v4496_v62, %v7110_v20  ;;  %7112 = vst [vmem:[#allocation10_spill] sm:$0xff] %v4858_v1  ;;  %7115 = vst [vmem:[#allocation53_spill] sm:$0xff] %v4868_v48  ;;  %v1455_v20 = vadd.f32 %v1454_v58, %v1453_v9  ;;  %v4880_v1 = vmul.f32 %v4501_v15, %v7118_v21  ;;  %v7119_v47 = vld [vmem:[#allocation83_spill] sm:$0xff]  ;;  %v7120_v48 = vld [vmem:[#allocation40_spill] sm:$0xff]  ;;  %v1398_v58 = vsel %vm1388_vm0, %v4612_v63, 0.0 }
  0xd5   : > { %v4884_v45 = vmul.f32 %v4501_v15, %v7119_v47  ;;  %v4888_v62 = vmul.f32 %v4501_v15, %v7120_v48  ;;  %v1428_v39 = vadd.f32 %v1427_v57, %v1426_v35  ;;  %v1429_v9 = vsel %vm1388_vm0, %v4615_v19, 0.0  ;;  %v7122_v57 = vld [vmem:[#allocation65_spill] sm:$0xff]  ;;  %v7124_v47 = vld [vmem:[#allocation66_spill] sm:$0xff] }
  0xd6   : > { %v1457_v46 = vadd.f32 %v1456_v59, %v1455_v20  ;;  %v1482_v30 = vsel %vm1388_vm0, %v4518_v42, 0.0  ;;  %v1483_v21 = vsel %vm1388_vm0, %v4537_v17, 0.0  ;;  %v1485_v51 = vsel %vm1388_vm0, %v4558_v22, 0.0  ;;  %v7123_v17 = vld [vmem:[#allocation23_spill] sm:$0xff] }
  0xd7   : > { %v4902_v48 = vmul.f32 %v4501_v15, %v7121_v7  ;;  %v4906_v63 = vmul.f32 %v4501_v15, %v4408_v11  ;;  %v1458_v19 = vsel %vm1388_vm0, %v4597_v40, 0.0  ;;  %v1484_v35 = vadd.f32 %v1483_v21, %v1482_v30  ;;  %v7125_v21 = vld [vmem:[#allocation41_spill] sm:$0xff] }
  0xd8   : > { %v4912_v42 = vmul.f32 %v4501_v15, %v7122_v57  ;;  %v1381_v20 = vmul.f32 %v4506_v28, %v7123_v17  ;;  %v1399_v22 = vadd.f32 %v1398_v58, %v1397_v41  ;;  %v1487_v59 = vsel %vm1388_vm0, %v4579_v5, 0.0 }
  0xd9   : > { %v4920_v7 = vmul.f32 %v4506_v28, %v7124_v47  ;;  %v1400_v11 = vsel %vm1388_vm0, %v4633_v8, 0.0  ;;  %v1430_v40 = vadd.f32 %v1429_v9, %v1428_v39  ;;  %v1486_v30 = vadd.f32 %v1485_v51, %v1484_v35  ;;  %v7126_v51 = vld [vmem:[#allocation24_spill] sm:$0xff] }
  0xda   : > { %v4926_v15 = vmul.f32 %v4506_v28, %v7125_v21  ;;  %v4930_v57 = vmul.f32 %v4506_v28, %v4438_v6  ;;  %v1431_v5 = vsel %vm1388_vm0, %v4636_v53, 0.0  ;;  %v1459_v41 = vadd.f32 %v1458_v19, %v1457_v46 }
  0xdb   : > { %v4936_v58 = vmul.f32 %v4506_v28, %v4444_v61  ;;  %v1460_v8 = vsel %vm1388_vm0, %v4618_v52, 0.0  ;;  %v1488_v39 = vadd.f32 %v1487_v59, %v1486_v30  ;;  %v1489_v9 = vsel %vm1388_vm0, %v4600_v2, 0.0 }
  0xdc   : > { %v4944_v35 = vmul.f32 %v4506_v28, %v7126_v51  ;;  %v1401_v6 = vadd.f32 %v1400_v11, %v1399_v22  ;;  %v1402_v53 = vsel %vm1388_vm0, %v4655_v54, 0.0  ;;  %v1404_v46 = vsel %vm1388_vm0, %v4683_v34, 0.0 }
  0xdd   : > { %v1406_v61 = vsel %vm1388_vm0, %v4711_v49, 0.0  ;;  %v1408_v52 = vsel %vm1388_vm0, %v4742_v29, 0.0  ;;  %v1432_v19 = vadd.f32 %v1431_v5, %v1430_v40  ;;  %v1433_v2 = vsel %vm1388_vm0, %v4659_v55, 0.0 }
  0xde   : > { %v1461_v17 = vadd.f32 %v1460_v8, %v1459_v41  ;;  %v1490_v59 = vadd.f32 %v1489_v9, %v1488_v39  ;;  %v1513_v22 = vsel %vm1388_vm0, %v4521_v38, 0.0  ;;  %v1514_v54 = vsel %vm1388_vm0, %v4540_v0, 0.0 }
  0xdf   : > { %v4962_v34 = vsel %vm1388_vm0, %v4772_v12, 0.0  ;;  %v1462_v49 = vsel %vm1388_vm0, %v4639_v31, 0.0  ;;  %v1491_v29 = vsel %vm1388_vm0, %v4621_v25, 0.0  ;;  %v1516_v55 = vsel %vm1388_vm0, %v4561_v23, 0.0 }
  0xe0   : > { %v1403_v47 = vadd.f32 %v1402_v53, %v1401_v6  ;;  %v4972_v38 = vsel %vm1388_vm0, %v4806_v44, 0.0  ;;  %v4976_v0 = vsel %vm1388_vm0, %v4838_v3, 0.0  ;;  %v1515_v12 = vadd.f32 %v1514_v54, %v1513_v22  ;;  %v7128_v6 = vld [vmem:[#allocation46_spill] sm:$0xff]  ;;  %v7132_v54 = vld [vmem:[#allocation68_spill] sm:$0xff] }
  0xe1   : > { %v4979_v11 = vsel %vm1388_vm0, %v1374_v16, 0.0  ;;  %v4982_v31 = vsel %vm1388_vm0, %v1381_v20, 0.0  ;;  %v1434_v25 = vadd.f32 %v1433_v2, %v1432_v19  ;;  %v1518_v23 = vsel %vm1388_vm0, %v4582_v60, 0.0  ;;  %v7130_v19 = vld [vmem:[#allocation85_spill] sm:$0xff] }
  0xe2   : > { %v1435_v40 = vsel %vm1388_vm0, %v4687_v4, 0.0  ;;  %v1463_v44 = vadd.f32 %v1462_v49, %v1461_v17  ;;  %v1492_v30 = vadd.f32 %v1491_v29, %v1490_v59  ;;  %v1517_v21 = vadd.f32 %v1516_v55, %v1515_v12  ;;  %v7131_v2 = vld [vmem:[#allocation77_spill] sm:$0xff] }
  0xe3   : > { %v1437_v3 = vsel %vm1388_vm0, %v4715_v13, 0.0  ;;  %v1464_v16 = vsel %vm1388_vm0, %v4663_v56, 0.0  ;;  %v1493_v20 = vsel %vm1388_vm0, %v4642_v14, 0.0  ;;  %v1520_v5 = vsel %vm1388_vm0, %v4603_v24, 0.0  ;;  %v7127_v24 = vld [vmem:[#allocation28_spill] sm:$0xff]  ;;  %v7133_v49 = vld [vmem:[#allocation69_spill] sm:$0xff] }
  0xe4   : > { %v1405_v41 = vadd.f32 %v1404_v46, %v1403_v47  ;;  %v1439_v60 = vsel %vm1388_vm0, %v4746_v36, 0.0  ;;  %v5000_v4 = vsel %vm1388_vm0, %v4780_v10, 0.0  ;;  %v1519_v8 = vadd.f32 %v1518_v23, %v1517_v21  ;;  %v7129_v46 = vld [vmem:[#allocation72_spill] sm:$0xff]  ;;  %v7134_v47 = vld [vmem:[#allocation47_spill] sm:$0xff] }
  0xe5   : > { %v1436_v13 = vadd.f32 %v1435_v40, %v1434_v25  ;;  %v5004_v56 = vsel %vm1388_vm0, %v4812_v26, 0.0  ;;  %v5008_v14 = vsel %vm1388_vm0, %v4848_v50, 0.0  ;;  %v1522_v39 = vsel %vm1388_vm0, %v7127_v24, 0.0  ;;  %v7135_v25 = vld [vmem:[#allocation2_spill] sm:$0xff] }
  0xe6   : > { %v5014_v36 = vsel %vm1388_vm0, %v4880_v1, 0.0  ;;  %v1465_v10 = vadd.f32 %v1464_v16, %v1463_v44  ;;  %v1494_v9 = vadd.f32 %v1493_v20, %v1492_v30  ;;  %v1521_v51 = vadd.f32 %v1520_v5, %v1519_v8  ;;  %v7136_v16 = vld [vmem:[#allocation43_spill] sm:$0xff]  ;;  %v7137_v20 = vld [vmem:[#allocation30_spill] sm:$0xff] }
  0xe7   : > { %v1466_v53 = vsel %vm1388_vm0, %v7128_v6, 0.0  ;;  %v1495_v26 = vsel %vm1388_vm0, %v7129_v46, 0.0  ;;  %v1524_v50 = vsel %vm1388_vm0, %v7130_v19, 0.0  ;;  %v1544_v17 = vsel %vm1388_vm0, %v7131_v2, 0.0  ;;  %v7141_v46 = vld [vmem:[#allocation5_spill] sm:$0xff]  ;;  %v7142_v19 = vld [vmem:[#allocation48_spill] sm:$0xff] }
  0xe8   : > { %v1407_v59 = vadd.f32 %v1406_v61, %v1405_v41  ;;  %v1523_v22 = vadd.f32 %v1522_v39, %v1521_v51  ;;  %v1545_v1 = vsel %vm1388_vm0, %v7132_v54, 0.0  ;;  %v1547_v29 = vsel %vm1388_vm0, %v7133_v49, 0.0  ;;  %v7138_v41 = vld [vmem:[#allocation88_spill] sm:$0xff] }
  0xe9   : > { %v1438_v55 = vadd.f32 %v1437_v3, %v1436_v13  ;;  %v1468_v12 = vsel %vm1388_vm0, %v7134_v47, 0.0  ;;  %v1526_v23 = vsel %vm1388_vm0, %v7135_v25, 0.0  ;;  %v1546_v40 = vadd.f32 %v1545_v1, %v1544_v17  ;;  %v7139_v3 = vld [vmem:[#allocation29_spill] sm:$0xff]  ;;  %v7143_v1 = vld [vmem:[#allocation71_spill] sm:$0xff] }
  0xea   : > { %v1467_v44 = vadd.f32 %v1466_v53, %v1465_v10  ;;  %v1496_v30 = vadd.f32 %v1495_v26, %v1494_v9  ;;  %v1525_v21 = vadd.f32 %v1524_v50, %v1523_v22  ;;  %v1549_v61 = vsel %vm1388_vm0, %v7136_v16, 0.0  ;;  %v7140_v9 = vld [vmem:[#allocation27_spill] sm:$0xff] }
  0xeb   : > { %v1470_v5 = vsel %vm1388_vm0, %v7137_v20, 0.0  ;;  %v1497_v8 = vsel %vm1388_vm0, %v7138_v41, 0.0  ;;  %v1528_v13 = vsel %vm1388_vm0, %v7139_v3, 0.0  ;;  %v1548_v24 = vadd.f32 %v1547_v29, %v1546_v40  ;;  %v7145_v29 = vld [vmem:[#allocation25_spill] sm:$0xff] }
  0xec   : > { %v1409_v39 = vadd.f32 %v1408_v52, %v1407_v59  ;;  %v1472_v51 = vsel %vm1388_vm0, %v4784_v33, 0.0  ;;  %v1527_v10 = vadd.f32 %v1526_v23, %v1525_v21  ;;  %v1551_v6 = vsel %vm1388_vm0, %v7140_v9, 0.0  ;;  %v7144_v59 = vld [vmem:[#allocation31_spill] sm:$0xff]  ;;  %v7147_v23 = vld [vmem:[#allocation86_spill] sm:$0xff] }
  0xed   : > { %v1440_v53 = vadd.f32 %v1439_v60, %v1438_v55  ;;  %v1499_v26 = vsel %vm1388_vm0, %v7141_v46, 0.0  ;;  %v1530_v50 = vsel %vm1388_vm0, %v7142_v19, 0.0  ;;  %v1550_v2 = vadd.f32 %v1549_v61, %v1548_v24  ;;  %v7146_v55 = vld [vmem:[#allocation26_spill] sm:$0xff]  ;;  %v7150_v61 = vld [vmem:[#allocation8_spill] sm:$0xff] }
  0xee   : > { %v1469_v17 = vadd.f32 %v1468_v12, %v1467_v44  ;;  %v1498_v22 = vadd.f32 %v1497_v8, %v1496_v30  ;;  %v1529_v54 = vadd.f32 %v1528_v13, %v1527_v10  ;;  %v1553_v52 = vsel %vm1388_vm0, %v7143_v1, 0.0  ;;  %v7148_v44 = vld [vmem:[#allocation42_spill] sm:$0xff]  ;;  %v7151_v8 = vld [vmem:[#allocation84_spill] sm:$0xff]  ;;  %v7152_v10 = vld [vmem:[#allocation45_spill] sm:$0xff] }
  0xef   : > { %v1532_v33 = vsel %vm1388_vm0, %v7144_v59, 0.0  ;;  %v1552_v49 = vadd.f32 %v1551_v6, %v1550_v2  ;;  %v1576_v60 = vsel %vm1575_vm1, %v7145_v29, 0.0  ;;  %v1577_v47 = vsel %vm1575_vm1, %v7146_v55, 0.0  ;;  %v7149_v21 = vld [vmem:[#allocation74_spill] sm:$0xff] }
  0xf0   : > { %v1531_v25 = vadd.f32 %v1530_v50, %v1529_v54  ;;  %v1555_v40 = vsel %vm1388_vm0, %v7147_v23, 0.0  ;;  %v1578_v12 = vadd.f32 %v1577_v47, %v1576_v60  ;;  %v1579_v30 = vsel %vm1575_vm1, %v7148_v44, 0.0  ;;  %v7153_v2 = vld [vmem:[#allocation70_spill] sm:$0xff]  ;;  %v7159_v44 = vld [vmem:[#allocation75_spill] sm:$0xff] }
  0xf1   : > { %v1501_v16 = vsel %vm1388_vm0, %v7149_v21, 0.0  ;;  %v1534_v20 = vsel %vm1388_vm0, %v7150_v61, 0.0  ;;  %v1554_v41 = vadd.f32 %v1553_v52, %v1552_v49  ;;  %v1581_v3 = vsel %vm1575_vm1, %v7151_v8, 0.0  ;;  %v7154_v52 = vld [vmem:[#allocation73_spill] sm:$0xff]  ;;  %v7161_v8 = vld [vmem:[#allocation76_spill] sm:$0xff] }
  0xf2   : > { %v1500_v13 = vadd.f32 %v1499_v26, %v1498_v22  ;;  %v1533_v24 = vadd.f32 %v1532_v33, %v1531_v25  ;;  %v1557_v9 = vsel %vm1388_vm0, %v7152_v10, 0.0  ;;  %v1580_v6 = vadd.f32 %v1579_v30, %v1578_v12 }
  0xf3   : > { %v1411_v46 = vadd.f32 %v4962_v34, %v1409_v39  ;;  %v1471_v19 = vadd.f32 %v1470_v5, %v1469_v17  ;;  %v1556_v50 = vadd.f32 %v1555_v40, %v1554_v41  ;;  %v1583_v54 = vsel %vm1575_vm1, %v7153_v2, 0.0  ;;  %v7155_v34 = vld [vmem:[#allocation44_spill] sm:$0xff]  ;;  %v7156_v17 = vld [vmem:[#allocation50_spill] sm:$0xff] }
  0xf4   : > { %v1442_v1 = vadd.f32 %v5000_v4, %v1440_v53  ;;  %v1535_v59 = vadd.f32 %v1534_v20, %v1533_v24  ;;  %v1559_v49 = vsel %vm1388_vm0, %v7154_v52, 0.0  ;;  %v1582_v29 = vadd.f32 %v1581_v3, %v1580_v6  ;;  %v7157_v4 = vld [vmem:[#allocation6_spill] sm:$0xff] }
  0xf5   : > { %v1474_v26 = vsel %vm1388_vm0, %v4816_v37, 0.0  ;;  %v1536_v22 = vsel %vm1388_vm0, %v4826_v18, 0.0  ;;  %v1558_v33 = vadd.f32 %v1557_v9, %v1556_v50  ;;  %v1585_v5 = vsel %vm1575_vm1, %v7155_v34, 0.0  ;;  %v7158_v37 = vld [vmem:[#allocation87_spill] sm:$0xff]  ;;  %v7164_v50 = vld [vmem:[#allocation9_spill] sm:$0xff] }
  0xf6   : > { %v1502_v39 = vadd.f32 %v1501_v16, %v1500_v13  ;;  %v1503_v60 = vsel %vm1388_vm0, %v7156_v17, 0.0  ;;  %v1561_v53 = vsel %vm1388_vm0, %v7157_v4, 0.0  ;;  %v1584_v55 = vadd.f32 %v1583_v54, %v1582_v29 }
  0xf7   : > { %v1413_v47 = vadd.f32 %v4972_v38, %v1411_v46  ;;  %v1473_v25 = vadd.f32 %v1472_v51, %v1471_v19  ;;  %v1560_v23 = vadd.f32 %v1559_v49, %v1558_v33  ;;  %v1587_v40 = vsel %vm1575_vm1, %v7158_v37, 0.0  ;;  %v7160_v38 = vld [vmem:[#allocation3_spill] sm:$0xff] }
  0xf8   : > { %v1444_v18 = vadd.f32 %v5004_v56, %v1442_v1  ;;  %v1537_v12 = vadd.f32 %v1536_v22, %v1535_v59  ;;  %v1563_v30 = vsel %vm1388_vm0, %v7159_v44, 0.0  ;;  %v1586_v21 = vadd.f32 %v1585_v5, %v1584_v55  ;;  %v7162_v56 = vld [vmem:[#allocation51_spill] sm:$0xff] }
  0xf9   : > { %v1476_v16 = vsel %vm1388_vm0, %v4854_v32, 0.0  ;;  %v1538_v61 = vsel %vm1388_vm0, %v4862_v27, 0.0  ;;  %v1562_v20 = vadd.f32 %v1561_v53, %v1560_v23  ;;  %v1589_v51 = vsel %vm1575_vm1, %v7160_v38, 0.0  ;;  %v7163_v32 = vld [vmem:[#allocation4_spill] sm:$0xff]  ;;  %v7171_v38 = vld [vmem:[#allocation67_spill] sm:$0xff] }
  0xfa   : > { %v1504_v41 = vadd.f32 %v1503_v60, %v1502_v39  ;;  %v1505_v3 = vsel %vm1388_vm0, %v7161_v8, 0.0  ;;  %v1565_v13 = vsel %vm1388_vm0, %v7162_v56, 0.0  ;;  %v1588_v24 = vadd.f32 %v1587_v40, %v1586_v21 }
  0xfb   : > { %v1415_v10 = vadd.f32 %v4976_v0, %v1413_v47  ;;  %v1475_v9 = vadd.f32 %v1474_v26, %v1473_v25  ;;  %v1564_v6 = vadd.f32 %v1563_v30, %v1562_v20  ;;  %v1591_v46 = vsel %vm1575_vm1, %v7163_v32, 0.0  ;;  %v7165_v0 = vld [vmem:[#allocation49_spill] sm:$0xff]  ;;  %v7166_v26 = vld [vmem:[#allocation10_spill] sm:$0xff] }
  0xfc   : > { %v1446_v27 = vadd.f32 %v5008_v14, %v1444_v18  ;;  %v1539_v19 = vadd.f32 %v1538_v61, %v1537_v12  ;;  %v1567_v2 = vsel %vm1388_vm0, %v7164_v50, 0.0  ;;  %v1590_v54 = vadd.f32 %v1589_v51, %v1588_v24  ;;  %v7167_v14 = vld [vmem:[#allocation53_spill] sm:$0xff] }
  0xfd   : > { %v1478_v1 = vsel %vm1388_vm0, %v4884_v45, 0.0  ;;  %v1540_v59 = vsel %vm1388_vm0, %v4902_v48, 0.0  ;;  %v1566_v52 = vadd.f32 %v1565_v13, %v1564_v6  ;;  %v1593_v49 = vsel %vm1575_vm1, %v7165_v0, 0.0  ;;  %v7168_v45 = vld [vmem:[#allocation7_spill] sm:$0xff] }
  0xfe   : > { %v1506_v29 = vadd.f32 %v1505_v3, %v1504_v41  ;;  %v1507_v22 = vsel %vm1388_vm0, %v7166_v26, 0.0  ;;  %v1569_v33 = vsel %vm1388_vm0, %v7167_v14, 0.0  ;;  %v1592_v34 = vadd.f32 %v1591_v46, %v1590_v54 }
  0xff   : > { %v1417_v5 = vadd.f32 %v4979_v11, %v1415_v10  ;;  %v1477_v39 = vadd.f32 %v1476_v16, %v1475_v9  ;;  %v1568_v17 = vadd.f32 %v1567_v2, %v1566_v52  ;;  %v1595_v60 = vsel %vm1575_vm1, %v7168_v45, 0.0  ;;  %v7169_v11 = vld [vmem:[#allocation32_spill] sm:$0xff] }
 0x100   : > { %v1448_v48 = vadd.f32 %v5014_v36, %v1446_v27  ;;  %v1541_v4 = vadd.f32 %v1540_v59, %v1539_v19  ;;  %v1571_v53 = vsel %vm1388_vm0, %v4906_v63, 0.0  ;;  %v1594_v55 = vadd.f32 %v1593_v49, %v1592_v34 }
 0x101   : > { %v1449_v47 = vsel %vm1388_vm0, %v4920_v7, 0.0  ;;  %v1542_v25 = vsel %vm1388_vm0, %v4936_v58, 0.0  ;;  %v1570_v23 = vadd.f32 %v1569_v33, %v1568_v17  ;;  %v1597_v37 = vsel %vm1575_vm1, %v7169_v11, 0.0  ;;  %v7170_v7 = vld [vmem:[#allocation52_spill] sm:$0xff] }
 0x102   : > { %v1508_v40 = vadd.f32 %v1507_v22, %v1506_v29  ;;  %v1509_v18 = vsel %vm1388_vm0, %v4888_v62, 0.0  ;;  %v1573_v36 = vsel %vm1388_vm0, %v4944_v35, 0.0  ;;  %v1596_v12 = vadd.f32 %v1595_v60, %v1594_v55 }
 0x103   : > { %v1419_v63 = vadd.f32 %v4982_v31, %v1417_v5  ;;  %v1479_v44 = vadd.f32 %v1478_v1, %v1477_v39  ;;  %v1572_v30 = vadd.f32 %v1571_v53, %v1570_v23  ;;  %v1599_v21 = vsel %vm1575_vm1, %v7170_v7, 0.0 }
 0x104   : > { %v1450_v58 = vadd.f32 %v1449_v47, %v1448_v48  ;;  %v1480_v16 = vsel %vm1388_vm0, %v4926_v15, 0.0  ;;  %v1543_v61 = vadd.f32 %v1542_v25, %v1541_v4  ;;  %v1598_v20 = vadd.f32 %v1597_v37, %v1596_v12 }
 0x105   : > { %v1387_v62 = vmul.f32 %v4506_v28, %v7171_v38  ;;  %v1574_v51 = vadd.f32 %v1573_v36, %v1572_v30  ;;  %v1601_v35 = vsel %vm1575_vm1, %v4872_v43, 0.0  ;;  %v1510_v41 = vadd.f32 %v1509_v18, %v1508_v40  ;;  %v5190_v38 = vld [vmem:[%s5178_s5 + $0x8] sm:$0xff]  }
 0x106   : > { %v1600_v31 = vadd.f32 %v1599_v21, %v1598_v20  ;;  %v1481_v8 = vadd.f32 %v1480_v16, %v1479_v44  ;;  %v1511_v3 = vsel %vm1388_vm0, %v4930_v57, 0.0  ;;  %v1603_v56 = vsel %vm1575_vm1, %v4912_v42, 0.0  ;;  %v5187_v20 = vld [vmem:[%s5178_s5] sm:$0xff]  }
 0x107   : > { %v1607_v15 = vsel %vm1388_vm0, %v1419_v63, -inf  ;;  %v1608_v24 = vsel %vm1388_vm0, %v1450_v58, -inf  ;;  %v1611_v28 = vsel %vm1388_vm0, %v1543_v61, -inf  ;;  %v1613_v10 = vsel %vm1388_vm0, %v1574_v51, -inf }
 0x108   : > { %v1602_v13 = vadd.f32 %v1601_v35, %v1600_v31  ;;  %v1605_v43 = vsel %vm1575_vm1, %v1387_v62, 0.0  ;;  %v1512_v9 = vadd.f32 %v1511_v3, %v1510_v41  ;;  %v1612_v32 = vmax.f32 %v1607_v15, %v1611_v28  ;;  %v5198_v41 = vld [vmem:[%s5178_s5 + $0x20] sm:$0xff]   ;;  %v5201_v31 = vld [vmem:[%s5178_s5 + $0x28] sm:$0xff]   ;;  %v5425_v28 = vld [vmem:[%s5178_s5 + $0xdc] sm:$0x1] }
 0x109   : > { %v1614_v46 = vmax.f32 %v1608_v24, %v1613_v10  ;;  %v1609_v57 = vsel %vm1388_vm0, %v1481_v8, -inf  ;;  %v5210_v24 = vld [vmem:[%s5178_s5 + $0x40] sm:$0xff]  }
 0x10a   : > { %v1604_v6 = vadd.f32 %v1603_v56, %v1602_v13  ;;  %v1610_v42 = vsel %vm1388_vm0, %v1512_v9, -inf  ;;  %v5207_v13 = vld [vmem:[%s5178_s5 + $0x38] sm:$0xff]   ;;  %v5454_v56 = vld [vmem:[%s5178_s5 + $0x168] sm:$0x1] }
 0x10b   : > { %v1617_v2 = vmax.f32 %v1612_v32, %v1614_v46  ;;  %v5412_v46 = vld [vmem:[%s5178_s5 + $0xa4] sm:$0x1] }
 0x10c   : > { %v1606_v27 = vadd.f32 %v1605_v43, %v1604_v6  ;;  %v5219_v6 = vld [vmem:[%s5178_s5 + $0x58] sm:$0xff]   ;;  %v5405_v43 = vld [vmem:[%s5178_s5 + $0x8c] ss:$20 sps:$4 sm:$0xff]  }
 0x10d   : > { %v5418_v15 = vld [vmem:[%s5178_s5 + $0xc4] ss:$20 sps:$4 sm:$0xff]  }
 0x10e   : > { %v1615_v19 = vsel %vm1575_vm1, %v1606_v27, -inf }
 0x10f   : > { %v1616_v50 = vmax.f32 %v1609_v57, %v1615_v19  ;;  %v5226_v19 = vld [vmem:[%s5178_s5 + $0x60] sm:$0xff]   ;;  %v5392_v57 = vld [vmem:[%s5178_s5 + $0x54] ss:$20 sps:$4 sm:$0xff]  }
 0x111   : > { %v1618_v54 = vmax.f32 %v1616_v50, %v1610_v42  ;;  %v5389_v42 = vld [vmem:[%s5178_s5 + $0x50] sm:$0x1]  ;;  %v5428_v50 = vld [vmem:[%s5178_s5 + $0xf8] sm:$0x1] }
 0x113   : > { %v1619_v1 = vmax.f32 %v1617_v2, %v1618_v54  ;;  %v5379_v2 = vld [vmem:[%s5178_s5 + $0x1c] ss:$20 sps:$4 sm:$0xff]   ;;  %v5386_v54 = vld [vmem:[%s5178_s5 + $0x34] sm:$0x1] }
 0x114   : > { %v655_v10 = vunpack.c.l.bf16 %v5379_v2 }
 0x115   : > { %v1620_v59 = vrot.slane %v1619_v1, 4 }
 0x117   : > { %v1621_v52 = vmax.f32 %v1619_v1, %v1620_v59  ;;  %v5232_v1 = vld [vmem:[%s5178_s5 + $0x70] sm:$0xff]   ;;  %v5235_v59 = vld [vmem:[%s5178_s5 + $0x78] sm:$0xff]  }
 0x119   : > { %v1622_v0 = vrot.slane %v1621_v52, 2 }
 0x11b   : > { %v1623_v49 = vmax.f32 %v1621_v52, %v1622_v0  ;;  %v5415_v0 = vld [vmem:[%s5178_s5 + $0xc0] sm:$0x1] }
 0x11d   : > { %v1624_v29 = vrot.slane %v1623_v49, 1 }
 0x11f   : > { %v1625_v26 = vmax.f32 %v1623_v49, %v1624_v29  ;;  %v5360_v49 = vld [vmem:[%s5178_s5 + $0x190] sm:$0xff]   ;;  %v5402_v29 = vld [vmem:[%s5178_s5 + $0x88] sm:$0x1] }
 0x120   : > { %7184 = vst [vmem:[#allocation14_spill] sm:$0xff] %v5360_v49  ;;  %v5451_v49 = vld [vmem:[%s5178_s5 + $0x14c] sm:$0x1] }
 0x121   : > { %v1626_v22 = vsub.f32 %v1419_v63, %v1625_v26  ;;  %v1627_v14 = vsub.f32 %v1450_v58, %v1625_v26  ;;  %v1628_v33 = vsub.f32 %v1481_v8, %v1625_v26  ;;  %v1629_v34 = vsub.f32 %v1512_v9, %v1625_v26  ;;  %v5216_v9 = vld [vmem:[%s5178_s5 + $0x48] sm:$0xff]  }
 0x122   : > { %v1630_v5 = vsub.f32 %v1543_v61, %v1625_v26  ;;  %v1631_v39 = vsub.f32 %v1574_v51, %v1625_v26  ;;  %v1632_v48 = vsub.f32 %v1606_v27, %v1625_v26  ;;  %v5193_v51 = vld [vmem:[%s5178_s5 + $0x10] sm:$0xff]   ;;  %v5350_v26 = vld [vmem:[%s5178_s5 + $0x178] sm:$0xff]  }
 0x123   : > { %v1633_v17 = vmul.f32 1.442695, %v1626_v22  ;;  %v1635_v45 = vmul.f32 1.442695, %v1627_v14  ;;  %v1637_v60 = vmul.f32 1.442695, %v1628_v33 }
 0x124   : > { %v1639_v4 = vmul.f32 1.442695, %v1629_v34  ;;  %v1641_v53 = vmul.f32 1.442695, %v1630_v5  ;;  %v1643_v55 = vmul.f32 1.442695, %v1631_v39 }
 0x125   : > { %2909 = vpow2.f32 %v1633_v17  ;;  %v1645_v47 = vmul.f32 1.442695, %v1632_v48  ;;  %v5242_v22 = vld [vmem:[%s5178_s5 + $0x80] sm:$0xff]   ;;  %v5245_v14 = vld [vmem:[%s5178_s5 + $0x90] sm:$0xff]   ;;  %v5251_v39 = vld [vmem:[%s5178_s5 + $0x98] sm:$0xff]   ;;  %7182 = vst [vmem:[#allocation35_spill] sm:$0xff] %v5350_v26 }
 0x126   : > { %2911 = vpow2.f32 %v1635_v45  ;;  %v5254_v17 = vld [vmem:[%s5178_s5 + $0xa8] sm:$0xff]   ;;  %v5331_v33 = vld [vmem:[%s5178_s5 + $0x150] sm:$0xff]   ;;  %v5334_v48 = vld [vmem:[%s5178_s5 + $0x158] sm:$0xff]  }
 0x127   : > { %2913 = vpow2.f32 %v1637_v60  ;;  %v5321_v60 = vld [vmem:[%s5178_s5 + $0x138] sm:$0xff]   ;;  %7178 = vst [vmem:[#allocation12_spill] sm:$0xff] %v5331_v33  ;;  %7179 = vst [vmem:[#allocation55_spill] sm:$0xff] %v5334_v48  ;;  %v5373_v34 = vld [vmem:[%s5178_s5 + $0x1b0] sm:$0xff]  }
 0x128   : > { %2915 = vpow2.f32 %v1639_v4  ;;  %v5312_v4 = vld [vmem:[%s5178_s5 + $0x120] sm:$0xff]   ;;  %7176 = vst [vmem:[#allocation34_spill] sm:$0xff] %v5321_v60  ;;  %7187 = vst [vmem:[#allocation58_spill] sm:$0xff] %v5373_v34  ;;  %v5438_v34 = vld [vmem:[%s5178_s5 + $0x114] sm:$0x1] }
 0x129   : > { %2917 = vpow2.f32 %v1641_v53  ;;  %7174 = vst [vmem:[#allocation33_spill] sm:$0xff] %v5312_v4  ;;  %v5444_v27 = vld [vmem:[%s5178_s5 + $0x134] ss:$20 sps:$4 sm:$0xff]  }
 0x12a   : > { %2919 = vpow2.f32 %v1643_v55  ;;  %v5261_v55 = vld [vmem:[%s5178_s5 + $0xb0] sm:$0xff]   ;;  %7188 = vst [vmem:[#allocation16_spill] sm:$0xff] %v5444_v27 }
 0x12b   : > { %2921 = vpow2.f32 %v1645_v47  ;;  %v5324_v47 = vld [vmem:[%s5178_s5 + $0x140] sm:$0xff]  }
 0x12c   : > { %7177 = vst [vmem:[#allocation79_spill] sm:$0xff] %v5324_v47  ;;  %v7191_v47 = vunpack.c.l.bf16 %v5187_v20 }
 0x132   : > { %v5153_v25 = vpop.eup %2909 }
 0x133   : > { %v5155_v23 = vpop.eup %2911  ;;  %v1647_v11 = vsel %vm1388_vm0, %v5153_v25, 0.0 }
 0x134   : > { %v5159_v37 = vpop.eup %2913  ;;  %v1648_v40 = vsel %vm1388_vm0, %v5155_v23, 0.0 }
 0x135   : > { %v5163_v18 = vpop.eup %2915  ;;  %v1649_v36 = vadd.f32 %v1648_v40, %v1647_v11  ;;  %v1650_v12 = vsel %vm1388_vm0, %v5159_v37, 0.0  ;;  %v5289_v40 = vld [vmem:[%s5178_s5 + $0xf0] sm:$0xff]   ;;  %v5363_v11 = vld [vmem:[%s5178_s5 + $0x198] sm:$0xff]  }
 0x136   : > { %v5167_v63 = vpop.eup %2917  ;;  %v1652_v44 = vsel %vm1388_vm0, %v5163_v18, 0.0  ;;  %7185 = vst [vmem:[#allocation57_spill] sm:$0xff] %v5363_v11  ;;  %v661_v11 = vunpack.c.l.bf16 %v5386_v54  ;;  %v5481_v54 = vld [vmem:[%s5178_s5 + $0x1bc] sm:$0x1] }
 0x137   : > { %v5171_v30 = vpop.eup %2919  ;;  %v1651_v7 = vadd.f32 %v1650_v12, %v1649_v36  ;;  %v1654_v21 = vsel %vm1388_vm0, %v5167_v63, 0.0  ;;  %v5267_v36 = vld [vmem:[%s5178_s5 + $0xb8] sm:$0xff]   ;;  %v5270_v12 = vld [vmem:[%s5178_s5 + $0xc8] sm:$0xff]   ;;  %7190 = vst [vmem:[#allocation36_spill] sm:$0xff] %v5481_v54 }
 0x138   : > { %v5182_v58 = vpop.eup %2921  ;;  %v1656_v61 = vsel %vm1388_vm0, %v5171_v30, 0.0 }
 0x139   : > { %v1653_v16 = vadd.f32 %v1652_v44, %v1651_v7  ;;  %v1658_v35 = vsel %vm1575_vm1, %v5182_v58, 0.0  ;;  %v5286_v7 = vld [vmem:[%s5178_s5 + $0xe8] sm:$0xff]  }
 0x13b   : > { %v1655_v62 = vadd.f32 %v1654_v21, %v1653_v16  ;;  %v5399_v16 = vld [vmem:[%s5178_s5 + $0x6c] sm:$0x1] }
 0x13d   : > { %v1657_v8 = vadd.f32 %v1656_v61, %v1655_v62  ;;  %v5277_v62 = vld [vmem:[%s5178_s5 + $0xd0] sm:$0xff]   ;;  %v5305_v61 = vld [vmem:[%s5178_s5 + $0x118] sm:$0xff]  }
 0x13e   : > { %7173 = vst [vmem:[#allocation54_spill] sm:$0xff] %v5305_v61 }
 0x13f   : > { %v1659_v32 = vadd.f32 %v1658_v35, %v1657_v8  ;;  %v5280_v35 = vld [vmem:[%s5178_s5 + $0xe0] sm:$0xff]  }
 0x140   : > { %v5296_v8 = vld [vmem:[%s5178_s5 + $0x100] sm:$0xff]  }
 0x141   : > { %v1660_v52 = vrot.slane %v1659_v32, 4 }
 0x143   : > { %v1661_v45 = vadd.f32 %v1660_v52, %v1659_v32  ;;  %v5315_v32 = vld [vmem:[%s5178_s5 + $0x128] sm:$0xff]   ;;  %v5343_v52 = vld [vmem:[%s5178_s5 + $0x170] sm:$0xff]  }
 0x144   : > { %7175 = vst [vmem:[#allocation78_spill] sm:$0xff] %v5315_v32  ;;  %7181 = vst [vmem:[#allocation56_spill] sm:$0xff] %v5343_v52  ;;  %v5468_v32 = vld [vmem:[%s5178_s5 + $0x184] sm:$0x1]  ;;  %v5475_v52 = vld [vmem:[%s5178_s5 + $0x1a0] sm:$0x1] }
 0x145   : > { %v1662_v44 = vrot.slane %v1661_v45, 2  ;;  %7189 = vst [vmem:[#allocation59_spill] sm:$0xff] %v5468_v32 }
 0x147   : > { %v1663_v21 = vadd.f32 %v1662_v44, %v1661_v45  ;;  %v5302_v44 = vld [vmem:[%s5178_s5 + $0x108] sm:$0xff]   ;;  %v5376_v45 = vld [vmem:[%s5178_s5 + $0x18] sm:$0x1] }
 0x148   : > { %7172 = vst [vmem:[#allocation11_spill] sm:$0xff] %v5302_v44  ;;  %v654_v3 = vunpack.c.l.bf16 %v5376_v45  ;;  %v5457_v45 = vld [vmem:[%s5178_s5 + $0x16c] ss:$20 sps:$4 sm:$0xff]  }
 0x149   : > { %v1664_v53 = vrot.slane %v1663_v21, 1 }
 0x14b   : > { %v1665_v5 = vadd.f32 %v1664_v53, %v1663_v21  ;;  %v5340_v21 = vld [vmem:[%s5178_s5 + $0x160] sm:$0xff]   ;;  %v5353_v53 = vld [vmem:[%s5178_s5 + $0x188] sm:$0xff]  }
 0x14c   : > { %7180 = vst [vmem:[#allocation13_spill] sm:$0xff] %v5340_v21  ;;  %7183 = vst [vmem:[#allocation80_spill] sm:$0xff] %v5353_v53  ;;  %v5441_v53 = vld [vmem:[%s5178_s5 + $0x130] sm:$0x1]  ;;  %v5478_v21 = vld [vmem:[%s5178_s5 + $0x1a4] ss:$20 sps:$4 sm:$0xff]  }
 0x14d   : > { %2923 = vrcp.f32 %v1665_v5  ;;  %v5370_v5 = vld [vmem:[%s5178_s5 + $0x1a8] sm:$0xff]  }
 0x14e   : > { %7186 = vst [vmem:[#allocation15_spill] sm:$0xff] %v5370_v5  ;;  %v5431_v5 = vld [vmem:[%s5178_s5 + $0xfc] ss:$20 sps:$4 sm:$0xff]  }
 0x15a   : > { %v2924_v61 = vpop.eup %2923 }
 0x15b   : > { %v5488_v48 = vmul.f32 %v2924_v61, %v5153_v25  ;;  %v5491_v26 = vmul.f32 %v2924_v61, %v5155_v23  ;;  %v5494_v33 = vmul.f32 %v2924_v61, %v5159_v37  ;;  %v5497_v27 = vmul.f32 %v2924_v61, %v5163_v18 }
 0x15c   : > { %v5501_v60 = vmul.f32 %v2924_v61, %v5167_v63  ;;  %v5504_v44 = vmul.f32 %v2924_v61, %v5171_v30  ;;  %v5507_v25 = vmul.f32 %v2924_v61, %v5182_v58  ;;  %v7192_v63 = vunpack.c.h.bf16 %v5187_v20 }
 0x15d   : > { %v5516_v32 = vmul.f32 %v7191_v47, %v5488_v48  ;;  %v7193_v58 = vunpack.c.l.bf16 %v5190_v38  ;;  %v7194_v37 = vunpack.c.h.bf16 %v5190_v38  ;;  %v7195_v18 = vunpack.c.l.bf16 %v5193_v51 }
 0x15e   : > { %v5521_v30 = vmul.f32 %v7192_v63, %v5491_v26  ;;  %v7196_v20 = vunpack.c.h.bf16 %v5193_v51  ;;  %v5544_v23 = vmul.f32 %v5507_v25, %v654_v3  ;;  %v7198_v38 = vunpack.c.l.bf16 %v5198_v41 }
 0x15f   : > { %v5526_v61 = vmul.f32 %v7193_v58, %v5494_v33  ;;  %v5531_v4 = vmul.f32 %v7194_v37, %v5497_v27  ;;  %v5536_v47 = vmul.f32 %v7195_v18, %v5501_v60  ;;  %v5547_v58 = vmul.f32 %v5488_v48, %v655_v10 }
 0x160   : > { %v5541_v63 = vmul.f32 %v7196_v20, %v5504_v44  ;;  %7197 = vst [vmem:[#allocation81_spill] sm:$0xff] %v5544_v23  ;;  %v5552_v37 = vmul.f32 %v7198_v38, %v5491_v26  ;;  %v7200_v18 = vunpack.c.h.bf16 %v5198_v41  ;;  %v7201_v51 = vunpack.c.l.bf16 %v5201_v31 }
 0x161   : > { %v7203_v3 = vunpack.c.h.bf16 %v5201_v31  ;;  %v7204_v23 = vunpack.c.h.bf16 %v5379_v2  ;;  %v7207_v41 = vunpack.c.l.bf16 %v5207_v13  ;;  %v7209_v31 = vunpack.c.l.bf16 %v5210_v24 }
 0x162   : > { %7199 = vst [vmem:[#allocation37_spill] sm:$0xff] %v5552_v37  ;;  %v5557_v54 = vmul.f32 %v7200_v18, %v5494_v33  ;;  %v5562_v20 = vmul.f32 %v7201_v51, %v5497_v27  ;;  %v5575_v37 = vmul.f32 %v5507_v25, %v661_v11  ;;  %v7208_v51 = vunpack.c.h.bf16 %v5207_v13 }
 0x163   : > { %v5567_v10 = vmul.f32 %v7203_v3, %v5501_v60  ;;  %v5572_v38 = vmul.f32 %v5504_v44, %v7204_v23  ;;  %v5580_v18 = vmul.f32 %v7207_v41, %v5488_v48  ;;  %v5590_v2 = vmul.f32 %v7209_v31, %v5494_v33 }
 0x164   : > { %7202 = vst [vmem:[#allocation17_spill] sm:$0xff] %v5562_v20  ;;  %7206 = vst [vmem:[#allocation18_spill] sm:$0xff] %v5575_v37  ;;  %v5585_v20 = vmul.f32 %v7208_v51, %v5491_v26  ;;  %v7210_v23 = vunpack.c.h.bf16 %v5210_v24  ;;  %v7211_v3 = vunpack.c.l.bf16 %v5216_v9  ;;  %v7212_v13 = vunpack.c.h.bf16 %v5216_v9 }
 0x165   : > { %7205 = vst [vmem:[#allocation60_spill] sm:$0xff] %v5572_v38  ;;  %v7214_v37 = vunpack.c.l.bf16 %v5389_v42  ;;  %v7216_v38 = vunpack.c.l.bf16 %v5392_v57  ;;  %v7219_v9 = vunpack.c.h.bf16 %v5219_v6  ;;  %v7220_v42 = vunpack.c.l.bf16 %v5226_v19 }
 0x166   : > { %v5595_v11 = vmul.f32 %v7210_v23, %v5497_v27  ;;  %v5600_v41 = vmul.f32 %v7211_v3, %v5501_v60  ;;  %v5605_v51 = vmul.f32 %v7212_v13, %v5504_v44  ;;  %v7217_v23 = vunpack.c.l.bf16 %v5219_v6 }
 0x167   : > { %v5610_v31 = vmul.f32 %v5507_v25, %v7214_v37  ;;  %v5615_v24 = vmul.f32 %v5488_v48, %v7216_v38  ;;  %v5625_v13 = vmul.f32 %v7219_v9, %v5494_v33  ;;  %v5630_v37 = vmul.f32 %v7220_v42, %v5497_v27 }
 0x168   : > { %7213 = vst [vmem:[#allocation61_spill] sm:$0xff] %v5605_v51  ;;  %v5620_v3 = vmul.f32 %v7217_v23, %v5491_v26  ;;  %v7222_v51 = vunpack.c.h.bf16 %v5392_v57  ;;  %v7226_v9 = vunpack.c.l.bf16 %v5232_v1  ;;  %v7228_v57 = vunpack.c.l.bf16 %v5235_v59 }
 0x169   : > { %7215 = vst [vmem:[#allocation38_spill] sm:$0xff] %v5610_v31  ;;  %v7221_v31 = vunpack.c.h.bf16 %v5226_v19  ;;  %v7227_v19 = vunpack.c.h.bf16 %v5232_v1  ;;  %v7232_v1 = vunpack.c.h.bf16 %v5242_v22 }
 0x16a   : > { %7218 = vst [vmem:[#allocation82_spill] sm:$0xff] %v5620_v3  ;;  %v5640_v23 = vmul.f32 %v5504_v44, %v7222_v51  ;;  %v7224_v3 = vunpack.c.l.bf16 %v5399_v16  ;;  %v5650_v42 = vmul.f32 %v7226_v9, %v5488_v48  ;;  %v5660_v51 = vmul.f32 %v7228_v57, %v5494_v33 }
 0x16b   : > { %v5635_v38 = vmul.f32 %v7221_v31, %v5501_v60  ;;  %v5655_v31 = vmul.f32 %v7227_v19, %v5491_v26  ;;  %v7230_v16 = vunpack.c.h.bf16 %v5235_v59  ;;  %v5675_v19 = vmul.f32 %v7232_v1, %v5504_v44 }
 0x16c   : > { %7223 = vst [vmem:[#allocation19_spill] sm:$0xff] %v5640_v23  ;;  %v5645_v6 = vmul.f32 %v5507_v25, %v7224_v3  ;;  %7229 = vst [vmem:[#allocation20_spill] sm:$0xff] %v5660_v51  ;;  %v7234_v23 = vunpack.c.l.bf16 %v5402_v29  ;;  %v7236_v51 = vunpack.c.l.bf16 %v5405_v43  ;;  %v7240_v29 = vunpack.c.l.bf16 %v5251_v39 }
 0x16d   : > { %v5665_v3 = vmul.f32 %v7230_v16, %v5497_v27  ;;  %7233 = vst [vmem:[#allocation63_spill] sm:$0xff] %v5675_v19  ;;  %v7237_v16 = vunpack.c.l.bf16 %v5245_v14  ;;  %v7242_v19 = vunpack.c.h.bf16 %v5405_v43  ;;  %v7248_v43 = vunpack.c.l.bf16 %v5261_v55 }
 0x16e   : > { %7225 = vst [vmem:[#allocation62_spill] sm:$0xff] %v5645_v6  ;;  %v7231_v6 = vunpack.c.l.bf16 %v5242_v22  ;;  %v5680_v57 = vmul.f32 %v5507_v25, %v7234_v23  ;;  %v5685_v59 = vmul.f32 %v5488_v48, %v7236_v51  ;;  %v7239_v22 = vunpack.c.h.bf16 %v5245_v14 }
 0x16f   : > { %v5700_v23 = vmul.f32 %v7240_v29, %v5497_v27 }
 0x170   : > { %v5670_v9 = vmul.f32 %v7231_v6, %v5501_v60  ;;  %7235 = vst [vmem:[#allocation21_spill] sm:$0xff] %v5680_v57  ;;  %v5690_v6 = vmul.f32 %v7237_v16, %v5491_v26  ;;  %v5695_v1 = vmul.f32 %v7239_v22, %v5494_v33  ;;  %v7241_v57 = vunpack.c.h.bf16 %v5251_v39 }
 0x171   : > { %v5710_v16 = vmul.f32 %v5504_v44, %v7242_v19  ;;  %v7245_v22 = vunpack.c.l.bf16 %v5254_v17  ;;  %v7246_v39 = vunpack.c.h.bf16 %v5254_v17  ;;  %v5730_v19 = vmul.f32 %v7248_v43, %v5494_v33 }
 0x172   : > { %7238 = vst [vmem:[#allocation64_spill] sm:$0xff] %v5690_v6  ;;  %v5705_v51 = vmul.f32 %v7241_v57, %v5501_v60  ;;  %v7243_v6 = vunpack.c.l.bf16 %v5412_v46  ;;  %v7250_v46 = vunpack.c.h.bf16 %v5261_v55  ;;  %v7252_v17 = vunpack.c.h.bf16 %v5267_v36 }
 0x173   : > { %v5720_v29 = vmul.f32 %v7245_v22, %v5488_v48  ;;  %v5725_v57 = vmul.f32 %v7246_v39, %v5491_v26  ;;  %7249 = vst [vmem:[#allocation40_spill] sm:$0xff] %v5730_v19  ;;  %v7256_v19 = vunpack.c.l.bf16 %v5418_v15 }
 0x174   : > { %v5715_v14 = vmul.f32 %v5507_v25, %v7243_v6  ;;  %v5735_v6 = vmul.f32 %v7250_v46, %v5497_v27  ;;  %v5745_v39 = vmul.f32 %v7252_v17, %v5504_v44  ;;  %v7257_v46 = vunpack.c.l.bf16 %v5270_v12 }
 0x175   : > { %7247 = vst [vmem:[#allocation83_spill] sm:$0xff] %v5725_v57  ;;  %v7254_v57 = vunpack.c.l.bf16 %v5415_v0  ;;  %v5755_v55 = vmul.f32 %v5488_v48, %v7256_v19  ;;  %v7260_v0 = vunpack.c.l.bf16 %v5277_v62 }
 0x176   : > { %7244 = vst [vmem:[#allocation39_spill] sm:$0xff] %v5715_v14  ;;  %v7251_v14 = vunpack.c.l.bf16 %v5267_v36  ;;  %7253 = vst [vmem:[#allocation22_spill] sm:$0xff] %v5745_v39  ;;  %v7259_v36 = vunpack.c.h.bf16 %v5270_v12  ;;  %v7262_v39 = vunpack.c.h.bf16 %v5418_v15  ;;  %v7268_v15 = vunpack.c.l.bf16 %v5286_v7 }
 0x177   : > { %v5750_v43 = vmul.f32 %v5507_v25, %v7254_v57  ;;  %v5770_v57 = vmul.f32 %v7260_v0, %v5497_v27 }
 0x178   : > { %v5740_v22 = vmul.f32 %v7251_v14, %v5501_v60  ;;  %v5760_v14 = vmul.f32 %v7257_v46, %v5491_v26  ;;  %v5765_v17 = vmul.f32 %v7259_v36, %v5494_v33  ;;  %v5780_v46 = vmul.f32 %v5504_v44, %v7262_v39 }
 0x179   : > { %7255 = vst [vmem:[#allocation65_spill] sm:$0xff] %v5750_v43  ;;  %v7261_v43 = vunpack.c.h.bf16 %v5277_v62  ;;  %v7266_v36 = vunpack.c.l.bf16 %v5280_v35  ;;  %v7267_v62 = vunpack.c.h.bf16 %v5280_v35  ;;  %v5800_v39 = vmul.f32 %v7268_v15, %v5494_v33 }
 0x17a   : > { %7258 = vst [vmem:[#allocation23_spill] sm:$0xff] %v5760_v14  ;;  %7263 = vst [vmem:[#allocation66_spill] sm:$0xff] %v5780_v46  ;;  %v7264_v14 = vunpack.c.l.bf16 %v5425_v28  ;;  %v7270_v28 = vunpack.c.h.bf16 %v5286_v7  ;;  %v7272_v35 = vunpack.c.h.bf16 %v5289_v40  ;;  %v7274_v46 = vunpack.c.l.bf16 %v5428_v50  ;;  %v7282_v50 = vld [vmem:[#allocation11_spill] sm:$0xff] }
 0x17b   : > { %v5775_v19 = vmul.f32 %v7261_v43, %v5501_v60  ;;  %v5790_v0 = vmul.f32 %v7266_v36, %v5488_v48  ;;  %v5795_v43 = vmul.f32 %v7267_v62, %v5491_v26  ;;  %7269 = vst [vmem:[#allocation24_spill] sm:$0xff] %v5800_v39  ;;  %v7276_v39 = vunpack.c.l.bf16 %v5431_v5 }
 0x17c   : > { %v5785_v12 = vmul.f32 %v5507_v25, %v7264_v14  ;;  %v5805_v14 = vmul.f32 %v7270_v28, %v5497_v27  ;;  %v5815_v62 = vmul.f32 %v7272_v35, %v5504_v44  ;;  %v5820_v15 = vmul.f32 %v5507_v25, %v7274_v46 }
 0x17d   : > { %v5825_v7 = vmul.f32 %v5488_v48, %v7276_v39  ;;  %v7278_v28 = vunpack.c.l.bf16 %v5296_v8 }
 0x17e   : > { %7265 = vst [vmem:[#allocation41_spill] sm:$0xff] %v5785_v12  ;;  %v7271_v12 = vunpack.c.l.bf16 %v5289_v40  ;;  %7273 = vst [vmem:[#allocation28_spill] sm:$0xff] %v5815_v62  ;;  %v7280_v40 = vunpack.c.h.bf16 %v5296_v8  ;;  %v7283_v62 = vunpack.c.l.bf16 %v7282_v50 }
 0x17f   : > { %7275 = vst [vmem:[#allocation46_spill] sm:$0xff] %v5820_v15  ;;  %7277 = vst [vmem:[#allocation72_spill] sm:$0xff] %v5825_v7  ;;  %v7284_v15 = vunpack.c.h.bf16 %v7282_v50  ;;  %v7286_v7 = vunpack.c.h.bf16 %v5431_v5  ;;  %v7295_v5 = vld [vmem:[#allocation33_spill] sm:$0xff] }
 0x180   : > { %v5810_v36 = vmul.f32 %v7271_v12, %v5501_v60  ;;  %v5830_v12 = vmul.f32 %v7278_v28, %v5491_v26  ;;  %v5835_v35 = vmul.f32 %v7280_v40, %v5494_v33  ;;  %v5840_v46 = vmul.f32 %v7283_v62, %v5497_v27  ;;  %v7290_v40 = vld [vmem:[#allocation54_spill] sm:$0xff] }
 0x181   : > { %v5845_v39 = vmul.f32 %v7284_v15, %v5501_v60  ;;  %v5850_v28 = vmul.f32 %v5504_v44, %v7286_v7  ;;  %v7293_v50 = vunpack.c.h.bf16 %v7290_v40 }
 0x182   : > { %7279 = vst [vmem:[#allocation85_spill] sm:$0xff] %v5830_v12  ;;  %7281 = vst [vmem:[#allocation77_spill] sm:$0xff] %v5835_v35  ;;  %v7288_v12 = vunpack.c.l.bf16 %v5438_v34  ;;  %v7291_v35 = vunpack.c.l.bf16 %v7290_v40  ;;  %v7298_v34 = vunpack.c.h.bf16 %v7295_v5 }
 0x183   : > { %7285 = vst [vmem:[#allocation68_spill] sm:$0xff] %v5845_v39  ;;  %7287 = vst [vmem:[#allocation69_spill] sm:$0xff] %v5850_v28  ;;  %v5865_v15 = vmul.f32 %v7293_v50, %v5491_v26  ;;  %v7296_v39 = vunpack.c.l.bf16 %v7295_v5 }
 0x184   : > { %v5855_v8 = vmul.f32 %v5507_v25, %v7288_v12  ;;  %v5860_v62 = vmul.f32 %v7291_v35, %v5488_v48  ;;  %v5875_v12 = vmul.f32 %v7298_v34, %v5497_v27  ;;  %v7309_v34 = vld [vmem:[#allocation34_spill] sm:$0xff] }
 0x185   : > { %7294 = vst [vmem:[#allocation43_spill] sm:$0xff] %v5865_v15  ;;  %v5870_v7 = vmul.f32 %v7296_v39, %v5494_v33  ;;  %v7304_v15 = vunpack.c.l.bf16 %v5441_v53  ;;  %v7314_v53 = vld [vmem:[#allocation79_spill] sm:$0xff] }
 0x186   : > { %7289 = vst [vmem:[#allocation47_spill] sm:$0xff] %v5855_v8  ;;  %7292 = vst [vmem:[#allocation2_spill] sm:$0xff] %v5860_v62  ;;  %v7300_v8 = vld [vmem:[#allocation78_spill] sm:$0xff] }
 0x187   : > { %7297 = vst [vmem:[#allocation30_spill] sm:$0xff] %v5870_v7  ;;  %7299 = vst [vmem:[#allocation88_spill] sm:$0xff] %v5875_v12  ;;  %v7301_v28 = vunpack.c.l.bf16 %v7300_v8  ;;  %v7302_v40 = vunpack.c.h.bf16 %v7300_v8  ;;  %v5890_v39 = vmul.f32 %v5507_v25, %v7304_v15  ;;  %v7306_v7 = vld [vmem:[#allocation16_spill] sm:$0xff]  ;;  %v7310_v12 = vunpack.c.l.bf16 %v7309_v34 }
 0x188   : > { %v7307_v62 = vunpack.c.l.bf16 %v7306_v7  ;;  %v7312_v8 = vunpack.c.h.bf16 %v7309_v34 }
 0x189   : > { %v5880_v35 = vmul.f32 %v7301_v28, %v5501_v60  ;;  %v5885_v50 = vmul.f32 %v7302_v40, %v5504_v44  ;;  %7305 = vst [vmem:[#allocation27_spill] sm:$0xff] %v5890_v39  ;;  %v5900_v28 = vmul.f32 %v7310_v12, %v5491_v26  ;;  %v7316_v39 = vunpack.c.h.bf16 %v7314_v53 }
 0x18a   : > { %v5895_v5 = vmul.f32 %v5488_v48, %v7307_v62  ;;  %v5905_v40 = vmul.f32 %v7312_v8, %v5494_v33  ;;  %v7322_v8 = vld [vmem:[#allocation12_spill] sm:$0xff] }
 0x18b   : > { %7303 = vst [vmem:[#allocation29_spill] sm:$0xff] %v5885_v50  ;;  %7311 = vst [vmem:[#allocation48_spill] sm:$0xff] %v5900_v28  ;;  %v7315_v50 = vunpack.c.l.bf16 %v7314_v53  ;;  %v5915_v62 = vmul.f32 %v7316_v39, %v5501_v60  ;;  %v7320_v28 = vunpack.c.l.bf16 %v5451_v49  ;;  %v7324_v53 = vunpack.c.h.bf16 %v7322_v8 }
 0x18c   : > { %7308 = vst [vmem:[#allocation5_spill] sm:$0xff] %v5895_v5  ;;  %7313 = vst [vmem:[#allocation71_spill] sm:$0xff] %v5905_v40  ;;  %v7318_v5 = vunpack.c.h.bf16 %v7306_v7  ;;  %v7323_v40 = vunpack.c.l.bf16 %v7322_v8  ;;  %v7326_v7 = vld [vmem:[#allocation55_spill] sm:$0xff] }
 0x18d   : > { %v5910_v15 = vmul.f32 %v7315_v50, %v5497_v27  ;;  %7317 = vst [vmem:[#allocation31_spill] sm:$0xff] %v5915_v62  ;;  %v5925_v34 = vmul.f32 %v5507_v25, %v7320_v28  ;;  %v5935_v39 = vmul.f32 %v7324_v53, %v5491_v26  ;;  %v7327_v62 = vunpack.c.l.bf16 %v7326_v7 }
 0x18e   : > { %v5920_v12 = vmul.f32 %v5504_v44, %v7318_v5  ;;  %v5930_v50 = vmul.f32 %v7323_v40, %v5488_v48  ;;  %v7329_v49 = vunpack.c.h.bf16 %v7326_v7 }
 0x18f   : > { %7321 = vst [vmem:[#allocation26_spill] sm:$0xff] %v5925_v34  ;;  %7325 = vst [vmem:[#allocation86_spill] sm:$0xff] %v5935_v39  ;;  %v5940_v5 = vmul.f32 %v7327_v62, %v5494_v33  ;;  %v7331_v34 = vld [vmem:[#allocation13_spill] sm:$0xff]  ;;  %v7336_v39 = vunpack.c.l.bf16 %v5454_v56  ;;  %v7345_v56 = vld [vmem:[#allocation35_spill] sm:$0xff] }
 0x190   : > { %7319 = vst [vmem:[#allocation25_spill] sm:$0xff] %v5920_v12  ;;  %v5945_v28 = vmul.f32 %v7329_v49, %v5497_v27  ;;  %v7332_v12 = vunpack.c.l.bf16 %v7331_v34  ;;  %v7334_v8 = vunpack.c.h.bf16 %v7331_v34  ;;  %v7340_v49 = vld [vmem:[#allocation56_spill] sm:$0xff] }
 0x191   : > { %7328 = vst [vmem:[#allocation42_spill] sm:$0xff] %v5940_v5  ;;  %v5960_v62 = vmul.f32 %v5507_v25, %v7336_v39  ;;  %v7338_v5 = vunpack.c.l.bf16 %v5457_v45  ;;  %v7343_v34 = vunpack.c.h.bf16 %v7340_v49 }
 0x192   : > { %7330 = vst [vmem:[#allocation74_spill] sm:$0xff] %v5945_v28  ;;  %v5950_v40 = vmul.f32 %v7332_v12, %v5501_v60  ;;  %v5955_v53 = vmul.f32 %v7334_v8, %v5504_v44  ;;  %v7341_v28 = vunpack.c.l.bf16 %v7340_v49 }
 0x193   : > { %7337 = vst [vmem:[#allocation45_spill] sm:$0xff] %v5960_v62  ;;  %v5965_v7 = vmul.f32 %v5488_v48, %v7338_v5  ;;  %v5975_v8 = vmul.f32 %v7343_v34, %v5494_v33  ;;  %v7347_v62 = vunpack.c.h.bf16 %v7345_v56  ;;  %v7354_v34 = vld [vmem:[#allocation80_spill] sm:$0xff] }
 0x194   : > { %7333 = vst [vmem:[#allocation8_spill] sm:$0xff] %v5950_v40  ;;  %7335 = vst [vmem:[#allocation84_spill] sm:$0xff] %v5955_v53  ;;  %v5970_v12 = vmul.f32 %v7341_v28, %v5491_v26  ;;  %v7346_v53 = vunpack.c.l.bf16 %v7345_v56  ;;  %v7356_v56 = vunpack.c.h.bf16 %v7354_v34 }
 0x195   : > { %7339 = vst [vmem:[#allocation70_spill] sm:$0xff] %v5965_v7  ;;  %7344 = vst [vmem:[#allocation44_spill] sm:$0xff] %v5975_v8  ;;  %v5985_v5 = vmul.f32 %v7347_v62, %v5501_v60  ;;  %v7349_v7 = vunpack.c.h.bf16 %v5457_v45  ;;  %v7355_v8 = vunpack.c.l.bf16 %v7354_v34  ;;  %v7358_v45 = vld [vmem:[#allocation14_spill] sm:$0xff] }
 0x196   : > { %7342 = vst [vmem:[#allocation73_spill] sm:$0xff] %v5970_v12  ;;  %v5980_v39 = vmul.f32 %v7346_v53, %v5497_v27  ;;  %v7351_v12 = vld [vmem:[#allocation59_spill] sm:$0xff]  ;;  %v6005_v62 = vmul.f32 %v7356_v56, %v5491_v26 }
 0x197   : > { %7348 = vst [vmem:[#allocation50_spill] sm:$0xff] %v5985_v5  ;;  %v5990_v28 = vmul.f32 %v5504_v44, %v7349_v7  ;;  %v7352_v40 = vunpack.c.l.bf16 %v7351_v12  ;;  %v6000_v53 = vmul.f32 %v7355_v8, %v5488_v48  ;;  %v7359_v5 = vunpack.c.l.bf16 %v7358_v45 }
 0x198   : > { %7357 = vst [vmem:[#allocation75_spill] sm:$0xff] %v6005_v62  ;;  %v7361_v12 = vunpack.c.h.bf16 %v7358_v45  ;;  %v7367_v62 = vunpack.c.l.bf16 %v5475_v52  ;;  %v7374_v52 = vld [vmem:[#allocation58_spill] sm:$0xff] }
 0x199   : > { %7350 = vst [vmem:[#allocation6_spill] sm:$0xff] %v5990_v28  ;;  %v5995_v49 = vmul.f32 %v5507_v25, %v7352_v40  ;;  %v6010_v7 = vmul.f32 %v7359_v5, %v5494_v33 }
 0x19a   : > { %v6015_v40 = vmul.f32 %v7361_v12, %v5497_v27  ;;  %v6030_v5 = vmul.f32 %v5507_v25, %v7367_v62  ;;  %v7370_v12 = vld [vmem:[#allocation15_spill] sm:$0xff] }
 0x19b   : > { %7353 = vst [vmem:[#allocation87_spill] sm:$0xff] %v5995_v49  ;;  %7360 = vst [vmem:[#allocation3_spill] sm:$0xff] %v6010_v7  ;;  %v7363_v49 = vld [vmem:[#allocation57_spill] sm:$0xff]  ;;  %v7369_v7 = vunpack.c.l.bf16 %v5478_v21 }
 0x19c   : > { %7362 = vst [vmem:[#allocation76_spill] sm:$0xff] %v6015_v40  ;;  %v7364_v28 = vunpack.c.l.bf16 %v7363_v49  ;;  %v7365_v34 = vunpack.c.h.bf16 %v7363_v49  ;;  %7368 = vst [vmem:[#allocation4_spill] sm:$0xff] %v6030_v5  ;;  %v7371_v40 = vunpack.c.l.bf16 %v7370_v12  ;;  %v7372_v49 = vunpack.c.h.bf16 %v7370_v12 }
 0x19d   : > { %v6035_v45 = vmul.f32 %v5488_v48, %v7369_v7  ;;  %v1786_v5 = vsel %vm1388_vm0, %v5516_v32, 0.0  ;;  %v1787_v48 = vsel %vm1388_vm0, %v5521_v30, 0.0  ;;  %v7377_v7 = vunpack.c.h.bf16 %v7374_v52 }
 0x19e   : > { %v6020_v8 = vmul.f32 %v7364_v28, %v5501_v60  ;;  %v6025_v56 = vmul.f32 %v7365_v34, %v5504_v44  ;;  %v6040_v28 = vmul.f32 %v7371_v40, %v5491_v26  ;;  %v6045_v34 = vmul.f32 %v7372_v49, %v5494_v33 }
 0x19f   : > { %v1789_v26 = vsel %vm1388_vm0, %v5526_v61, 0.0  ;;  %v6061_v40 = vmul.f32 %v7377_v7, %v5501_v60  ;;  %v1788_v33 = vadd.f32 %v1787_v48, %v1786_v5  ;;  %v1791_v12 = vsel %vm1388_vm0, %v5531_v4, 0.0  ;;  %v7380_v5 = vld [vmem:[#allocation81_spill] sm:$0xff] }
 0x1a0   : > { %7366 = vst [vmem:[#allocation51_spill] sm:$0xff] %v6025_v56  ;;  %7373 = vst [vmem:[#allocation9_spill] sm:$0xff] %v6045_v34  ;;  %v7375_v56 = vunpack.c.l.bf16 %v7374_v52  ;;  %v1795_v32 = vsel %vm1388_vm0, %v5541_v63, 0.0  ;;  %v1805_v30 = vsel %vm1388_vm0, %v5547_v58, 0.0  ;;  %v1808_v60 = vsel %vm1388_vm0, %v5557_v54, 0.0  ;;  %v7381_v48 = vld [vmem:[#allocation17_spill] sm:$0xff] }
 0x1a1   : > { %7378 = vst [vmem:[#allocation10_spill] sm:$0xff] %v6061_v40  ;;  %v1790_v49 = vadd.f32 %v1789_v26, %v1788_v33  ;;  %v1797_v52 = vsel %vm1575_vm1, %v7380_v5, 0.0  ;;  %v1812_v63 = vsel %vm1388_vm0, %v5567_v10, 0.0  ;;  %v1824_v58 = vsel %vm1388_vm0, %v5580_v18, 0.0  ;;  %v7383_v5 = vld [vmem:[#allocation18_spill] sm:$0xff] }
 0x1a2   : > { %v6050_v62 = vmul.f32 %v7375_v56, %v5497_v27  ;;  %v1793_v27 = vsel %vm1388_vm0, %v5536_v47, 0.0  ;;  %v7379_v56 = vld [vmem:[#allocation37_spill] sm:$0xff]  ;;  %v1810_v47 = vsel %vm1388_vm0, %v7381_v48, 0.0  ;;  %v1825_v7 = vsel %vm1388_vm0, %v5585_v20, 0.0 }
 0x1a3   : > { %v1806_v61 = vsel %vm1388_vm0, %v7379_v56, 0.0  ;;  %v1827_v54 = vsel %vm1388_vm0, %v5590_v2, 0.0  ;;  %v1792_v26 = vadd.f32 %v1791_v12, %v1790_v49  ;;  %v7382_v56 = vld [vmem:[#allocation60_spill] sm:$0xff]  ;;  %v1816_v48 = vsel %vm1575_vm1, %v7383_v5, 0.0 }
 0x1a4   : > { %7376 = vst [vmem:[#allocation49_spill] sm:$0xff] %v6050_v62  ;;  %v1807_v4 = vadd.f32 %v1806_v61, %v1805_v30  ;;  %v1814_v30 = vsel %vm1388_vm0, %v7382_v56, 0.0  ;;  %v1826_v61 = vadd.f32 %v1825_v7, %v1824_v58  ;;  %v1829_v10 = vsel %vm1388_vm0, %v5595_v11, 0.0  ;;  %v7386_v7 = vld [vmem:[#allocation38_spill] sm:$0xff] }
 0x1a5   : > { %v1831_v18 = vsel %vm1388_vm0, %v5600_v41, 0.0  ;;  %v1843_v20 = vsel %vm1388_vm0, %v5615_v24, 0.0  ;;  %v1794_v40 = vadd.f32 %v1793_v27, %v1792_v26  ;;  %v1835_v56 = vsel %vm1575_vm1, %v7386_v7, 0.0 }
 0x1a6   : > { %v1809_v33 = vadd.f32 %v1808_v60, %v1807_v4  ;;  %v1828_v12 = vadd.f32 %v1827_v54, %v1826_v61  ;;  %v7384_v60 = vld [vmem:[#allocation82_spill] sm:$0xff]  ;;  %v7385_v4 = vld [vmem:[#allocation61_spill] sm:$0xff]  ;;  %v1846_v11 = vsel %vm1388_vm0, %v5625_v13, 0.0  ;;  %v1848_v24 = vsel %vm1388_vm0, %v5630_v37, 0.0 }
 0x1a7   : > { %v1844_v49 = vsel %vm1388_vm0, %v7384_v60, 0.0  ;;  %v1833_v58 = vsel %vm1388_vm0, %v7385_v4, 0.0  ;;  %v1796_v41 = vadd.f32 %v1795_v32, %v1794_v40  ;;  %v1862_v54 = vsel %vm1388_vm0, %v5650_v42, 0.0  ;;  %v7387_v32 = vld [vmem:[#allocation19_spill] sm:$0xff] }
 0x1a8   : > { %v1811_v2 = vadd.f32 %v1810_v47, %v1809_v33  ;;  %v1845_v5 = vadd.f32 %v1844_v49, %v1843_v20  ;;  %v1830_v34 = vadd.f32 %v1829_v10, %v1828_v12  ;;  %v1850_v47 = vsel %vm1388_vm0, %v5635_v38, 0.0  ;;  %v7388_v10 = vld [vmem:[#allocation20_spill] sm:$0xff] }
 0x1a9   : > { %v1863_v26 = vsel %vm1388_vm0, %v5655_v31, 0.0  ;;  %v1798_v33 = vadd.f32 %v1797_v52, %v1796_v41  ;;  %v1865_v37 = vsel %vm1388_vm0, %v7388_v10, 0.0  ;;  %v1867_v38 = vsel %vm1388_vm0, %v5665_v3, 0.0  ;;  %v7389_v31 = vld [vmem:[#allocation62_spill] sm:$0xff]  ;;  %v7390_v3 = vld [vmem:[#allocation63_spill] sm:$0xff] }
 0x1aa   : > { %v1813_v62 = vadd.f32 %v1812_v63, %v1811_v2  ;;  %v1847_v27 = vadd.f32 %v1846_v11, %v1845_v5  ;;  %v1832_v20 = vadd.f32 %v1831_v18, %v1830_v34  ;;  %v1864_v13 = vadd.f32 %v1863_v26, %v1862_v54 }
 0x1ab   : > { %v1852_v63 = vsel %vm1388_vm0, %v7387_v32, 0.0  ;;  %v1799_v2 = vrot.slane %v1798_v33, 4  ;;  %v1869_v34 = vsel %vm1388_vm0, %v5670_v9, 0.0  ;;  %v1881_v52 = vsel %vm1388_vm0, %v5685_v59, 0.0  ;;  %v7392_v59 = vld [vmem:[#allocation21_spill] sm:$0xff] }
 0x1ac   : > { %v1815_v61 = vadd.f32 %v1814_v30, %v1813_v62  ;;  %v1849_v40 = vadd.f32 %v1848_v24, %v1847_v27  ;;  %v1834_v42 = vadd.f32 %v1833_v58, %v1832_v20  ;;  %v1866_v60 = vadd.f32 %v1865_v37, %v1864_v13  ;;  %v7391_v58 = vld [vmem:[#allocation64_spill] sm:$0xff] }
 0x1ad   : > { %v1854_v62 = vsel %vm1575_vm1, %v7389_v31, 0.0  ;;  %v1800_v30 = vadd.f32 %v1799_v2, %v1798_v33  ;;  %v1882_v11 = vsel %vm1388_vm0, %v7391_v58, 0.0  ;;  %v1884_v41 = vsel %vm1388_vm0, %v5695_v1, 0.0 }
 0x1ae   : > { %v1817_v12 = vadd.f32 %v1816_v48, %v1815_v61  ;;  %v1851_v49 = vadd.f32 %v1850_v47, %v1849_v40  ;;  %v1836_v4 = vadd.f32 %v1835_v56, %v1834_v42  ;;  %v1868_v7 = vadd.f32 %v1867_v38, %v1866_v60 }
 0x1af   : > { %v1871_v48 = vsel %vm1388_vm0, %v7390_v3, 0.0  ;;  %v1801_v24 = vrot.slane %v1800_v30, 2  ;;  %v1873_v26 = vsel %vm1575_vm1, %v7392_v59, 0.0  ;;  %v1883_v56 = vadd.f32 %v1882_v11, %v1881_v52  ;;  %v7395_v52 = vld [vmem:[#allocation40_spill] sm:$0xff] }
 0x1b0   : > { %v1818_v18 = vrot.slane %v1817_v12, 4  ;;  %v1853_v5 = vadd.f32 %v1852_v63, %v1851_v49  ;;  %v1837_v9 = vrot.slane %v1836_v4, 4  ;;  %v1870_v47 = vadd.f32 %v1869_v34, %v1868_v7 }
 0x1b1   : > { %v1886_v33 = vsel %vm1388_vm0, %v5700_v23, 0.0  ;;  %v1802_v61 = vadd.f32 %v1801_v24, %v1800_v30  ;;  %v7393_v32 = vunpack.c.h.bf16 %v5478_v21  ;;  %v1885_v10 = vadd.f32 %v1884_v41, %v1883_v56  ;;  %v7394_v21 = vld [vmem:[#allocation83_spill] sm:$0xff] }
 0x1b2   : > { %v1819_v27 = vadd.f32 %v1818_v18, %v1817_v12  ;;  %v1855_v54 = vadd.f32 %v1854_v62, %v1853_v5  ;;  %v1838_v13 = vadd.f32 %v1837_v9, %v1836_v4  ;;  %v1872_v40 = vadd.f32 %v1871_v48, %v1870_v47  ;;  %v7396_v5 = vld [vmem:[#allocation36_spill] sm:$0xff] }
 0x1b3   : > { %v6138_v1 = vmul.f32 %v5504_v44, %v7393_v32  ;;  %v1888_v37 = vsel %vm1388_vm0, %v5705_v51, 0.0  ;;  %v1900_v23 = vsel %vm1388_vm0, %v5720_v29, 0.0  ;;  %v1887_v60 = vadd.f32 %v1886_v33, %v1885_v10 }
 0x1b4   : > { %v1820_v20 = vrot.slane %v1819_v27, 2  ;;  %v1856_v63 = vrot.slane %v1855_v54, 4  ;;  %v1839_v2 = vrot.slane %v1838_v13, 2  ;;  %v1874_v12 = vadd.f32 %v1873_v26, %v1872_v40  ;;  %v7400_v40 = vld [vmem:[#allocation22_spill] sm:$0xff] }
 0x1b5   : > { %v1890_v49 = vsel %vm1388_vm0, %v5710_v16, 0.0  ;;  %v1901_v44 = vsel %vm1388_vm0, %v7394_v21, 0.0  ;;  %v1803_v31 = vrot.slane %v1802_v61, 1  ;;  %v1903_v51 = vsel %vm1388_vm0, %v7395_v52, 0.0  ;;  %v7398_v16 = vld [vmem:[#allocation39_spill] sm:$0xff] }
 0x1b6   : > { %v1821_v38 = vadd.f32 %v1820_v20, %v1819_v27  ;;  %v1857_v42 = vadd.f32 %v1856_v63, %v1855_v54  ;;  %v1840_v62 = vadd.f32 %v1839_v2, %v1838_v13  ;;  %v1875_v34 = vrot.slane %v1874_v12, 4  ;;  %v7399_v20 = vld [vmem:[#allocation23_spill] sm:$0xff]  ;;  %v7401_v2 = vld [vmem:[#allocation65_spill] sm:$0xff] }
 0x1b7   : > { %v1889_v4 = vadd.f32 %v1888_v37, %v1887_v60  ;;  %v1902_v7 = vadd.f32 %v1901_v44, %v1900_v23  ;;  %v7397_v29 = vunpack.c.l.bf16 %v7396_v5  ;;  %v1892_v58 = vsel %vm1575_vm1, %v7398_v16, 0.0  ;;  %v7405_v16 = vld [vmem:[#allocation72_spill] sm:$0xff] }
 0x1b8   : > { %v1822_v30 = vrot.slane %v1821_v38, 1  ;;  %v1858_v18 = vrot.slane %v1857_v42, 2  ;;  %v1876_v48 = vadd.f32 %v1875_v34, %v1874_v12  ;;  %v1905_v11 = vsel %vm1388_vm0, %v5735_v6, 0.0 }
 0x1b9   : > { %v6153_v3 = vmul.f32 %v5507_v25, %v7397_v29  ;;  %v1841_v41 = vrot.slane %v1840_v62, 1  ;;  %v1891_v27 = vadd.f32 %v1890_v49, %v1889_v4  ;;  %v1904_v9 = vadd.f32 %v1903_v51, %v1902_v7  ;;  %v7404_v7 = vld [vmem:[#allocation41_spill] sm:$0xff] }
 0x1ba   : > { %v1859_v24 = vadd.f32 %v1858_v18, %v1857_v42  ;;  %v6159_v47 = vadd.f32 %v1803_v31, %v1802_v61  ;;  %v1877_v54 = vrot.slane %v1876_v48, 2  ;;  %v1907_v59 = vsel %vm1388_vm0, %v5740_v22, 0.0 }
 0x1bb   : > { %v1919_v25 = vsel %vm1388_vm0, %v5755_v55, 0.0  ;;  %v6165_v26 = vadd.f32 %v1822_v30, %v1821_v38  ;;  %v1893_v56 = vadd.f32 %v1892_v58, %v1891_v27  ;;  %v1906_v33 = vadd.f32 %v1905_v11, %v1904_v9  ;;  %v7403_v30 = vld [vmem:[#allocation66_spill] sm:$0xff]  ;;  %v7406_v11 = vld [vmem:[#allocation85_spill] sm:$0xff] }
 0x1bc   : > { %v1920_v6 = vsel %vm1388_vm0, %v7399_v20, 0.0  ;;  %v1860_v13 = vrot.slane %v1859_v24, 1  ;;  %v1909_v32 = vsel %vm1388_vm0, %v7400_v40, 0.0  ;;  %v1922_v63 = vsel %vm1388_vm0, %v5765_v17, 0.0 }
 0x1bd   : > { %v1921_v61 = vadd.f32 %v1920_v6, %v1919_v25  ;;  %v6173_v10 = vadd.f32 %v1841_v41, %v1840_v62  ;;  %v1894_v22 = vrot.slane %v1893_v56, 4  ;;  %v1908_v37 = vadd.f32 %v1907_v59, %v1906_v33  ;;  %v7402_v62 = vld [vmem:[#allocation24_spill] sm:$0xff] }
 0x1be   : > { %v1924_v55 = vsel %vm1388_vm0, %v5770_v57, 0.0  ;;  %v1878_v38 = vadd.f32 %v1877_v54, %v1876_v48  ;;  %v1911_v12 = vsel %vm1575_vm1, %v7401_v2, 0.0  ;;  %v1926_v42 = vsel %vm1388_vm0, %v5775_v19, 0.0 }
 0x1bf   : > { %v1923_v23 = vadd.f32 %v1922_v63, %v1921_v61  ;;  %v1895_v60 = vadd.f32 %v1894_v22, %v1893_v56  ;;  %v1910_v49 = vadd.f32 %v1909_v32, %v1908_v37  ;;  %v1938_v17 = vsel %vm1388_vm0, %v5790_v0, 0.0  ;;  %v7408_v56 = vld [vmem:[#allocation28_spill] sm:$0xff]  ;;  %v7409_v61 = vld [vmem:[#allocation46_spill] sm:$0xff] }
 0x1c0   : > { %v1939_v21 = vsel %vm1388_vm0, %v5795_v43, 0.0  ;;  %v6185_v44 = vadd.f32 %v1860_v13, %v1859_v24  ;;  %v1941_v34 = vsel %vm1388_vm0, %v7402_v62, 0.0  ;;  %v1928_v19 = vsel %vm1388_vm0, %v7403_v30, 0.0  ;;  %v7410_v22 = vld [vmem:[#allocation68_spill] sm:$0xff] }
 0x1c1   : > { %v1925_v31 = vadd.f32 %v1924_v55, %v1923_v23  ;;  %v1940_v57 = vadd.f32 %v1939_v21, %v1938_v17  ;;  %v1896_v52 = vrot.slane %v1895_v60, 2  ;;  %v1912_v51 = vadd.f32 %v1911_v12, %v1910_v49  ;;  %v7411_v55 = vld [vmem:[#allocation2_spill] sm:$0xff]  ;;  %v7413_v49 = vld [vmem:[#allocation69_spill] sm:$0xff] }
 0x1c2   : > { %v1943_v18 = vsel %vm1388_vm0, %v5805_v14, 0.0  ;;  %v1879_v4 = vrot.slane %v1878_v38, 1  ;;  %v1930_v43 = vsel %vm1575_vm1, %v7404_v7, 0.0  ;;  %v1945_v48 = vsel %vm1388_vm0, %v5810_v36, 0.0  ;;  %v7407_v14 = vld [vmem:[#allocation77_spill] sm:$0xff] }
 0x1c3   : > { %v1927_v0 = vadd.f32 %v1926_v42, %v1925_v31  ;;  %v1942_v5 = vadd.f32 %v1941_v34, %v1940_v57  ;;  %v1913_v29 = vrot.slane %v1912_v51, 4  ;;  %v1957_v58 = vsel %vm1388_vm0, %v7405_v16, 0.0  ;;  %v7414_v31 = vld [vmem:[#allocation30_spill] sm:$0xff] }
 0x1c4   : > { %v1958_v41 = vsel %vm1388_vm0, %v7406_v11, 0.0  ;;  %v1960_v54 = vsel %vm1388_vm0, %v7407_v14, 0.0  ;;  %v1897_v59 = vadd.f32 %v1896_v52, %v1895_v60  ;;  %v1947_v33 = vsel %vm1388_vm0, %v7408_v56, 0.0  ;;  %v7412_v60 = vld [vmem:[#allocation43_spill] sm:$0xff]  ;;  %v7418_v11 = vld [vmem:[#allocation29_spill] sm:$0xff] }
 0x1c5   : > { %v1929_v24 = vadd.f32 %v1928_v19, %v1927_v0  ;;  %v1944_v27 = vadd.f32 %v1943_v18, %v1942_v5  ;;  %v1959_v9 = vadd.f32 %v1958_v41, %v1957_v58  ;;  %v1914_v25 = vadd.f32 %v1913_v29, %v1912_v51  ;;  %v7415_v51 = vld [vmem:[#allocation88_spill] sm:$0xff]  ;;  %v7416_v18 = vld [vmem:[#allocation47_spill] sm:$0xff] }
 0x1c6   : > { %v1962_v36 = vsel %vm1388_vm0, %v5840_v46, 0.0  ;;  %v6207_v20 = vadd.f32 %v1879_v4, %v1878_v38  ;;  %v1949_v63 = vsel %vm1575_vm1, %v7409_v61, 0.0  ;;  %v1964_v37 = vsel %vm1388_vm0, %v7410_v22, 0.0  ;;  %v7422_v22 = vld [vmem:[#allocation31_spill] sm:$0xff] }
 0x1c7   : > { %v1931_v6 = vadd.f32 %v1930_v43, %v1929_v24  ;;  %v1946_v13 = vadd.f32 %v1945_v48, %v1944_v27  ;;  %v1961_v40 = vadd.f32 %v1960_v54, %v1959_v9  ;;  %v1915_v32 = vrot.slane %v1914_v25, 2  ;;  %v7417_v48 = vld [vmem:[#allocation5_spill] sm:$0xff]  ;;  %v7419_v24 = vld [vmem:[#allocation48_spill] sm:$0xff]  ;;  %v7420_v9 = vld [vmem:[#allocation71_spill] sm:$0xff] }
 0x1c8   : > { %v1976_v2 = vsel %vm1388_vm0, %v7411_v55, 0.0  ;;  %v1977_v46 = vsel %vm1388_vm0, %v7412_v60, 0.0  ;;  %v1898_v38 = vrot.slane %v1897_v59, 1  ;;  %v1966_v17 = vsel %vm1388_vm0, %v7413_v49, 0.0 }
 0x1c9   : > { %v1932_v12 = vrot.slane %v1931_v6, 4  ;;  %v1948_v23 = vadd.f32 %v1947_v33, %v1946_v13  ;;  %v1963_v42 = vadd.f32 %v1962_v36, %v1961_v40  ;;  %v1978_v21 = vadd.f32 %v1977_v46, %v1976_v2 }
 0x1ca   : > { %v1979_v57 = vsel %vm1388_vm0, %v7414_v31, 0.0  ;;  %v1981_v30 = vsel %vm1388_vm0, %v7415_v51, 0.0  ;;  %v1916_v19 = vadd.f32 %v1915_v32, %v1914_v25  ;;  %v1968_v4 = vsel %vm1575_vm1, %v7416_v18, 0.0  ;;  %v7427_v18 = vld [vmem:[#allocation74_spill] sm:$0xff] }
 0x1cb   : > { %v1933_v62 = vadd.f32 %v1932_v12, %v1931_v6  ;;  %v1950_v34 = vadd.f32 %v1949_v63, %v1948_v23  ;;  %v1965_v52 = vadd.f32 %v1964_v37, %v1963_v42  ;;  %v1980_v0 = vadd.f32 %v1979_v57, %v1978_v21  ;;  %v7421_v6 = vld [vmem:[#allocation27_spill] sm:$0xff]  ;;  %v7423_v23 = vld [vmem:[#allocation86_spill] sm:$0xff]  ;;  %v7424_v21 = vld [vmem:[#allocation25_spill] sm:$0xff] }
 0x1cc   : > { %v1983_v7 = vsel %vm1388_vm0, %v5880_v35, 0.0  ;;  %v1995_v16 = vsel %vm1388_vm0, %v7417_v48, 0.0  ;;  %v1985_v41 = vsel %vm1388_vm0, %v7418_v11, 0.0  ;;  %v1996_v27 = vsel %vm1388_vm0, %v7419_v24, 0.0 }
 0x1cd   : > { %v1934_v43 = vrot.slane %v1933_v62, 2  ;;  %v1951_v5 = vrot.slane %v1950_v34, 4  ;;  %v1967_v29 = vadd.f32 %v1966_v17, %v1965_v52  ;;  %v1982_v58 = vadd.f32 %v1981_v30, %v1980_v0 }
 0x1ce   : > { %v1998_v14 = vsel %vm1388_vm0, %v7420_v9, 0.0  ;;  %v1997_v35 = vadd.f32 %v1996_v27, %v1995_v16  ;;  %v1917_v33 = vrot.slane %v1916_v19, 1  ;;  %v1987_v13 = vsel %vm1575_vm1, %v7421_v6, 0.0  ;;  %v7429_v16 = vld [vmem:[#allocation70_spill] sm:$0xff]  ;;  %v7431_v27 = vld [vmem:[#allocation44_spill] sm:$0xff] }
 0x1cf   : > { %v1935_v54 = vadd.f32 %v1934_v43, %v1933_v62  ;;  %v1952_v25 = vadd.f32 %v1951_v5, %v1950_v34  ;;  %v1969_v56 = vadd.f32 %v1968_v4, %v1967_v29  ;;  %v1984_v36 = vadd.f32 %v1983_v7, %v1982_v58  ;;  %v7425_v62 = vld [vmem:[#allocation42_spill] sm:$0xff]  ;;  %v7428_v29 = vld [vmem:[#allocation8_spill] sm:$0xff] }
 0x1d0   : > { %v2000_v40 = vsel %vm1388_vm0, %v5910_v15, 0.0  ;;  %v1999_v63 = vadd.f32 %v1998_v14, %v1997_v35  ;;  %v2002_v37 = vsel %vm1388_vm0, %v7422_v22, 0.0  ;;  %v2014_v12 = vsel %vm1388_vm0, %v5930_v50, 0.0  ;;  %v7426_v50 = vld [vmem:[#allocation26_spill] sm:$0xff] }
 0x1d1   : > { %v1953_v32 = vrot.slane %v1952_v25, 2  ;;  %v1970_v61 = vrot.slane %v1969_v56, 4  ;;  %v1936_v55 = vrot.slane %v1935_v54, 1  ;;  %v1986_v2 = vadd.f32 %v1985_v41, %v1984_v36  ;;  %v7430_v41 = vld [vmem:[#allocation73_spill] sm:$0xff]  ;;  %v7434_v22 = vld [vmem:[#allocation50_spill] sm:$0xff] }
 0x1d2   : > { %v2015_v42 = vsel %vm1388_vm0, %v7423_v23, 0.0  ;;  %v6245_v60 = vadd.f32 %v1898_v38, %v1897_v59  ;;  %v2001_v17 = vadd.f32 %v2000_v40, %v1999_v63  ;;  %v2004_v31 = vsel %vm1388_vm0, %v7424_v21, 0.0  ;;  %v7435_v23 = vld [vmem:[#allocation75_spill] sm:$0xff] }
 0x1d3   : > { %v1954_v46 = vadd.f32 %v1953_v32, %v1952_v25  ;;  %v1971_v49 = vadd.f32 %v1970_v61, %v1969_v56  ;;  %v1988_v15 = vadd.f32 %v1987_v13, %v1986_v2  ;;  %v2016_v57 = vadd.f32 %v2015_v42, %v2014_v12  ;;  %v7433_v56 = vld [vmem:[#allocation45_spill] sm:$0xff] }
 0x1d4   : > { %v2017_v34 = vsel %vm1388_vm0, %v7425_v62, 0.0  ;;  %v6251_v52 = vadd.f32 %v1917_v33, %v1916_v19  ;;  %v2003_v51 = vadd.f32 %v2002_v37, %v2001_v17  ;;  %v2006_v30 = vsel %vm1575_vm1, %v7426_v50, 0.0 }
 0x1d5   : > { %v2019_v59 = vsel %vm1388_vm0, %v7427_v18, 0.0  ;;  %v6257_v38 = vadd.f32 %v1936_v55, %v1935_v54  ;;  %v1972_v4 = vrot.slane %v1971_v49, 2  ;;  %v1989_v0 = vrot.slane %v1988_v15, 4  ;;  %v7432_v54 = vld [vmem:[#allocation84_spill] sm:$0xff] }
 0x1d6   : > { %v2018_v7 = vadd.f32 %v2017_v34, %v2016_v57  ;;  %v1955_v43 = vrot.slane %v1954_v46, 1  ;;  %v2005_v5 = vadd.f32 %v2004_v31, %v2003_v51  ;;  %v2021_v48 = vsel %vm1388_vm0, %v7428_v29, 0.0  ;;  %v7437_v57 = vld [vmem:[#allocation6_spill] sm:$0xff]  ;;  %v7438_v34 = vld [vmem:[#allocation76_spill] sm:$0xff] }
 0x1d7   : > { %v2033_v19 = vsel %vm1388_vm0, %v7429_v16, 0.0  ;;  %v1990_v58 = vadd.f32 %v1989_v0, %v1988_v15  ;;  %v2034_v24 = vsel %vm1388_vm0, %v7430_v41, 0.0  ;;  %v2036_v9 = vsel %vm1388_vm0, %v7431_v27, 0.0 }
 0x1d8   : > { %v2020_v11 = vadd.f32 %v2019_v59, %v2018_v7  ;;  %v2007_v14 = vadd.f32 %v2006_v30, %v2005_v5  ;;  %v2023_v25 = vsel %vm1388_vm0, %v7432_v54, 0.0  ;;  %v2025_v35 = vsel %vm1575_vm1, %v7433_v56, 0.0  ;;  %v7439_v30 = vld [vmem:[#allocation87_spill] sm:$0xff] }
 0x1d9   : > { %v2035_v33 = vadd.f32 %v2034_v24, %v2033_v19  ;;  %v1973_v36 = vadd.f32 %v1972_v4, %v1971_v49  ;;  %v1991_v6 = vrot.slane %v1990_v58, 2  ;;  %v2038_v40 = vsel %vm1388_vm0, %v5980_v39, 0.0  ;;  %v7441_v24 = vld [vmem:[#allocation9_spill] sm:$0xff] }
 0x1da   : > { %v2022_v13 = vadd.f32 %v2021_v48, %v2020_v11  ;;  %v6273_v32 = vadd.f32 %v1955_v43, %v1954_v46  ;;  %v2008_v61 = vrot.slane %v2007_v14, 4  ;;  %v2040_v37 = vsel %vm1388_vm0, %v7434_v22, 0.0  ;;  %v7436_v46 = vld [vmem:[#allocation3_spill] sm:$0xff] }
 0x1db   : > { %v2037_v63 = vadd.f32 %v2036_v9, %v2035_v33  ;;  %v1992_v55 = vadd.f32 %v1991_v6, %v1990_v58  ;;  %v2052_v12 = vsel %vm1388_vm0, %v6000_v53, 0.0  ;;  %v2053_v42 = vsel %vm1388_vm0, %v7435_v23, 0.0  ;;  %v7440_v48 = vld [vmem:[#allocation51_spill] sm:$0xff] }
 0x1dc   : > { %v2024_v2 = vadd.f32 %v2023_v25, %v2022_v13  ;;  %v2009_v49 = vadd.f32 %v2008_v61, %v2007_v14  ;;  %v2054_v17 = vadd.f32 %v2053_v42, %v2052_v12  ;;  %v2055_v15 = vsel %vm1388_vm0, %v7436_v46, 0.0 }
 0x1dd   : > { %v2039_v39 = vadd.f32 %v2038_v40, %v2037_v63  ;;  %v1974_v21 = vrot.slane %v1973_v36, 1  ;;  %v2042_v62 = vsel %vm1388_vm0, %v7437_v57, 0.0  ;;  %v2057_v51 = vsel %vm1388_vm0, %v7438_v34, 0.0  ;;  %v7444_v40 = vld [vmem:[#allocation10_spill] sm:$0xff] }
 0x1de   : > { %v2026_v31 = vadd.f32 %v2025_v35, %v2024_v2  ;;  %v2010_v53 = vrot.slane %v2009_v49, 2  ;;  %v2044_v18 = vsel %vm1575_vm1, %v7439_v30, 0.0  ;;  %v2056_v59 = vadd.f32 %v2055_v15, %v2054_v17  ;;  %v7443_v35 = vld [vmem:[#allocation4_spill] sm:$0xff] }
 0x1df   : > { %v2041_v50 = vadd.f32 %v2040_v37, %v2039_v39  ;;  %v1993_v4 = vrot.slane %v1992_v55, 1  ;;  %v2059_v7 = vsel %vm1388_vm0, %v6020_v8, 0.0  ;;  %v2071_v43 = vsel %vm1388_vm0, %v6035_v45, 0.0  ;;  %v7442_v45 = vld [vmem:[#allocation49_spill] sm:$0xff] }
 0x1e0   : > { %v2027_v0 = vrot.slane %v2026_v31, 4  ;;  %v2058_v29 = vadd.f32 %v2057_v51, %v2056_v59  ;;  %v2061_v16 = vsel %vm1388_vm0, %v7440_v48, 0.0  ;;  %v2072_v19 = vsel %vm1388_vm0, %v6040_v28, 0.0 }
 0x1e1   : > { %v2043_v5 = vadd.f32 %v2042_v62, %v2041_v50  ;;  %v2011_v58 = vadd.f32 %v2010_v53, %v2009_v49  ;;  %v2073_v41 = vadd.f32 %v2072_v19, %v2071_v43  ;;  %v2074_v27 = vsel %vm1388_vm0, %v7441_v24, 0.0 }
 0x1e2   : > { %v2028_v11 = vadd.f32 %v2027_v0, %v2026_v31  ;;  %v1975_v8 = vadd.f32 %v1974_v21, %v1973_v36  ;;  %v2060_v14 = vadd.f32 %v2059_v7, %v2058_v29  ;;  %v2076_v54 = vsel %vm1388_vm0, %v7442_v45, 0.0 }
 0x1e3   : > { %v2045_v9 = vadd.f32 %v2044_v18, %v2043_v5  ;;  %v1994_v25 = vadd.f32 %v1993_v4, %v1992_v55  ;;  %v2063_v33 = vsel %vm1575_vm1, %v7443_v35, 0.0  ;;  %v2075_v6 = vadd.f32 %v2074_v27, %v2073_v41 }
 0x1e4   : > { %v2029_v56 = vrot.slane %v2028_v11, 2  ;;  %v2062_v13 = vadd.f32 %v2061_v16, %v2060_v14  ;;  %v2078_v61 = vsel %vm1388_vm0, %v7444_v40, 0.0  ;;  %v2107_v36 = vsel %vm2106_vm2, %v6165_v26, %v6159_v47 }
 0x1e5   : > { %v2046_v28 = vrot.slane %v2045_v9, 4  ;;  %v2012_v63 = vrot.slane %v2011_v58, 1  ;;  %v2077_v37 = vadd.f32 %v2076_v54, %v2075_v6  ;;  %v2109_v55 = vsel %vm2108_vm3, %v6173_v10, %v2107_v36 }
 0x1e6   : > { %v2030_v22 = vadd.f32 %v2029_v56, %v2028_v11  ;;  %v2064_v12 = vadd.f32 %v2063_v33, %v2062_v13  ;;  %v2080_v23 = vsel %vm1388_vm0, %v6138_v1, 0.0  ;;  %v2111_v42 = vsel %vm2110_vm4, %v6185_v44, %v2109_v55 }
 0x1e7   : > { %v2047_v2 = vadd.f32 %v2046_v28, %v2045_v9  ;;  %v2079_v49 = vadd.f32 %v2078_v61, %v2077_v37  ;;  %v2082_v39 = vsel %vm1575_vm1, %v6153_v3, 0.0  ;;  %v2113_v47 = vsel %vm2112_vm5, %v6207_v20, %v2111_v42 }
 0x1e8   : > { %v2120_v26 = vsel %vm2106_vm2, %v1975_v8, %v6273_v32  ;;  %v2031_v1 = vrot.slane %v2030_v22, 1  ;;  %v2065_v17 = vrot.slane %v2064_v12, 4  ;;  %v2115_v44 = vsel %vm2114_vm6, %v6245_v60, %v2113_v47 }
 0x1e9   : > { %v2048_v10 = vrot.slane %v2047_v2, 2  ;;  %v2013_v46 = vadd.f32 %v2012_v63, %v2011_v58  ;;  %v2081_v3 = vadd.f32 %v2080_v23, %v2079_v49  ;;  %v2117_v20 = vsel %vm2116_vm7, %v6251_v52, %v2115_v44 }
 0x1ea   : > { %v2066_v21 = vadd.f32 %v2065_v17, %v2064_v12  ;;  %v2119_v32 = vsel %vm2118_vm8, %v6257_v38, %v2117_v20  ;;  %v2121_v31 = vsel %vm2108_vm3, %v1994_v25, %v2120_v26  ;;  %v2032_v62 = vadd.f32 %v2031_v1, %v2030_v22 }
 0x1eb   : > { %v2049_v15 = vadd.f32 %v2048_v10, %v2047_v2  ;;  %v2083_v57 = vadd.f32 %v2082_v39, %v2081_v3  ;;  %2129 = vst.msk [vmem:[%s6324_s7] sm:$0xff] %vm1388_vm0, %v2119_v32  ;;  %v2122_v53 = vsel %vm2110_vm4, %v2013_v46, %v2121_v31 }
 0x1ec   : > { %v2067_v51 = vrot.slane %v2066_v21, 2  ;;  %v2123_v59 = vsel %vm2112_vm5, %v2032_v62, %v2122_v53 }
 0x1ed   : > { %v2050_v34 = vrot.slane %v2049_v15, 1  ;;  %v2084_v60 = vrot.slane %v2083_v57, 4 }
 0x1ee   : > { %v2068_v50 = vadd.f32 %v2067_v51, %v2066_v21 }
 0x1ef   : > { %v2051_v30 = vadd.f32 %v2050_v34, %v2049_v15  ;;  %v2085_v52 = vadd.f32 %v2084_v60, %v2083_v57 }
 0x1f0   : > { %v2069_v18 = vrot.slane %v2068_v50, 1 }
 0x1f1   : > { %v2086_v4 = vrot.slane %v2085_v52, 2  ;;  %v2124_v7 = vsel %vm2114_vm6, %v2051_v30, %v2123_v59 }
 0x1f2   : > { %v2070_v38 = vadd.f32 %v2069_v18, %v2068_v50 }
 0x1f3   : > { %v2087_v0 = vadd.f32 %v2086_v4, %v2085_v52 }
 0x1f4   : > { %v2125_v5 = vsel %vm2116_vm7, %v2070_v38, %v2124_v7 }
 0x1f5   : > { %v2088_v43 = vrot.slane %v2087_v0, 1 }
 0x1f7   : > { %v2089_v29 = vadd.f32 %v2088_v43, %v2087_v0 }
 0x1f9   : > { %v2126_v48 = vsel %vm2118_vm8, %v2089_v29, %v2125_v5 }
 0x1fa   : > { %2130 = vst.msk [vmem:[%s6324_s7 + $0x8] sm:$0xff] %vm1388_vm0, %v2126_v48 }
 0x1fb PF: > { %s14_s17 = sadd.s32 1, %s2947_s17   ;;  %s7445_s15 = smov %s2943_s16 }
 0x1fc   : > { %p11_p5 = scmp.ge.s32.totalorder %s14_s17, 10   ;;  %s7446_s16 = smov %s7448_s18 }
 0x1fe   :  { %13 = sbr.rel (!%p11_p5) target bundleno = 2 (0x2), region = 75 }

// kernel: hypercs3d_forward.7
= control target key start
LH: loop header
LB: loop body
LE: loop exit
PB: predicated region body
PF: predicated region fallthrough
CT: control target
= control target key end

     0   :  { %s516_s12 = smov 0   ;;  %s582_s0 = inlined_call_operand.vmem [shape: bf16[128,64], index: 0, kind: input, shape index: {}]   ;;  %s583_s1 = inlined_call_operand.vmem [shape: bf16[64,256], index: 1, kind: input, shape index: {}]   ;;  %s584_s2 = inlined_call_operand.vmem [shape: f32[1,256], index: 2, kind: input, shape index: {}]   ;;  %s585_s3 = inlined_call_operand.vmem [shape: f32[128,256], index: 3, kind: output, shape index: {}]  }
   0x1 LB: > { %s425_s13 = sadd.s32 4294967295, %s493_s12   ;;  %p429_p0 = scmp.ge.s32.totalorder %s493_s12, 1  ;;  %s493_s12 = sphi %s516_s12, %s13_s12  }
   0x2   : > { %p138_p1 = scmp.lt.s32.totalorder %s493_s12, 3 }
   0x4   : > { %p139_p2 = pnand %p429_p0, %p138_p1 }
   0x5   : > { %s430_s16 = sshll.u32 (!%p139_p2), %s425_s13, 3 }
   0x6   : > { %142 = sbr.rel (%p139_p2) target bundleno = 239 (0xef), region = 32  ;;  %p164_p3 = scmp.lt.s32.totalorder (!%p139_p2), %s430_s16, 15 }
   0xb   : > { %v471_v0 = vld [vmem:[%s583_s1 + $0x34] ss:$8 sps:$4 sm:$0xff]   ;;  %v473_v1 = vld [vmem:[%s583_s1 + $0x30] ss:$8 sps:$4 sm:$0xff]   ;;  %v495_v2 = vmov 0   ;;  %s587_s16 = smov (!%p164_p3, %s430_s16), 15  ;;  %v195_v13 = vlaneseq }
   0xc   : > { %310 = vmatprep.mubr.bf16.mxu0 %v495_v2  ;;  %330 = vmatprep.mubr.bf16.mxu1 %v495_v2  ;;  %v474_v3 = vld [vmem:[%s583_s1 + $0x24] ss:$8 sps:$4 sm:$0xff]   ;;  %v476_v4 = vld [vmem:[%s583_s1 + $0x20] ss:$8 sps:$4 sm:$0xff]   ;;  %v477_v5 = vld [vmem:[%s583_s1 + $0x14] ss:$8 sps:$4 sm:$0xff]  }
   0xd   : > { %286 = vmatprep.subr.bf16.mxu0 %v471_v0  ;;  %454 = vmatprep.subr.bf16.mxu1 %v471_v0  ;;  %s431_s25 = sshll.u32 %s587_s16, 2  ;;  %v479_v6 = vld [vmem:[%s583_s1 + $0x10] ss:$8 sps:$4 sm:$0xff]   ;;  %v480_v7 = vld [vmem:[%s583_s1 + $0x4] ss:$8 sps:$4 sm:$0xff]   ;;  %vm265_vm0 = vcmask 523264  }
   0xe   : > { %287 = vmatpush1.bf16.msra.mxu0 %v473_v1  ;;  %458 = vmatpush1.bf16.msra.mxu1 %v473_v1  ;;  %s167_s28 = scalar_lea.vmem %s582_s0, %s431_s25  ;;  %v482_v8 = vld [vmem:[%s583_s1] ss:$8 sps:$4 sm:$0xff]   ;;  %v196_v14 = vshrl.u32 %v195_v13, 7  ;;  %s453_s10 = sshll.u32 %s587_s16, 4 }
   0xf   : > { %288 = vmatprep.subr.bf16.mxu0 %v474_v3  ;;  %455 = vmatprep.subr.bf16.mxu1 %v474_v3  ;;  %v483_v9 = vld [vmem:[%s167_s28] sm:$0xff]   ;;  %v484_v10 = vld [vmem:[%s167_s28 + $0x10] sm:$0xff]   ;;  %v485_v11 = vld [vmem:[%s167_s28 + $0x8] sm:$0xff]   ;;  %s561_s14 = scalar_lea.vmem %s585_s3, %s453_s10 }
  0x10   : > { %v486_v12 = vld [vmem:[%s167_s28 + $0x18] sm:$0xff]   ;;  %v197_v15 = vsub.s32 0, %v196_v14  ;;  %v193_v16 = vld [vmem:[%s584_s2] sm:$0x3]  ;;  %v201_v17 = vsub.s32 1, %v196_v14 }
  0x12   : > { %289 = vmatpush1.bf16.msra.mxu0 %v476_v4  ;;  %459 = vmatpush1.bf16.msra.mxu1 %v476_v4  ;;  %v198_v18 = vrot.slane %v193_v16, %v197_v15  ;;  %v202_v19 = vrot.slane %v193_v16, %v201_v17 }
  0x13   : > { %290 = vmatprep.subr.bf16.mxu0 %v477_v5  ;;  %456 = vmatprep.subr.bf16.mxu1 %v477_v5 }
  0x16   : > { %291 = vmatpush1.bf16.msra.mxu0 %v479_v6  ;;  %460 = vmatpush1.bf16.msra.mxu1 %v479_v6 }
  0x17   : > { %292 = vmatprep.subr.bf16.mxu0 %v480_v7  ;;  %457 = vmatprep.subr.bf16.mxu1 %v480_v7 }
  0x1a   : > { %293 = vmatpush1.bf16.msra.mxu0 %v482_v8  ;;  %461 = vmatpush1.bf16.msra.mxu1 %v482_v8 }
  0x1d   : > { %447 = vmatmul.mubr.msk.bf16.vlgmr.msra.gmra.mxu0 %vm265_vm0, %v483_v9  ;;  %449 = vmatmul.mubr.msk.bf16.vlgmr.msra.gmra.mxu1 %vm265_vm0, %v484_v10 }
  0x1e   : > { %320 = vmatprep.mubr.bf16.mxu0 %v495_v2  ;;  %340 = vmatprep.mubr.bf16.mxu1 %v495_v2 }
  0x25   : > { %448 = vmatmul.mubr.msk.bf16.gmra.mxu0 %vm265_vm0, %v485_v11  ;;  %450 = vmatmul.mubr.msk.bf16.gmra.mxu1 %vm265_vm0, %v486_v12 }
  0xdd   : > { %v312_v20 = vpop.f32.mrf.mxu0  ;;  %v332_v21 = vpop.f32.mrf.mxu1 }
  0xde   : > { %v313_v22 = vadd.f32 %v312_v20, %v198_v18  ;;  %v333_v23 = vadd.f32 %v332_v21, %v198_v18 }
  0xdf   : > { %v314_v24 = vpop.f32.mrf.mxu0  ;;  %v334_v25 = vpop.f32.mrf.mxu1 }
  0xe0   : > { %351 = vst [vmem:[%s561_s14] sm:$0xff] %v313_v22  ;;  %359 = vst [vmem:[%s561_s14 + $0x40] sm:$0xff] %v333_v23  ;;  %v315_v26 = vadd.f32 %v314_v24, %v202_v19  ;;  %v335_v27 = vadd.f32 %v334_v25, %v202_v19 }
  0xe1   : > { %v316_v28 = vpop.f32.mrf.mxu0  ;;  %v336_v29 = vpop.f32.mrf.mxu1 }
  0xe2   : > { %352 = vst [vmem:[%s561_s14 + $0x8] sm:$0xff] %v315_v26  ;;  %360 = vst [vmem:[%s561_s14 + $0x48] sm:$0xff] %v335_v27  ;;  %v317_v30 = vadd.f32 %v316_v28, %v198_v18  ;;  %v337_v31 = vadd.f32 %v336_v29, %v198_v18 }
  0xe3   : > { %v318_v32 = vpop.f32.mrf.mxu0  ;;  %v338_v33 = vpop.f32.mrf.mxu1 }
  0xe4   : > { %353 = vst [vmem:[%s561_s14 + $0x10] sm:$0xff] %v317_v30  ;;  %361 = vst [vmem:[%s561_s14 + $0x50] sm:$0xff] %v337_v31  ;;  %v319_v34 = vadd.f32 %v318_v32, %v202_v19  ;;  %v339_v35 = vadd.f32 %v338_v33, %v202_v19 }
  0xe5   : > { %v322_v36 = vpop.f32.mrf.mxu0  ;;  %v342_v37 = vpop.f32.mrf.mxu1 }
  0xe6   : > { %354 = vst [vmem:[%s561_s14 + $0x18] sm:$0xff] %v319_v34  ;;  %362 = vst [vmem:[%s561_s14 + $0x58] sm:$0xff] %v339_v35  ;;  %v323_v38 = vadd.f32 %v322_v36, %v198_v18  ;;  %v343_v39 = vadd.f32 %v342_v37, %v198_v18 }
  0xe7   : > { %v324_v40 = vpop.f32.mrf.mxu0  ;;  %v344_v41 = vpop.f32.mrf.mxu1 }
  0xe8   : > { %355 = vst [vmem:[%s561_s14 + $0x20] sm:$0xff] %v323_v38  ;;  %363 = vst [vmem:[%s561_s14 + $0x60] sm:$0xff] %v343_v39  ;;  %v325_v42 = vadd.f32 %v324_v40, %v202_v19  ;;  %v345_v43 = vadd.f32 %v344_v41, %v202_v19 }
  0xe9   : > { %v326_v44 = vpop.f32.mrf.mxu0  ;;  %v346_v45 = vpop.f32.mrf.mxu1 }
  0xea   : > { %356 = vst [vmem:[%s561_s14 + $0x28] sm:$0xff] %v325_v42  ;;  %364 = vst [vmem:[%s561_s14 + $0x68] sm:$0xff] %v345_v43  ;;  %v327_v46 = vadd.f32 %v326_v44, %v198_v18  ;;  %v347_v47 = vadd.f32 %v346_v45, %v198_v18 }
  0xeb   : > { %v328_v48 = vpop.f32.mrf.mxu0  ;;  %v348_v49 = vpop.f32.mrf.mxu1 }
  0xec   : > { %357 = vst [vmem:[%s561_s14 + $0x30] sm:$0xff] %v327_v46  ;;  %365 = vst [vmem:[%s561_s14 + $0x70] sm:$0xff] %v347_v47  ;;  %v329_v50 = vadd.f32 %v328_v48, %v202_v19  ;;  %v349_v51 = vadd.f32 %v348_v49, %v202_v19 }
  0xee   : > { %358 = vst [vmem:[%s561_s14 + $0x38] sm:$0xff] %v329_v50  ;;  %366 = vst [vmem:[%s561_s14 + $0x78] sm:$0xff] %v349_v51 }
  0xef PF: > { %s13_s12 = sadd.s32 1, %s493_s12  }
  0xf0   : > { %p10_p4 = scmp.ge.s32.totalorder %s13_s12, 4  }
  0xf2   :  { %12 = sbr.rel (!%p10_p4) target bundleno = 1 (0x1), region = 62 }

</bundles_post_ra>
